<compile_context>
chip_gen: v7x
topology: tpu7x:2x2x1
jax: 0.10.0
libtpu: 0.0.40
codegen_flags: <defaults>
</compile_context>

<pallas_src>
import math
from functools import partial

import jax
import jax.numpy as jnp
from jax.experimental import pallas as pl
from jax.experimental.pallas import tpu as pltpu

# ----------------------------- scaled-down config -----------------------------
B = 2                 # batch
C_IN = 3              # image channels
H_IMG = W_IMG = 32    # small spatial size (multiple of patch_size)
PATCH = 16            # self.patch_size
NUM_FRAMES = 1        # self.num_frames
VAE_DOWN = 8          # VAE spatial downsample factor
LATENT_C = 16         # CogVideoX latent channels
SCALING_FACTOR = 0.7  # vae.config.scaling_factor (invert_scale_latents=False)
TPATCH = 2            # transformer patch_embed patch size
D = 64                # inner_dim (real: 3072)
TE = 32               # time_embed_dim (real: 512)
NHEAD = 4
DH = D // NHEAD
FF = 4 * D
TEXT_LEN = 8          # tokenizer max length (real: 226)
TEXT_DIM = 32         # text encoder dim (real: 4096)
NUM_BLOCKS = 2        # scaled-down transformer depth (real: 30/42)
EPS = 1e-5

# ------------------------------- Pallas kernels -------------------------------


def _ln(x, g, b):
    """LayerNorm over last dim, f32 statistics."""
    mean = jnp.mean(x, axis=-1, keepdims=True)
    var = jnp.mean((x - mean) ** 2, axis=-1, keepdims=True)
    return (x - mean) * jax.lax.rsqrt(var + EPS) * g + b


def _segment_mod(mod_ref, n_rows, st):
    """Per-token shift/scale/gate: text rows (<st) use enc-modulation rows 3..5,
    video rows use rows 0..2.  mod_ref: (6, D) f32."""
    is_text = jax.lax.broadcasted_iota(jnp.int32, (n_rows, 1), 0) < st
    shift = jnp.where(is_text, mod_ref[3:4, :], mod_ref[0:1, :])
    scale = jnp.where(is_text, mod_ref[4:5, :], mod_ref[1:2, :])
    gate = jnp.where(is_text, mod_ref[5:6, :], mod_ref[2:3, :])
    return shift, scale, gate


def _linear_kernel(x_ref, w_ref, b_ref, o_ref):
    """Simple fused linear (used once, for the stand-in VAE patchify conv)."""
    o_ref[...] = jnp.dot(x_ref[...].astype(jnp.bfloat16), w_ref[...],
                         preferred_element_type=jnp.float32) + b_ref[...]


def _embed_kernel(text_ref, img_ref, tw_ref, tb_ref, pw_ref, pb_ref, o_ref, *, st):
    """patch_embed: text projection + image patch projection written into a
    single contiguous (S, D) hidden buffer (text first, video second)."""
    t = jnp.dot(text_ref[...].astype(jnp.bfloat16), tw_ref[...],
                preferred_element_type=jnp.float32) + tb_ref[...]
    im = jnp.dot(img_ref[...].astype(jnp.bfloat16), pw_ref[...],
                 preferred_element_type=jnp.float32) + pb_ref[...]
    o_ref[0:st, :] = t
    o_ref[st:, :] = im


def _attn_block_kernel(x_ref, mod_ref, g_ref, beta_ref, wqkv_ref, bqkv_ref,
                       qn_g_ref, qn_b_ref, kn_g_ref, kn_b_ref,
                       wo_ref, bo_ref, o_ref, *, st):
    """Fused: LayerNormZero modulation + QKV proj + qk LayerNorm + MHA softmax
    attention + output projection + gated residual add.  Per-batch block."""
    x = x_ref[...]                                  # (S, D) f32
    s_tok = x.shape[0]
    shift, scale, gate = _segment_mod(mod_ref, s_tok, st)
    xn = _ln(x, g_ref[...], beta_ref[...])
    xm = xn * (1.0 + scale) + shift

    qkv = jnp.dot(xm.astype(jnp.bfloat16), wqkv_ref[...],
                  preferred_element_type=jnp.float32) + bqkv_ref[...]   # (S, 3D)

    inv_sqrt = 1.0 / math.sqrt(DH)
    acc = jnp.zeros((s_tok, D), jnp.float32)
    for h in range(NHEAD):                          # static unrolled loop
        q = qkv[:, h * DH:(h + 1) * DH]
        k = qkv[:, D + h * DH:D + (h + 1) * DH]
        v = qkv[:, 2 * D + h * DH:2 * D + (h + 1) * DH]
        # qk layer-norm over head_dim (Attention qk_norm="layer_norm")
        q = _ln(q, qn_g_ref[...], qn_b_ref[...])
        k = _ln(k, kn_g_ref[...], kn_b_ref[...])
        # TODO(synk): 3D rotary embedding on video tokens omitted.
        s = jax.lax.dot_general(q.astype(jnp.bfloat16), k.astype(jnp.bfloat16),
                                (((1,), (1,)), ((), ())),
                                preferred_element_type=jnp.float32) * inv_sqrt
        s = s - jnp.max(s, axis=-1, keepdims=True)
        p = jnp.exp(s)
        p = p * pl.reciprocal(jnp.sum(p, axis=-1, keepdims=True), approx=True)
        o_h = jnp.dot(p.astype(jnp.bfloat16), v.astype(jnp.bfloat16),
                      preferred_element_type=jnp.float32)               # (S, DH)
        # fold output projection per head:  o @ Wo = sum_h o_h @ Wo[h]
        acc = acc + jnp.dot(o_h.astype(jnp.bfloat16),
                            wo_ref[h * DH:(h + 1) * DH, :],
                            preferred_element_type=jnp.float32)

    o_ref[...] = x + gate * (acc + bo_ref[...])


def _ffn_block_kernel(x_ref, mod_ref, g_ref, beta_ref, w1_ref, b1_ref,
                      w2_ref, b2_ref, o_ref, *, st):
    """Fused: LayerNormZero modulation + FFN (gelu-tanh) + gated residual."""
    x = x_ref[...]                                  # (S, D) f32
    s_tok = x.shape[0]
    shift, scale, gate = _segment_mod(mod_ref, s_tok, st)
    xn = _ln(x, g_ref[...], beta_ref[...])
    xm = xn * (1.0 + scale) + shift

    h = jnp.dot(xm.astype(jnp.bfloat16), w1_ref[...],
                preferred_element_type=jnp.float32) + b1_ref[...]
    # gelu-approximate (tanh), as in CogVideoXBlock FeedForward (f32 math)
    h = 0.5 * h * (1.0 + jnp.tanh(0.7978845608028654 * (h + 0.044715 * h * h * h)))
    y = jnp.dot(h.astype(jnp.bfloat16), w2_ref[...],
                preferred_element_type=jnp.float32) + b2_ref[...]
    o_ref[...] = x + gate * y


def _final_ln_kernel(x_ref, g_ref, b_ref, o_ref, *, st):
    """norm_final on the video-token segment only; lane-dense (Sv, D) output."""
    x = x_ref[st:, :]
    o_ref[...] = _ln(x, g_ref[...], b_ref[...])


# ------------------------------ kernel wrappers --------------------------------


def _wspec(shape):
    """Weight-like input: same (full-array) block for every grid step."""
    return pl.BlockSpec(shape, lambda b: tuple(0 for _ in shape))


def _bspec(shape):
    """Per-batch block: leading batch dim squeezed out of the kernel view."""
    return pl.BlockSpec((None,) + shape, lambda b: (b,) + tuple(0 for _ in shape))


def vae_linear(x, w, b):
    M, K = x.shape
    N = w.shape[1]
    return pl.pallas_call(
        _linear_kernel, grid=(1,),
        in_specs=[_wspec((M, K)), _wspec((K, N)), _wspec((1, N))],
        out_specs=_wspec((M, N)),
        out_shape=jax.ShapeDtypeStruct((M, N), jnp.float32),
    )(x, w, b)


def embed_tokens(prompt_embeds, img_patches, params):
    Bn, n_tok, pk = img_patches.shape
    S = TEXT_LEN + n_tok
    return pl.pallas_call(
        partial(_embed_kernel, st=TEXT_LEN), grid=(Bn,),
        in_specs=[_wspec((TEXT_LEN, TEXT_DIM)),          # shared prompt embeds
                  _bspec((n_tok, pk)),
                  _wspec((TEXT_DIM, D)), _wspec((1, D)),
                  _wspec((pk, D)), _wspec((1, D))],
        out_specs=_bspec((S, D)),
        out_shape=jax.ShapeDtypeStruct((Bn, S, D), jnp.float32),
        compiler_params=pltpu.CompilerParams(dimension_semantics=("parallel",)),
    )(prompt_embeds, img_patches,
      params['text_proj_w'], params['text_proj_b'],
      params['pe_w'], params['pe_b'])


def attn_block(hidden, mod, p):
    Bn, S, Dn = hidden.shape
    return pl.pallas_call(
        partial(_attn_block_kernel, st=TEXT_LEN), grid=(Bn,),
        in_specs=[_bspec((S, Dn)), _bspec((6, Dn)),
                  _wspec((1, Dn)), _wspec((1, Dn)),
                  _wspec((Dn, 3 * Dn)), _wspec((1, 3 * Dn)),
                  _wspec((1, DH)), _wspec((1, DH)),
                  _wspec((1, DH)), _wspec((1, DH)),
                  _wspec((Dn, Dn)), _wspec((1, Dn))],
        out_specs=_bspec((S, Dn)),
        out_shape=jax.ShapeDtypeStruct((Bn, S, Dn), jnp.float32),
        compiler_params=pltpu.CompilerParams(dimension_semantics=("parallel",)),
    )(hidden, mod,
      p['n1_g'], p['n1_beta'], p['wqkv'], p['bqkv'],
      p['qn_g'], p['qn_b'], p['kn_g'], p['kn_b'],
      p['wo'], p['bo'])


def ffn_block(hidden, mod, p):
    Bn, S, Dn = hidden.shape
    return pl.pallas_call(
        partial(_ffn_block_kernel, st=TEXT_LEN), grid=(Bn,),
        in_specs=[_bspec((S, Dn)), _bspec((6, Dn)),
                  _wspec((1, Dn)), _wspec((1, Dn)),
                  _wspec((Dn, FF)), _wspec((1, FF)),
                  _wspec((FF, Dn)), _wspec((1, Dn))],
        out_specs=_bspec((S, Dn)),
        out_shape=jax.ShapeDtypeStruct((Bn, S, Dn), jnp.float32),
        compiler_params=pltpu.CompilerParams(dimension_semantics=("parallel",)),
    )(hidden, mod,
      p['n2_g'], p['n2_beta'], p['ff_w1'], p['ff_b1'], p['ff_w2'], p['ff_b2'])


def final_layernorm(hidden, gamma, beta):
    Bn, S, Dn = hidden.shape
    Sv = S - TEXT_LEN
    return pl.pallas_call(
        partial(_final_ln_kernel, st=TEXT_LEN), grid=(Bn,),
        in_specs=[_bspec((S, Dn)), _wspec((1, Dn)), _wspec((1, Dn))],
        out_specs=_bspec((Sv, Dn)),
        out_shape=jax.ShapeDtypeStruct((Bn, Sv, Dn), jnp.float32),
        compiler_params=pltpu.CompilerParams(dimension_semantics=("parallel",)),
    )(hidden, gamma, beta)


# ------------------------------- model pieces ---------------------------------


def extract_patches(x, p):
    """x: (B, C, H, W) -> (B, (H/p)*(W/p), C*p*p) with Conv2d weight ordering."""
    Bn, C, Hh, Ww = x.shape
    x = x.reshape(Bn, C, Hh // p, p, Ww // p, p)
    x = x.transpose(0, 2, 4, 1, 3, 5)            # (B, h, w, C, p, p)
    return x.reshape(Bn, (Hh // p) * (Ww // p), C * p * p)


def timestep_embedding(t, dim):
    """diffusers Timesteps: flip_sin_to_cos=True, downscale_freq_shift=0."""
    half = dim // 2
    exponent = -math.log(10000.0) * jnp.arange(half, dtype=jnp.float32) / half
    freqs = jnp.exp(exponent)
    args = t[:, None].astype(jnp.float32) * freqs[None, :]
    return jnp.concatenate([jnp.cos(args), jnp.sin(args)], axis=-1)


# --------------------------------- forward ------------------------------------


def cogvideox_forward(params, images):
    """images: (B, C, H, W) float32, NCHW.  Returns dense feature (B, D, h, w)."""
    Bn, Cc, Hh, Ww = images.shape
    # fit_to_patch: crop to multiples of patch_size (identity for 32x32).
    Hc = (Hh // PATCH) * PATCH
    Wc = (Ww // PATCH) * PATCH
    images = images[:, :, :Hc, :Wc]
    h_tok, w_tok = Hc // PATCH, Wc // PATCH
    # unsqueeze(2) + expand to num_frames -> (B, C, T, H, W)
    video = jnp.broadcast_to(images[:, :, None, :, :], (Bn, Cc, NUM_FRAMES, Hc, Wc))

    # ---- encode_image: stand-in VAE (strided patchify conv -> 16 latent ch) ----
    frame0 = video[:, :, 0]                                   # T=1 -> T_lat=1
    patches = extract_patches(frame0, VAE_DOWN)               # (B, hp*wp, C*64)
    NP, PK = patches.shape[1], patches.shape[2]
    lat = vae_linear(patches.reshape(Bn * NP, PK), params['vae_w'], params['vae_b'])
    hp, wp = Hc // VAE_DOWN, Wc // VAE_DOWN
    lat = lat.reshape(Bn, hp, wp, LATENT_C).transpose(0, 3, 1, 2)   # (B, 16, hp, wp)
    latents = SCALING_FACTOR * lat[:, :, None]                # (B, 16, 1, hp, wp)
    latents = latents.transpose(0, 2, 1, 3, 4)                # (B, T, C, hp, wp)

    # ---- time embedding: tiny (B rows), stays in plain JAX per review ----
    t = jnp.zeros((Bn,), jnp.float32)                         # add_noise=False
    t_emb = timestep_embedding(t, D)
    h1 = t_emb @ params['time_w1'] + params['time_b1']
    emb = jax.nn.silu(h1) @ params['time_w2'] + params['time_b2']   # (B, TE)
    semb = jax.nn.silu(emb)                                   # shared silu(temb)

    # ---- patch_embed: text proj + image patch conv, fused hidden (B, S, D) ----
    lat_frames = latents.reshape(Bn * NUM_FRAMES, LATENT_C, hp, wp)
    ip = extract_patches(lat_frames, TPATCH)                  # (B, n_tok, 16*4)
    ip = ip.reshape(Bn, -1, LATENT_C * TPATCH * TPATCH)
    hidden = embed_tokens(params['prompt_embeds'], ip, params)
    # embedding_dropout: eval mode -> identity

    for blk in params['blocks']:
        # CogVideoXLayerNormZero modulation (B, 6, D) — tiny, plain JAX
        mod1 = (semb @ blk['n1_w'] + blk['n1_b']).reshape(Bn, 6, D)
        mod2 = (semb @ blk['n2_w'] + blk['n2_b']).reshape(Bn, 6, D)
        hidden = attn_block(hidden, mod1, blk)
        hidden = ffn_block(hidden, mod2, blk)

    # norm_final on the video tokens (layer == last multilayer), lane-dense out
    feat = final_layernorm(hidden, params['nf_g'], params['nf_b'])    # (B, Sv, D)

    # tokens_to_output('dense', feat[:, :h*w], None, (h, w)) -> (B, D, h, w)
    feat = feat[:, :h_tok * w_tok]
    out = feat.transpose(0, 2, 1).reshape(Bn, D, h_tok, w_tok)
    return out.astype(jnp.float32)


# ----------------------------- parameter init ----------------------------------


class KeyGen:
    def __init__(self, key):
        self.key = key

    def __call__(self):
        self.key, sub = jax.random.split(self.key)
        return sub


def init_params(key):
    kg = KeyGen(key)

    def W(shape, s=0.02, dtype=jnp.bfloat16):
        # matmul weights stored in bf16 (MXU-native operands, half the HBM DMA)
        return (s * jax.random.normal(kg(), shape)).astype(dtype)

    def Zf(shape):
        return jnp.zeros(shape, jnp.float32)

    def Of(shape):
        return jnp.ones(shape, jnp.float32)

    def block_params():
        return dict(
            # LayerNormZero linears run in plain JAX -> f32
            n1_w=W((TE, 6 * D), dtype=jnp.float32), n1_b=Zf((6 * D,)),
            n1_g=Of((1, D)), n1_beta=Zf((1, D)),
            n2_w=W((TE, 6 * D), dtype=jnp.float32), n2_b=Zf((6 * D,)),
            n2_g=Of((1, D)), n2_beta=Zf((1, D)),
            # fused QKV weight (D, 3D) = [Wq | Wk | Wv]
            wqkv=W((D, 3 * D)), bqkv=Zf((1, 3 * D)),
            wo=W((D, D)), bo=Zf((1, D)),
            qn_g=Of((1, DH)), qn_b=Zf((1, DH)),
            kn_g=Of((1, DH)), kn_b=Zf((1, DH)),
            ff_w1=W((D, FF)), ff_b1=Zf((1, FF)),
            ff_w2=W((FF, D)), ff_b2=Zf((1, D)),
        )

    return dict(
        vae_w=W((C_IN * VAE_DOWN * VAE_DOWN, LATENT_C)), vae_b=Zf((1, LATENT_C)),
        prompt_embeds=W((TEXT_LEN, TEXT_DIM), 1.0, dtype=jnp.float32),
        time_w1=W((D, TE), dtype=jnp.float32), time_b1=Zf((TE,)),
        time_w2=W((TE, TE), dtype=jnp.float32), time_b2=Zf((TE,)),
        pe_w=W((LATENT_C * TPATCH * TPATCH, D)), pe_b=Zf((1, D)),
        text_proj_w=W((TEXT_DIM, D)), text_proj_b=Zf((1, D)),
        nf_g=Of((1, D)), nf_b=Zf((1, D)),
        blocks=[block_params() for _ in range(NUM_BLOCKS)],
    )


# ----------------------------------- main --------------------------------------

if __name__ == "__main__":
    k_params, k_img = jax.random.split(jax.random.PRNGKey(0))
    params = init_params(k_params)
    images = jax.random.normal(k_img, (B, C_IN, H_IMG, W_IMG), jnp.float32)

    fwd = jax.jit(cogvideox_forward)
    out = jax.block_until_ready(fwd(params, images))

    assert out.shape == (B, D, H_IMG // PATCH, W_IMG // PATCH), out.shape
    assert out.dtype == jnp.float32
    assert bool(jnp.all(jnp.isfinite(out)))
    print("KERNEL_OK")
</pallas_src>

<mosaic_0001>
module attributes {stable_mosaic.version = 11 : i64} {
  func.func @_linear_kernel(%arg0: i32, %arg1: memref<32x192xf32, #tpu.memory_space<vmem>>, %arg2: memref<192x16xbf16, #tpu.memory_space<vmem>>, %arg3: memref<1x16xf32, #tpu.memory_space<vmem>>, %arg4: memref<32x16xf32, #tpu.memory_space<vmem>>) attributes {dimension_semantics = [#tpu.dimension_semantics<arbitrary>], iteration_bounds = array<i64: 1>, scalar_prefetch = 0 : i64, scratch_operands = 0 : i64, tpu.core_type = #tpu.core_type<tc>, window_params = [{pipeline_mode = #tpu.pipeline_mode<synchronous>, transform_indices = @transform_0, window_bounds = array<i64: 32, 192>}, {pipeline_mode = #tpu.pipeline_mode<synchronous>, transform_indices = @transform_1, window_bounds = array<i64: 192, 16>}, {pipeline_mode = #tpu.pipeline_mode<synchronous>, transform_indices = @transform_2, window_bounds = array<i64: 1, 16>}, {pipeline_mode = #tpu.pipeline_mode<synchronous>, transform_indices = @transform_3, window_bounds = array<i64: 32, 16>}]} {
    %c0 = arith.constant 0 : index
    %c0_0 = arith.constant 0 : index
    %0 = vector.load %arg1[%c0, %c0_0] : memref<32x192xf32, #tpu.memory_space<vmem>>, vector<32x192xf32>
    %1 = arith.truncf %0 : vector<32x192xf32> to vector<32x192xbf16>
    %c0_1 = arith.constant 0 : index
    %c0_2 = arith.constant 0 : index
    %2 = vector.load %arg2[%c0_1, %c0_2] : memref<192x16xbf16, #tpu.memory_space<vmem>>, vector<192x16xbf16>
    %cst = arith.constant dense<0.000000e+00> : vector<32x16xf32>
    %3 = tpu.matmul %1, %2, %cst {dimension_numbers = #tpu.dot_dimension_numbers<[1], [0], [0], [1], [0, 0, 1, 1], [], []>} : vector<32x192xbf16>, vector<192x16xbf16>, vector<32x16xf32> -> vector<32x16xf32>
    %c0_3 = arith.constant 0 : index
    %c0_4 = arith.constant 0 : index
    %4 = vector.load %arg3[%c0_3, %c0_4] : memref<1x16xf32, #tpu.memory_space<vmem>>, vector<1x16xf32>
    %5 = vector.broadcast %4 : vector<1x16xf32> to vector<32x16xf32>
    %6 = arith.addf %3, %5 : vector<32x16xf32>
    %c0_5 = arith.constant 0 : index
    %c0_6 = arith.constant 0 : index
    %7 = vector.load %arg4[%c0_5, %c0_6] : memref<32x16xf32, #tpu.memory_space<vmem>>, vector<32x16xf32>
    tpu.vector_store %arg4[%c0_5, %c0_6], %6 {strides = array<i32>} : memref<32x16xf32, #tpu.memory_space<vmem>>, vector<32x16xf32>,
    return
  }
  func.func @transform_0(%arg0: i32) -> (i32, i32) {
    %c0_i32 = arith.constant 0 : i32
    %c0_i32_0 = arith.constant 0 : i32
    %c0_i32_1 = arith.constant 0 : i32
    return %c0_i32, %c0_i32_0 : i32, i32
  }
  func.func @transform_1(%arg0: i32) -> (i32, i32) {
    %c0_i32 = arith.constant 0 : i32
    %c0_i32_0 = arith.constant 0 : i32
    %c0_i32_1 = arith.constant 0 : i32
    return %c0_i32, %c0_i32_0 : i32, i32
  }
  func.func @transform_2(%arg0: i32) -> (i32, i32) {
    %c0_i32 = arith.constant 0 : i32
    %c0_i32_0 = arith.constant 0 : i32
    %c0_i32_1 = arith.constant 0 : i32
    return %c0_i32, %c0_i32_0 : i32, i32
  }
  func.func @transform_3(%arg0: i32) -> (i32, i32) {
    %c0_i32 = arith.constant 0 : i32
    %c0_i32_0 = arith.constant 0 : i32
    %c0_i32_1 = arith.constant 0 : i32
    return %c0_i32, %c0_i32_0 : i32, i32
  }
}

module attributes {stable_mosaic.version = 11 : i64} {
  func.func @_embed_kernel(%arg0: i32, %arg1: memref<8x32xf32, #tpu.memory_space<vmem>>, %arg2: memref<1x4x64xf32, #tpu.memory_space<vmem>>, %arg3: memref<32x64xbf16, #tpu.memory_space<vmem>>, %arg4: memref<1x64xf32, #tpu.memory_space<vmem>>, %arg5: memref<64x64xbf16, #tpu.memory_space<vmem>>, %arg6: memref<1x64xf32, #tpu.memory_space<vmem>>, %arg7: memref<1x12x64xf32, #tpu.memory_space<vmem>>) attributes {dimension_semantics = [#tpu.dimension_semantics<parallel>], iteration_bounds = array<i64: 2>, scalar_prefetch = 0 : i64, scratch_operands = 0 : i64, tpu.core_type = #tpu.core_type<tc>, window_params = [{pipeline_mode = #tpu.pipeline_mode<synchronous>, transform_indices = @transform_0, window_bounds = array<i64: 8, 32>}, {transform_indices = @transform_1, window_bounds = array<i64: 1, 4, 64>}, {pipeline_mode = #tpu.pipeline_mode<synchronous>, transform_indices = @transform_2, window_bounds = array<i64: 32, 64>}, {pipeline_mode = #tpu.pipeline_mode<synchronous>, transform_indices = @transform_3, window_bounds = array<i64: 1, 64>}, {pipeline_mode = #tpu.pipeline_mode<synchronous>, transform_indices = @transform_4, window_bounds = array<i64: 64, 64>}, {pipeline_mode = #tpu.pipeline_mode<synchronous>, transform_indices = @transform_5, window_bounds = array<i64: 1, 64>}, {transform_indices = @transform_6, window_bounds = array<i64: 1, 12, 64>}]} {
    %c0 = arith.constant 0 : index
    %c0_0 = arith.constant 0 : index
    %0 = vector.load %arg1[%c0, %c0_0] : memref<8x32xf32, #tpu.memory_space<vmem>>, vector<8x32xf32>
    %1 = arith.truncf %0 : vector<8x32xf32> to vector<8x32xbf16>
    %c0_1 = arith.constant 0 : index
    %c0_2 = arith.constant 0 : index
    %2 = vector.load %arg3[%c0_1, %c0_2] : memref<32x64xbf16, #tpu.memory_space<vmem>>, vector<32x64xbf16>
    %cst = arith.constant dense<0.000000e+00> : vector<8x64xf32>
    %3 = tpu.matmul %1, %2, %cst {dimension_numbers = #tpu.dot_dimension_numbers<[1], [0], [0], [1], [0, 0, 1, 1], [], []>} : vector<8x32xbf16>, vector<32x64xbf16>, vector<8x64xf32> -> vector<8x64xf32>
    %c0_3 = arith.constant 0 : index
    %c0_4 = arith.constant 0 : index
    %4 = vector.load %arg4[%c0_3, %c0_4] : memref<1x64xf32, #tpu.memory_space<vmem>>, vector<1x64xf32>
    %5 = vector.broadcast %4 : vector<1x64xf32> to vector<8x64xf32>
    %6 = arith.addf %3, %5 : vector<8x64xf32>
    %c0_5 = arith.constant 0 : index
    %c0_6 = arith.constant 0 : index
    %c0_7 = arith.constant 0 : index
    %7 = vector.load %arg2[%c0_5, %c0_6, %c0_7] : memref<1x4x64xf32, #tpu.memory_space<vmem>>, vector<1x4x64xf32>
    %8 = vector.shape_cast %7 : vector<1x4x64xf32> to vector<4x64xf32>
    %9 = arith.truncf %8 : vector<4x64xf32> to vector<4x64xbf16>
    %c0_8 = arith.constant 0 : index
    %c0_9 = arith.constant 0 : index
    %10 = vector.load %arg5[%c0_8, %c0_9] : memref<64x64xbf16, #tpu.memory_space<vmem>>, vector<64x64xbf16>
    %cst_10 = arith.constant dense<0.000000e+00> : vector<4x64xf32>
    %11 = tpu.matmul %9, %10, %cst_10 {dimension_numbers = #tpu.dot_dimension_numbers<[1], [0], [0], [1], [0, 0, 1, 1], [], []>} : vector<4x64xbf16>, vector<64x64xbf16>, vector<4x64xf32> -> vector<4x64xf32>
    %c0_11 = arith.constant 0 : index
    %c0_12 = arith.constant 0 : index
    %12 = vector.load %arg6[%c0_11, %c0_12] : memref<1x64xf32, #tpu.memory_space<vmem>>, vector<1x64xf32>
    %13 = vector.broadcast %12 : vector<1x64xf32> to vector<4x64xf32>
    %14 = arith.addf %11, %13 : vector<4x64xf32>
    %c0_13 = arith.constant 0 : index
    %c0_14 = arith.constant 0 : index
    %c0_15 = arith.constant 0 : index
    %15 = vector.load %arg7[%c0_13, %c0_14, %c0_15] : memref<1x12x64xf32, #tpu.memory_space<vmem>>, vector<1x8x64xf32>
    %16 = vector.shape_cast %15 : vector<1x8x64xf32> to vector<8x64xf32>
    %17 = vector.shape_cast %6 : vector<8x64xf32> to vector<1x8x64xf32>
    tpu.vector_store %arg7[%c0_13, %c0_14, %c0_15], %17 {strides = array<i32>} : memref<1x12x64xf32, #tpu.memory_space<vmem>>, vector<1x8x64xf32>,
    %c0_16 = arith.constant 0 : index
    %c8 = arith.constant 8 : index
    %c0_17 = arith.constant 0 : index
    %18 = vector.load %arg7[%c0_16, %c8, %c0_17] : memref<1x12x64xf32, #tpu.memory_space<vmem>>, vector<1x4x64xf32>
    %19 = vector.shape_cast %18 : vector<1x4x64xf32> to vector<4x64xf32>
    %20 = vector.shape_cast %14 : vector<4x64xf32> to vector<1x4x64xf32>
    tpu.vector_store %arg7[%c0_16, %c8, %c0_17], %20 {strides = array<i32>} : memref<1x12x64xf32, #tpu.memory_space<vmem>>, vector<1x4x64xf32>,
    return
  }
  func.func @transform_0(%arg0: i32) -> (i32, i32) {
    %c0_i32 = arith.constant 0 : i32
    %c0_i32_0 = arith.constant 0 : i32
    %c0_i32_1 = arith.constant 0 : i32
    return %c0_i32, %c0_i32_0 : i32, i32
  }
  func.func @transform_1(%arg0: i32) -> (i32, i32, i32) {
    %c0_i32 = arith.constant 0 : i32
    %c0_i32_0 = arith.constant 0 : i32
    %c0_i32_1 = arith.constant 0 : i32
    return %arg0, %c0_i32, %c0_i32_0 : i32, i32, i32
  }
  func.func @transform_2(%arg0: i32) -> (i32, i32) {
    %c0_i32 = arith.constant 0 : i32
    %c0_i32_0 = arith.constant 0 : i32
    %c0_i32_1 = arith.constant 0 : i32
    return %c0_i32, %c0_i32_0 : i32, i32
  }
  func.func @transform_3(%arg0: i32) -> (i32, i32) {
    %c0_i32 = arith.constant 0 : i32
    %c0_i32_0 = arith.constant 0 : i32
    %c0_i32_1 = arith.constant 0 : i32
    return %c0_i32, %c0_i32_0 : i32, i32
  }
  func.func @transform_4(%arg0: i32) -> (i32, i32) {
    %c0_i32 = arith.constant 0 : i32
    %c0_i32_0 = arith.constant 0 : i32
    %c0_i32_1 = arith.constant 0 : i32
    return %c0_i32, %c0_i32_0 : i32, i32
  }
  func.func @transform_5(%arg0: i32) -> (i32, i32) {
    %c0_i32 = arith.constant 0 : i32
    %c0_i32_0 = arith.constant 0 : i32
    %c0_i32_1 = arith.constant 0 : i32
    return %c0_i32, %c0_i32_0 : i32, i32
  }
  func.func @transform_6(%arg0: i32) -> (i32, i32, i32) {
    %c0_i32 = arith.constant 0 : i32
    %c0_i32_0 = arith.constant 0 : i32
    %c0_i32_1 = arith.constant 0 : i32
    return %arg0, %c0_i32, %c0_i32_0 : i32, i32, i32
  }
}

module attributes {stable_mosaic.version = 11 : i64} {
  func.func @_attn_block_kernel(%arg0: i32, %arg1: memref<1x12x64xf32, #tpu.memory_space<vmem>>, %arg2: memref<1x6x64xf32, #tpu.memory_space<vmem>>, %arg3: memref<1x64xf32, #tpu.memory_space<vmem>>, %arg4: memref<1x64xf32, #tpu.memory_space<vmem>>, %arg5: memref<64x192xbf16, #tpu.memory_space<vmem>>, %arg6: memref<1x192xf32, #tpu.memory_space<vmem>>, %arg7: memref<1x16xf32, #tpu.memory_space<vmem>>, %arg8: memref<1x16xf32, #tpu.memory_space<vmem>>, %arg9: memref<1x16xf32, #tpu.memory_space<vmem>>, %arg10: memref<1x16xf32, #tpu.memory_space<vmem>>, %arg11: memref<64x64xbf16, #tpu.memory_space<vmem>>, %arg12: memref<1x64xf32, #tpu.memory_space<vmem>>, %arg13: memref<1x12x64xf32, #tpu.memory_space<vmem>>) attributes {dimension_semantics = [#tpu.dimension_semantics<parallel>], iteration_bounds = array<i64: 2>, scalar_prefetch = 0 : i64, scratch_operands = 0 : i64, tpu.core_type = #tpu.core_type<tc>, window_params = [{transform_indices = @transform_0, window_bounds = array<i64: 1, 12, 64>}, {transform_indices = @transform_1, window_bounds = array<i64: 1, 6, 64>}, {pipeline_mode = #tpu.pipeline_mode<synchronous>, transform_indices = @transform_2, window_bounds = array<i64: 1, 64>}, {pipeline_mode = #tpu.pipeline_mode<synchronous>, transform_indices = @transform_3, window_bounds = array<i64: 1, 64>}, {pipeline_mode = #tpu.pipeline_mode<synchronous>, transform_indices = @transform_4, window_bounds = array<i64: 64, 192>}, {pipeline_mode = #tpu.pipeline_mode<synchronous>, transform_indices = @transform_5, window_bounds = array<i64: 1, 192>}, {pipeline_mode = #tpu.pipeline_mode<synchronous>, transform_indices = @transform_6, window_bounds = array<i64: 1, 16>}, {pipeline_mode = #tpu.pipeline_mode<synchronous>, transform_indices = @transform_7, window_bounds = array<i64: 1, 16>}, {pipeline_mode = #tpu.pipeline_mode<synchronous>, transform_indices = @transform_8, window_bounds = array<i64: 1, 16>}, {pipeline_mode = #tpu.pipeline_mode<synchronous>, transform_indices = @transform_9, window_bounds = array<i64: 1, 16>}, {pipeline_mode = #tpu.pipeline_mode<synchronous>, transform_indices = @transform_10, window_bounds = array<i64: 64, 64>}, {pipeline_mode = #tpu.pipeline_mode<synchronous>, transform_indices = @transform_11, window_bounds = array<i64: 1, 64>}, {transform_indices = @transform_12, window_bounds = array<i64: 1, 12, 64>}]} {
    %c0 = arith.constant 0 : index
    %c0_0 = arith.constant 0 : index
    %c0_1 = arith.constant 0 : index
    %0 = vector.load %arg1[%c0, %c0_0, %c0_1] : memref<1x12x64xf32, #tpu.memory_space<vmem>>, vector<1x12x64xf32>
    %1 = vector.shape_cast %0 : vector<1x12x64xf32> to vector<12x64xf32>
    %2 = tpu.iota {dimensions = array<i32: 0>} : vector<12x1xi32>
    %c8_i32 = arith.constant 8 : i32
    %3 = vector.broadcast %c8_i32 : i32 to vector<12x1xi32>
    %4 = arith.cmpi slt, %2, %3 : vector<12x1xi32>
    %c0_2 = arith.constant 0 : index
    %c3 = arith.constant 3 : index
    %c0_3 = arith.constant 0 : index
    %5 = vector.load %arg2[%c0_2, %c3, %c0_3] : memref<1x6x64xf32, #tpu.memory_space<vmem>>, vector<1x1x64xf32>
    %6 = vector.shape_cast %5 : vector<1x1x64xf32> to vector<1x64xf32>
    %c0_4 = arith.constant 0 : index
    %c0_5 = arith.constant 0 : index
    %c0_6 = arith.constant 0 : index
    %7 = vector.load %arg2[%c0_4, %c0_5, %c0_6] : memref<1x6x64xf32, #tpu.memory_space<vmem>>, vector<1x1x64xf32>
    %8 = vector.shape_cast %7 : vector<1x1x64xf32> to vector<1x64xf32>
    %9 = vector.shape_cast %4 : vector<12x1xi1> to vector<12x1xi1>
    %10 = vector.broadcast %9 : vector<12x1xi1> to vector<12x64xi1>
    %11 = vector.shape_cast %6 : vector<1x64xf32> to vector<1x64xf32>
    %12 = vector.broadcast %11 : vector<1x64xf32> to vector<12x64xf32>
    %13 = vector.shape_cast %8 : vector<1x64xf32> to vector<1x64xf32>
    %14 = vector.broadcast %13 : vector<1x64xf32> to vector<12x64xf32>
    %15 = arith.select %10, %12, %14 : vector<12x64xi1>, vector<12x64xf32>
    %c0_7 = arith.constant 0 : index
    %c4 = arith.constant 4 : index
    %c0_8 = arith.constant 0 : index
    %16 = vector.load %arg2[%c0_7, %c4, %c0_8] : memref<1x6x64xf32, #tpu.memory_space<vmem>>, vector<1x1x64xf32>
    %17 = vector.shape_cast %16 : vector<1x1x64xf32> to vector<1x64xf32>
    %c0_9 = arith.constant 0 : index
    %c1 = arith.constant 1 : index
    %c0_10 = arith.constant 0 : index
    %18 = vector.load %arg2[%c0_9, %c1, %c0_10] : memref<1x6x64xf32, #tpu.memory_space<vmem>>, vector<1x1x64xf32>
    %19 = vector.shape_cast %18 : vector<1x1x64xf32> to vector<1x64xf32>
    %20 = vector.shape_cast %4 : vector<12x1xi1> to vector<12x1xi1>
    %21 = vector.broadcast %20 : vector<12x1xi1> to vector<12x64xi1>
    %22 = vector.shape_cast %17 : vector<1x64xf32> to vector<1x64xf32>
    %23 = vector.broadcast %22 : vector<1x64xf32> to vector<12x64xf32>
    %24 = vector.shape_cast %19 : vector<1x64xf32> to vector<1x64xf32>
    %25 = vector.broadcast %24 : vector<1x64xf32> to vector<12x64xf32>
    %26 = arith.select %21, %23, %25 : vector<12x64xi1>, vector<12x64xf32>
    %c0_11 = arith.constant 0 : index
    %c5 = arith.constant 5 : index
    %c0_12 = arith.constant 0 : index
    %27 = vector.load %arg2[%c0_11, %c5, %c0_12] : memref<1x6x64xf32, #tpu.memory_space<vmem>>, vector<1x1x64xf32>
    %28 = vector.shape_cast %27 : vector<1x1x64xf32> to vector<1x64xf32>
    %c0_13 = arith.constant 0 : index
    %c2 = arith.constant 2 : index
    %c0_14 = arith.constant 0 : index
    %29 = vector.load %arg2[%c0_13, %c2, %c0_14] : memref<1x6x64xf32, #tpu.memory_space<vmem>>, vector<1x1x64xf32>
    %30 = vector.shape_cast %29 : vector<1x1x64xf32> to vector<1x64xf32>
    %31 = vector.shape_cast %4 : vector<12x1xi1> to vector<12x1xi1>
    %32 = vector.broadcast %31 : vector<12x1xi1> to vector<12x64xi1>
    %33 = vector.shape_cast %28 : vector<1x64xf32> to vector<1x64xf32>
    %34 = vector.broadcast %33 : vector<1x64xf32> to vector<12x64xf32>
    %35 = vector.shape_cast %30 : vector<1x64xf32> to vector<1x64xf32>
    %36 = vector.broadcast %35 : vector<1x64xf32> to vector<12x64xf32>
    %37 = arith.select %32, %34, %36 : vector<12x64xi1>, vector<12x64xf32>
    %c0_15 = arith.constant 0 : index
    %c0_16 = arith.constant 0 : index
    %38 = vector.load %arg3[%c0_15, %c0_16] : memref<1x64xf32, #tpu.memory_space<vmem>>, vector<1x64xf32>
    %c0_17 = arith.constant 0 : index
    %c0_18 = arith.constant 0 : index
    %39 = vector.load %arg4[%c0_17, %c0_18] : memref<1x64xf32, #tpu.memory_space<vmem>>, vector<1x64xf32>
    %cst = arith.constant dense<0.000000e+00> : vector<12xf32>
    %40 = vector.multi_reduction <add>, %1, %cst [1] : vector<12x64xf32> to vector<12xf32>
    %41 = vector.shape_cast %40 : vector<12xf32> to vector<12x1xf32>
    %cst_19 = arith.constant 6.400000e+01 : f32
    %42 = vector.broadcast %cst_19 : f32 to vector<12x1xf32>
    %43 = arith.divf %41, %42 : vector<12x1xf32>
    %44 = vector.broadcast %43 : vector<12x1xf32> to vector<12x64xf32>
    %45 = arith.subf %1, %44 : vector<12x64xf32>
    %46 = arith.mulf %45, %45 : vector<12x64xf32>
    %cst_20 = arith.constant dense<0.000000e+00> : vector<12xf32>
    %47 = vector.multi_reduction <add>, %46, %cst_20 [1] : vector<12x64xf32> to vector<12xf32>
    %48 = vector.shape_cast %47 : vector<12xf32> to vector<12x1xf32>
    %cst_21 = arith.constant 6.400000e+01 : f32
    %49 = vector.broadcast %cst_21 : f32 to vector<12x1xf32>
    %50 = arith.divf %48, %49 : vector<12x1xf32>
    %51 = vector.broadcast %43 : vector<12x1xf32> to vector<12x64xf32>
    %52 = arith.subf %1, %51 : vector<12x64xf32>
    %cst_22 = arith.constant 9.99999974E-6 : f32
    %53 = vector.broadcast %cst_22 : f32 to vector<12x1xf32>
    %54 = arith.addf %50, %53 : vector<12x1xf32>
    %55 = math.rsqrt %54 : vector<12x1xf32>
    %56 = vector.broadcast %55 : vector<12x1xf32> to vector<12x64xf32>
    %57 = arith.mulf %52, %56 : vector<12x64xf32>
    %58 = vector.broadcast %38 : vector<1x64xf32> to vector<12x64xf32>
    %59 = arith.mulf %57, %58 : vector<12x64xf32>
    %60 = vector.broadcast %39 : vector<1x64xf32> to vector<12x64xf32>
    %61 = arith.addf %59, %60 : vector<12x64xf32>
    %cst_23 = arith.constant 1.000000e+00 : f32
    %62 = vector.broadcast %cst_23 : f32 to vector<12x64xf32>
    %63 = arith.addf %62, %26 : vector<12x64xf32>
    %64 = arith.mulf %61, %63 : vector<12x64xf32>
    %65 = arith.addf %64, %15 : vector<12x64xf32>
    %66 = arith.truncf %65 : vector<12x64xf32> to vector<12x64xbf16>
    %c0_24 = arith.constant 0 : index
    %c0_25 = arith.constant 0 : index
    %67 = vector.load %arg5[%c0_24, %c0_25] : memref<64x192xbf16, #tpu.memory_space<vmem>>, vector<64x192xbf16>
    %cst_26 = arith.constant dense<0.000000e+00> : vector<12x192xf32>
    %68 = tpu.matmul %66, %67, %cst_26 {dimension_numbers = #tpu.dot_dimension_numbers<[1], [0], [0], [1], [0, 0, 1, 1], [], []>} : vector<12x64xbf16>, vector<64x192xbf16>, vector<12x192xf32> -> vector<12x192xf32>
    %c0_27 = arith.constant 0 : index
    %c0_28 = arith.constant 0 : index
    %69 = vector.load %arg6[%c0_27, %c0_28] : memref<1x192xf32, #tpu.memory_space<vmem>>, vector<1x192xf32>
    %70 = vector.broadcast %69 : vector<1x192xf32> to vector<12x192xf32>
    %71 = arith.addf %68, %70 : vector<12x192xf32>
    %cst_29 = arith.constant 0.000000e+00 : f32
    %72 = vector.broadcast %cst_29 : f32 to vector<12x64xf32>
    %73 = vector.extract_strided_slice %71 {offsets = [0, 0], sizes = [12, 16], strides = [1, 1]} : vector<12x192xf32> to vector<12x16xf32>
    %74 = vector.extract_strided_slice %71 {offsets = [0, 64], sizes = [12, 16], strides = [1, 1]} : vector<12x192xf32> to vector<12x16xf32>
    %75 = vector.extract_strided_slice %71 {offsets = [0, 128], sizes = [12, 16], strides = [1, 1]} : vector<12x192xf32> to vector<12x16xf32>
    %c0_30 = arith.constant 0 : index
    %c0_31 = arith.constant 0 : index
    %76 = vector.load %arg7[%c0_30, %c0_31] : memref<1x16xf32, #tpu.memory_space<vmem>>, vector<1x16xf32>
    %c0_32 = arith.constant 0 : index
    %c0_33 = arith.constant 0 : index
    %77 = vector.load %arg8[%c0_32, %c0_33] : memref<1x16xf32, #tpu.memory_space<vmem>>, vector<1x16xf32>
    %cst_34 = arith.constant dense<0.000000e+00> : vector<12xf32>
    %78 = vector.multi_reduction <add>, %73, %cst_34 [1] : vector<12x16xf32> to vector<12xf32>
    %79 = vector.shape_cast %78 : vector<12xf32> to vector<12x1xf32>
    %cst_35 = arith.constant 1.600000e+01 : f32
    %80 = vector.broadcast %cst_35 : f32 to vector<12x1xf32>
    %81 = arith.divf %79, %80 : vector<12x1xf32>
    %82 = vector.broadcast %81 : vector<12x1xf32> to vector<12x16xf32>
    %83 = arith.subf %73, %82 : vector<12x16xf32>
    %84 = arith.mulf %83, %83 : vector<12x16xf32>
    %cst_36 = arith.constant dense<0.000000e+00> : vector<12xf32>
    %85 = vector.multi_reduction <add>, %84, %cst_36 [1] : vector<12x16xf32> to vector<12xf32>
    %86 = vector.shape_cast %85 : vector<12xf32> to vector<12x1xf32>
    %cst_37 = arith.constant 1.600000e+01 : f32
    %87 = vector.broadcast %cst_37 : f32 to vector<12x1xf32>
    %88 = arith.divf %86, %87 : vector<12x1xf32>
    %89 = vector.broadcast %81 : vector<12x1xf32> to vector<12x16xf32>
    %90 = arith.subf %73, %89 : vector<12x16xf32>
    %cst_38 = arith.constant 9.99999974E-6 : f32
    %91 = vector.broadcast %cst_38 : f32 to vector<12x1xf32>
    %92 = arith.addf %88, %91 : vector<12x1xf32>
    %93 = math.rsqrt %92 : vector<12x1xf32>
    %94 = vector.broadcast %93 : vector<12x1xf32> to vector<12x16xf32>
    %95 = arith.mulf %90, %94 : vector<12x16xf32>
    %96 = vector.broadcast %76 : vector<1x16xf32> to vector<12x16xf32>
    %97 = arith.mulf %95, %96 : vector<12x16xf32>
    %98 = vector.broadcast %77 : vector<1x16xf32> to vector<12x16xf32>
    %99 = arith.addf %97, %98 : vector<12x16xf32>
    %c0_39 = arith.constant 0 : index
    %c0_40 = arith.constant 0 : index
    %100 = vector.load %arg9[%c0_39, %c0_40] : memref<1x16xf32, #tpu.memory_space<vmem>>, vector<1x16xf32>
    %c0_41 = arith.constant 0 : index
    %c0_42 = arith.constant 0 : index
    %101 = vector.load %arg10[%c0_41, %c0_42] : memref<1x16xf32, #tpu.memory_space<vmem>>, vector<1x16xf32>
    %cst_43 = arith.constant dense<0.000000e+00> : vector<12xf32>
    %102 = vector.multi_reduction <add>, %74, %cst_43 [1] : vector<12x16xf32> to vector<12xf32>
    %103 = vector.shape_cast %102 : vector<12xf32> to vector<12x1xf32>
    %cst_44 = arith.constant 1.600000e+01 : f32
    %104 = vector.broadcast %cst_44 : f32 to vector<12x1xf32>
    %105 = arith.divf %103, %104 : vector<12x1xf32>
    %106 = vector.broadcast %105 : vector<12x1xf32> to vector<12x16xf32>
    %107 = arith.subf %74, %106 : vector<12x16xf32>
    %108 = arith.mulf %107, %107 : vector<12x16xf32>
    %cst_45 = arith.constant dense<0.000000e+00> : vector<12xf32>
    %109 = vector.multi_reduction <add>, %108, %cst_45 [1] : vector<12x16xf32> to vector<12xf32>
    %110 = vector.shape_cast %109 : vector<12xf32> to vector<12x1xf32>
    %cst_46 = arith.constant 1.600000e+01 : f32
    %111 = vector.broadcast %cst_46 : f32 to vector<12x1xf32>
    %112 = arith.divf %110, %111 : vector<12x1xf32>
    %113 = vector.broadcast %105 : vector<12x1xf32> to vector<12x16xf32>
    %114 = arith.subf %74, %113 : vector<12x16xf32>
    %cst_47 = arith.constant 9.99999974E-6 : f32
    %115 = vector.broadcast %cst_47 : f32 to vector<12x1xf32>
    %116 = arith.addf %112, %115 : vector<12x1xf32>
    %117 = math.rsqrt %116 : vector<12x1xf32>
    %118 = vector.broadcast %117 : vector<12x1xf32> to vector<12x16xf32>
    %119 = arith.mulf %114, %118 : vector<12x16xf32>
    %120 = vector.broadcast %100 : vector<1x16xf32> to vector<12x16xf32>
    %121 = arith.mulf %119, %120 : vector<12x16xf32>
    %122 = vector.broadcast %101 : vector<1x16xf32> to vector<12x16xf32>
    %123 = arith.addf %121, %122 : vector<12x16xf32>
    %124 = arith.truncf %99 : vector<12x16xf32> to vector<12x16xbf16>
    %125 = arith.truncf %123 : vector<12x16xf32> to vector<12x16xbf16>
    %cst_48 = arith.constant dense<0.000000e+00> : vector<12x12xf32>
    %126 = tpu.matmul %124, %125, %cst_48 {dimension_numbers = #tpu.dot_dimension_numbers<[1], [1], [0], [0], [0, 0, 1, 0], [], []>} : vector<12x16xbf16>, vector<12x16xbf16>, vector<12x12xf32> -> vector<12x12xf32>
    %cst_49 = arith.constant 2.500000e-01 : f32
    %127 = vector.broadcast %cst_49 : f32 to vector<12x12xf32>
    %128 = arith.mulf %126, %127 : vector<12x12xf32>
    %cst_50 = arith.constant dense<0xFF800000> : vector<12xf32>
    %129 = vector.multi_reduction <maximumf>, %128, %cst_50 [1] : vector<12x12xf32> to vector<12xf32>
    %130 = vector.shape_cast %129 : vector<12xf32> to vector<12x1xf32>
    %131 = vector.broadcast %130 : vector<12x1xf32> to vector<12x12xf32>
    %132 = arith.subf %128, %131 : vector<12x12xf32>
    %133 = math.exp %132 : vector<12x12xf32>
    %cst_51 = arith.constant dense<0.000000e+00> : vector<12xf32>
    %134 = vector.multi_reduction <add>, %133, %cst_51 [1] : vector<12x12xf32> to vector<12xf32>
    %135 = vector.shape_cast %134 : vector<12xf32> to vector<12x1xf32>
    %136 = tpu.reciprocal %135 {approx = true} : vector<12x1xf32> -> vector<12x1xf32>
    %137 = vector.broadcast %136 : vector<12x1xf32> to vector<12x12xf32>
    %138 = arith.mulf %133, %137 : vector<12x12xf32>
    %139 = arith.truncf %138 : vector<12x12xf32> to vector<12x12xbf16>
    %140 = arith.truncf %75 : vector<12x16xf32> to vector<12x16xbf16>
    %cst_52 = arith.constant dense<0.000000e+00> : vector<12x16xf32>
    %141 = tpu.matmul %139, %140, %cst_52 {dimension_numbers = #tpu.dot_dimension_numbers<[1], [0], [0], [1], [0, 0, 1, 1], [], []>} : vector<12x12xbf16>, vector<12x16xbf16>, vector<12x16xf32> -> vector<12x16xf32>
    %142 = arith.truncf %141 : vector<12x16xf32> to vector<12x16xbf16>
    %c0_53 = arith.constant 0 : index
    %c0_54 = arith.constant 0 : index
    %143 = vector.load %arg11[%c0_53, %c0_54] : memref<64x64xbf16, #tpu.memory_space<vmem>>, vector<16x64xbf16>
    %cst_55 = arith.constant dense<0.000000e+00> : vector<12x64xf32>
    %144 = tpu.matmul %142, %143, %cst_55 {dimension_numbers = #tpu.dot_dimension_numbers<[1], [0], [0], [1], [0, 0, 1, 1], [], []>} : vector<12x16xbf16>, vector<16x64xbf16>, vector<12x64xf32> -> vector<12x64xf32>
    %145 = arith.addf %72, %144 : vector<12x64xf32>
    %146 = vector.extract_strided_slice %71 {offsets = [0, 16], sizes = [12, 16], strides = [1, 1]} : vector<12x192xf32> to vector<12x16xf32>
    %147 = vector.extract_strided_slice %71 {offsets = [0, 80], sizes = [12, 16], strides = [1, 1]} : vector<12x192xf32> to vector<12x16xf32>
    %148 = vector.extract_strided_slice %71 {offsets = [0, 144], sizes = [12, 16], strides = [1, 1]} : vector<12x192xf32> to vector<12x16xf32>
    %c0_56 = arith.constant 0 : index
    %c0_57 = arith.constant 0 : index
    %149 = vector.load %arg7[%c0_56, %c0_57] : memref<1x16xf32, #tpu.memory_space<vmem>>, vector<1x16xf32>
    %c0_58 = arith.constant 0 : index
    %c0_59 = arith.constant 0 : index
    %150 = vector.load %arg8[%c0_58, %c0_59] : memref<1x16xf32, #tpu.memory_space<vmem>>, vector<1x16xf32>
    %cst_60 = arith.constant dense<0.000000e+00> : vector<12xf32>
    %151 = vector.multi_reduction <add>, %146, %cst_60 [1] : vector<12x16xf32> to vector<12xf32>
    %152 = vector.shape_cast %151 : vector<12xf32> to vector<12x1xf32>
    %cst_61 = arith.constant 1.600000e+01 : f32
    %153 = vector.broadcast %cst_61 : f32 to vector<12x1xf32>
    %154 = arith.divf %152, %153 : vector<12x1xf32>
    %155 = vector.broadcast %154 : vector<12x1xf32> to vector<12x16xf32>
    %156 = arith.subf %146, %155 : vector<12x16xf32>
    %157 = arith.mulf %156, %156 : vector<12x16xf32>
    %cst_62 = arith.constant dense<0.000000e+00> : vector<12xf32>
    %158 = vector.multi_reduction <add>, %157, %cst_62 [1] : vector<12x16xf32> to vector<12xf32>
    %159 = vector.shape_cast %158 : vector<12xf32> to vector<12x1xf32>
    %cst_63 = arith.constant 1.600000e+01 : f32
    %160 = vector.broadcast %cst_63 : f32 to vector<12x1xf32>
    %161 = arith.divf %159, %160 : vector<12x1xf32>
    %162 = vector.broadcast %154 : vector<12x1xf32> to vector<12x16xf32>
    %163 = arith.subf %146, %162 : vector<12x16xf32>
    %cst_64 = arith.constant 9.99999974E-6 : f32
    %164 = vector.broadcast %cst_64 : f32 to vector<12x1xf32>
    %165 = arith.addf %161, %164 : vector<12x1xf32>
    %166 = math.rsqrt %165 : vector<12x1xf32>
    %167 = vector.broadcast %166 : vector<12x1xf32> to vector<12x16xf32>
    %168 = arith.mulf %163, %167 : vector<12x16xf32>
    %169 = vector.broadcast %149 : vector<1x16xf32> to vector<12x16xf32>
    %170 = arith.mulf %168, %169 : vector<12x16xf32>
    %171 = vector.broadcast %150 : vector<1x16xf32> to vector<12x16xf32>
    %172 = arith.addf %170, %171 : vector<12x16xf32>
    %c0_65 = arith.constant 0 : index
    %c0_66 = arith.constant 0 : index
    %173 = vector.load %arg9[%c0_65, %c0_66] : memref<1x16xf32, #tpu.memory_space<vmem>>, vector<1x16xf32>
    %c0_67 = arith.constant 0 : index
    %c0_68 = arith.constant 0 : index
    %174 = vector.load %arg10[%c0_67, %c0_68] : memref<1x16xf32, #tpu.memory_space<vmem>>, vector<1x16xf32>
    %cst_69 = arith.constant dense<0.000000e+00> : vector<12xf32>
    %175 = vector.multi_reduction <add>, %147, %cst_69 [1] : vector<12x16xf32> to vector<12xf32>
    %176 = vector.shape_cast %175 : vector<12xf32> to vector<12x1xf32>
    %cst_70 = arith.constant 1.600000e+01 : f32
    %177 = vector.broadcast %cst_70 : f32 to vector<12x1xf32>
    %178 = arith.divf %176, %177 : vector<12x1xf32>
    %179 = vector.broadcast %178 : vector<12x1xf32> to vector<12x16xf32>
    %180 = arith.subf %147, %179 : vector<12x16xf32>
    %181 = arith.mulf %180, %180 : vector<12x16xf32>
    %cst_71 = arith.constant dense<0.000000e+00> : vector<12xf32>
    %182 = vector.multi_reduction <add>, %181, %cst_71 [1] : vector<12x16xf32> to vector<12xf32>
    %183 = vector.shape_cast %182 : vector<12xf32> to vector<12x1xf32>
    %cst_72 = arith.constant 1.600000e+01 : f32
    %184 = vector.broadcast %cst_72 : f32 to vector<12x1xf32>
    %185 = arith.divf %183, %184 : vector<12x1xf32>
    %186 = vector.broadcast %178 : vector<12x1xf32> to vector<12x16xf32>
    %187 = arith.subf %147, %186 : vector<12x16xf32>
    %cst_73 = arith.constant 9.99999974E-6 : f32
    %188 = vector.broadcast %cst_73 : f32 to vector<12x1xf32>
    %189 = arith.addf %185, %188 : vector<12x1xf32>
    %190 = math.rsqrt %189 : vector<12x1xf32>
    %191 = vector.broadcast %190 : vector<12x1xf32> to vector<12x16xf32>
    %192 = arith.mulf %187, %191 : vector<12x16xf32>
    %193 = vector.broadcast %173 : vector<1x16xf32> to vector<12x16xf32>
    %194 = arith.mulf %192, %193 : vector<12x16xf32>
    %195 = vector.broadcast %174 : vector<1x16xf32> to vector<12x16xf32>
    %196 = arith.addf %194, %195 : vector<12x16xf32>
    %197 = arith.truncf %172 : vector<12x16xf32> to vector<12x16xbf16>
    %198 = arith.truncf %196 : vector<12x16xf32> to vector<12x16xbf16>
    %cst_74 = arith.constant dense<0.000000e+00> : vector<12x12xf32>
    %199 = tpu.matmul %197, %198, %cst_74 {dimension_numbers = #tpu.dot_dimension_numbers<[1], [1], [0], [0], [0, 0, 1, 0], [], []>} : vector<12x16xbf16>, vector<12x16xbf16>, vector<12x12xf32> -> vector<12x12xf32>
    %cst_75 = arith.constant 2.500000e-01 : f32
    %200 = vector.broadcast %cst_75 : f32 to vector<12x12xf32>
    %201 = arith.mulf %199, %200 : vector<12x12xf32>
    %cst_76 = arith.constant dense<0xFF800000> : vector<12xf32>
    %202 = vector.multi_reduction <maximumf>, %201, %cst_76 [1] : vector<12x12xf32> to vector<12xf32>
    %203 = vector.shape_cast %202 : vector<12xf32> to vector<12x1xf32>
    %204 = vector.broadcast %203 : vector<12x1xf32> to vector<12x12xf32>
    %205 = arith.subf %201, %204 : vector<12x12xf32>
    %206 = math.exp %205 : vector<12x12xf32>
    %cst_77 = arith.constant dense<0.000000e+00> : vector<12xf32>
    %207 = vector.multi_reduction <add>, %206, %cst_77 [1] : vector<12x12xf32> to vector<12xf32>
    %208 = vector.shape_cast %207 : vector<12xf32> to vector<12x1xf32>
    %209 = tpu.reciprocal %208 {approx = true} : vector<12x1xf32> -> vector<12x1xf32>
    %210 = vector.broadcast %209 : vector<12x1xf32> to vector<12x12xf32>
    %211 = arith.mulf %206, %210 : vector<12x12xf32>
    %212 = arith.truncf %211 : vector<12x12xf32> to vector<12x12xbf16>
    %213 = arith.truncf %148 : vector<12x16xf32> to vector<12x16xbf16>
    %cst_78 = arith.constant dense<0.000000e+00> : vector<12x16xf32>
    %214 = tpu.matmul %212, %213, %cst_78 {dimension_numbers = #tpu.dot_dimension_numbers<[1], [0], [0], [1], [0, 0, 1, 1], [], []>} : vector<12x12xbf16>, vector<12x16xbf16>, vector<12x16xf32> -> vector<12x16xf32>
    %215 = arith.truncf %214 : vector<12x16xf32> to vector<12x16xbf16>
    %c16 = arith.constant 16 : index
    %c0_79 = arith.constant 0 : index
    %216 = vector.load %arg11[%c16, %c0_79] : memref<64x64xbf16, #tpu.memory_space<vmem>>, vector<16x64xbf16>
    %cst_80 = arith.constant dense<0.000000e+00> : vector<12x64xf32>
    %217 = tpu.matmul %215, %216, %cst_80 {dimension_numbers = #tpu.dot_dimension_numbers<[1], [0], [0], [1], [0, 0, 1, 1], [], []>} : vector<12x16xbf16>, vector<16x64xbf16>, vector<12x64xf32> -> vector<12x64xf32>
    %218 = arith.addf %145, %217 : vector<12x64xf32>
    %219 = vector.extract_strided_slice %71 {offsets = [0, 32], sizes = [12, 16], strides = [1, 1]} : vector<12x192xf32> to vector<12x16xf32>
    %220 = vector.extract_strided_slice %71 {offsets = [0, 96], sizes = [12, 16], strides = [1, 1]} : vector<12x192xf32> to vector<12x16xf32>
    %221 = vector.extract_strided_slice %71 {offsets = [0, 160], sizes = [12, 16], strides = [1, 1]} : vector<12x192xf32> to vector<12x16xf32>
    %c0_81 = arith.constant 0 : index
    %c0_82 = arith.constant 0 : index
    %222 = vector.load %arg7[%c0_81, %c0_82] : memref<1x16xf32, #tpu.memory_space<vmem>>, vector<1x16xf32>
    %c0_83 = arith.constant 0 : index
    %c0_84 = arith.constant 0 : index
    %223 = vector.load %arg8[%c0_83, %c0_84] : memref<1x16xf32, #tpu.memory_space<vmem>>, vector<1x16xf32>
    %cst_85 = arith.constant dense<0.000000e+00> : vector<12xf32>
    %224 = vector.multi_reduction <add>, %219, %cst_85 [1] : vector<12x16xf32> to vector<12xf32>
    %225 = vector.shape_cast %224 : vector<12xf32> to vector<12x1xf32>
    %cst_86 = arith.constant 1.600000e+01 : f32
    %226 = vector.broadcast %cst_86 : f32 to vector<12x1xf32>
    %227 = arith.divf %225, %226 : vector<12x1xf32>
    %228 = vector.broadcast %227 : vector<12x1xf32> to vector<12x16xf32>
    %229 = arith.subf %219, %228 : vector<12x16xf32>
    %230 = arith.mulf %229, %229 : vector<12x16xf32>
    %cst_87 = arith.constant dense<0.000000e+00> : vector<12xf32>
    %231 = vector.multi_reduction <add>, %230, %cst_87 [1] : vector<12x16xf32> to vector<12xf32>
    %232 = vector.shape_cast %231 : vector<12xf32> to vector<12x1xf32>
    %cst_88 = arith.constant 1.600000e+01 : f32
    %233 = vector.broadcast %cst_88 : f32 to vector<12x1xf32>
    %234 = arith.divf %232, %233 : vector<12x1xf32>
    %235 = vector.broadcast %227 : vector<12x1xf32> to vector<12x16xf32>
    %236 = arith.subf %219, %235 : vector<12x16xf32>
    %cst_89 = arith.constant 9.99999974E-6 : f32
    %237 = vector.broadcast %cst_89 : f32 to vector<12x1xf32>
    %238 = arith.addf %234, %237 : vector<12x1xf32>
    %239 = math.rsqrt %238 : vector<12x1xf32>
    %240 = vector.broadcast %239 : vector<12x1xf32> to vector<12x16xf32>
    %241 = arith.mulf %236, %240 : vector<12x16xf32>
    %242 = vector.broadcast %222 : vector<1x16xf32> to vector<12x16xf32>
    %243 = arith.mulf %241, %242 : vector<12x16xf32>
    %244 = vector.broadcast %223 : vector<1x16xf32> to vector<12x16xf32>
    %245 = arith.addf %243, %244 : vector<12x16xf32>
    %c0_90 = arith.constant 0 : index
    %c0_91 = arith.constant 0 : index
    %246 = vector.load %arg9[%c0_90, %c0_91] : memref<1x16xf32, #tpu.memory_space<vmem>>, vector<1x16xf32>
    %c0_92 = arith.constant 0 : index
    %c0_93 = arith.constant 0 : index
    %247 = vector.load %arg10[%c0_92, %c0_93] : memref<1x16xf32, #tpu.memory_space<vmem>>, vector<1x16xf32>
    %cst_94 = arith.constant dense<0.000000e+00> : vector<12xf32>
    %248 = vector.multi_reduction <add>, %220, %cst_94 [1] : vector<12x16xf32> to vector<12xf32>
    %249 = vector.shape_cast %248 : vector<12xf32> to vector<12x1xf32>
    %cst_95 = arith.constant 1.600000e+01 : f32
    %250 = vector.broadcast %cst_95 : f32 to vector<12x1xf32>
    %251 = arith.divf %249, %250 : vector<12x1xf32>
    %252 = vector.broadcast %251 : vector<12x1xf32> to vector<12x16xf32>
    %253 = arith.subf %220, %252 : vector<12x16xf32>
    %254 = arith.mulf %253, %253 : vector<12x16xf32>
    %cst_96 = arith.constant dense<0.000000e+00> : vector<12xf32>
    %255 = vector.multi_reduction <add>, %254, %cst_96 [1] : vector<12x16xf32> to vector<12xf32>
    %256 = vector.shape_cast %255 : vector<12xf32> to vector<12x1xf32>
    %cst_97 = arith.constant 1.600000e+01 : f32
    %257 = vector.broadcast %cst_97 : f32 to vector<12x1xf32>
    %258 = arith.divf %256, %257 : vector<12x1xf32>
    %259 = vector.broadcast %251 : vector<12x1xf32> to vector<12x16xf32>
    %260 = arith.subf %220, %259 : vector<12x16xf32>
    %cst_98 = arith.constant 9.99999974E-6 : f32
    %261 = vector.broadcast %cst_98 : f32 to vector<12x1xf32>
    %262 = arith.addf %258, %261 : vector<12x1xf32>
    %263 = math.rsqrt %262 : vector<12x1xf32>
    %264 = vector.broadcast %263 : vector<12x1xf32> to vector<12x16xf32>
    %265 = arith.mulf %260, %264 : vector<12x16xf32>
    %266 = vector.broadcast %246 : vector<1x16xf32> to vector<12x16xf32>
    %267 = arith.mulf %265, %266 : vector<12x16xf32>
    %268 = vector.broadcast %247 : vector<1x16xf32> to vector<12x16xf32>
    %269 = arith.addf %267, %268 : vector<12x16xf32>
    %270 = arith.truncf %245 : vector<12x16xf32> to vector<12x16xbf16>
    %271 = arith.truncf %269 : vector<12x16xf32> to vector<12x16xbf16>
    %cst_99 = arith.constant dense<0.000000e+00> : vector<12x12xf32>
    %272 = tpu.matmul %270, %271, %cst_99 {dimension_numbers = #tpu.dot_dimension_numbers<[1], [1], [0], [0], [0, 0, 1, 0], [], []>} : vector<12x16xbf16>, vector<12x16xbf16>, vector<12x12xf32> -> vector<12x12xf32>
    %cst_100 = arith.constant 2.500000e-01 : f32
    %273 = vector.broadcast %cst_100 : f32 to vector<12x12xf32>
    %274 = arith.mulf %272, %273 : vector<12x12xf32>
    %cst_101 = arith.constant dense<0xFF800000> : vector<12xf32>
    %275 = vector.multi_reduction <maximumf>, %274, %cst_101 [1] : vector<12x12xf32> to vector<12xf32>
    %276 = vector.shape_cast %275 : vector<12xf32> to vector<12x1xf32>
    %277 = vector.broadcast %276 : vector<12x1xf32> to vector<12x12xf32>
    %278 = arith.subf %274, %277 : vector<12x12xf32>
    %279 = math.exp %278 : vector<12x12xf32>
    %cst_102 = arith.constant dense<0.000000e+00> : vector<12xf32>
    %280 = vector.multi_reduction <add>, %279, %cst_102 [1] : vector<12x12xf32> to vector<12xf32>
    %281 = vector.shape_cast %280 : vector<12xf32> to vector<12x1xf32>
    %282 = tpu.reciprocal %281 {approx = true} : vector<12x1xf32> -> vector<12x1xf32>
    %283 = vector.broadcast %282 : vector<12x1xf32> to vector<12x12xf32>
    %284 = arith.mulf %279, %283 : vector<12x12xf32>
    %285 = arith.truncf %284 : vector<12x12xf32> to vector<12x12xbf16>
    %286 = arith.truncf %221 : vector<12x16xf32> to vector<12x16xbf16>
    %cst_103 = arith.constant dense<0.000000e+00> : vector<12x16xf32>
    %287 = tpu.matmul %285, %286, %cst_103 {dimension_numbers = #tpu.dot_dimension_numbers<[1], [0], [0], [1], [0, 0, 1, 1], [], []>} : vector<12x12xbf16>, vector<12x16xbf16>, vector<12x16xf32> -> vector<12x16xf32>
    %288 = arith.truncf %287 : vector<12x16xf32> to vector<12x16xbf16>
    %c32 = arith.constant 32 : index
    %c0_104 = arith.constant 0 : index
    %289 = vector.load %arg11[%c32, %c0_104] : memref<64x64xbf16, #tpu.memory_space<vmem>>, vector<16x64xbf16>
    %cst_105 = arith.constant dense<0.000000e+00> : vector<12x64xf32>
    %290 = tpu.matmul %288, %289, %cst_105 {dimension_numbers = #tpu.dot_dimension_numbers<[1], [0], [0], [1], [0, 0, 1, 1], [], []>} : vector<12x16xbf16>, vector<16x64xbf16>, vector<12x64xf32> -> vector<12x64xf32>
    %291 = arith.addf %218, %290 : vector<12x64xf32>
    %292 = vector.extract_strided_slice %71 {offsets = [0, 48], sizes = [12, 16], strides = [1, 1]} : vector<12x192xf32> to vector<12x16xf32>
    %293 = vector.extract_strided_slice %71 {offsets = [0, 112], sizes = [12, 16], strides = [1, 1]} : vector<12x192xf32> to vector<12x16xf32>
    %294 = vector.extract_strided_slice %71 {offsets = [0, 176], sizes = [12, 16], strides = [1, 1]} : vector<12x192xf32> to vector<12x16xf32>
    %c0_106 = arith.constant 0 : index
    %c0_107 = arith.constant 0 : index
    %295 = vector.load %arg7[%c0_106, %c0_107] : memref<1x16xf32, #tpu.memory_space<vmem>>, vector<1x16xf32>
    %c0_108 = arith.constant 0 : index
    %c0_109 = arith.constant 0 : index
    %296 = vector.load %arg8[%c0_108, %c0_109] : memref<1x16xf32, #tpu.memory_space<vmem>>, vector<1x16xf32>
    %cst_110 = arith.constant dense<0.000000e+00> : vector<12xf32>
    %297 = vector.multi_reduction <add>, %292, %cst_110 [1] : vector<12x16xf32> to vector<12xf32>
    %298 = vector.shape_cast %297 : vector<12xf32> to vector<12x1xf32>
    %cst_111 = arith.constant 1.600000e+01 : f32
    %299 = vector.broadcast %cst_111 : f32 to vector<12x1xf32>
    %300 = arith.divf %298, %299 : vector<12x1xf32>
    %301 = vector.broadcast %300 : vector<12x1xf32> to vector<12x16xf32>
    %302 = arith.subf %292, %301 : vector<12x16xf32>
    %303 = arith.mulf %302, %302 : vector<12x16xf32>
    %cst_112 = arith.constant dense<0.000000e+00> : vector<12xf32>
    %304 = vector.multi_reduction <add>, %303, %cst_112 [1] : vector<12x16xf32> to vector<12xf32>
    %305 = vector.shape_cast %304 : vector<12xf32> to vector<12x1xf32>
    %cst_113 = arith.constant 1.600000e+01 : f32
    %306 = vector.broadcast %cst_113 : f32 to vector<12x1xf32>
    %307 = arith.divf %305, %306 : vector<12x1xf32>
    %308 = vector.broadcast %300 : vector<12x1xf32> to vector<12x16xf32>
    %309 = arith.subf %292, %308 : vector<12x16xf32>
    %cst_114 = arith.constant 9.99999974E-6 : f32
    %310 = vector.broadcast %cst_114 : f32 to vector<12x1xf32>
    %311 = arith.addf %307, %310 : vector<12x1xf32>
    %312 = math.rsqrt %311 : vector<12x1xf32>
    %313 = vector.broadcast %312 : vector<12x1xf32> to vector<12x16xf32>
    %314 = arith.mulf %309, %313 : vector<12x16xf32>
    %315 = vector.broadcast %295 : vector<1x16xf32> to vector<12x16xf32>
    %316 = arith.mulf %314, %315 : vector<12x16xf32>
    %317 = vector.broadcast %296 : vector<1x16xf32> to vector<12x16xf32>
    %318 = arith.addf %316, %317 : vector<12x16xf32>
    %c0_115 = arith.constant 0 : index
    %c0_116 = arith.constant 0 : index
    %319 = vector.load %arg9[%c0_115, %c0_116] : memref<1x16xf32, #tpu.memory_space<vmem>>, vector<1x16xf32>
    %c0_117 = arith.constant 0 : index
    %c0_118 = arith.constant 0 : index
    %320 = vector.load %arg10[%c0_117, %c0_118] : memref<1x16xf32, #tpu.memory_space<vmem>>, vector<1x16xf32>
    %cst_119 = arith.constant dense<0.000000e+00> : vector<12xf32>
    %321 = vector.multi_reduction <add>, %293, %cst_119 [1] : vector<12x16xf32> to vector<12xf32>
    %322 = vector.shape_cast %321 : vector<12xf32> to vector<12x1xf32>
    %cst_120 = arith.constant 1.600000e+01 : f32
    %323 = vector.broadcast %cst_120 : f32 to vector<12x1xf32>
    %324 = arith.divf %322, %323 : vector<12x1xf32>
    %325 = vector.broadcast %324 : vector<12x1xf32> to vector<12x16xf32>
    %326 = arith.subf %293, %325 : vector<12x16xf32>
    %327 = arith.mulf %326, %326 : vector<12x16xf32>
    %cst_121 = arith.constant dense<0.000000e+00> : vector<12xf32>
    %328 = vector.multi_reduction <add>, %327, %cst_121 [1] : vector<12x16xf32> to vector<12xf32>
    %329 = vector.shape_cast %328 : vector<12xf32> to vector<12x1xf32>
    %cst_122 = arith.constant 1.600000e+01 : f32
    %330 = vector.broadcast %cst_122 : f32 to vector<12x1xf32>
    %331 = arith.divf %329, %330 : vector<12x1xf32>
    %332 = vector.broadcast %324 : vector<12x1xf32> to vector<12x16xf32>
    %333 = arith.subf %293, %332 : vector<12x16xf32>
    %cst_123 = arith.constant 9.99999974E-6 : f32
    %334 = vector.broadcast %cst_123 : f32 to vector<12x1xf32>
    %335 = arith.addf %331, %334 : vector<12x1xf32>
    %336 = math.rsqrt %335 : vector<12x1xf32>
    %337 = vector.broadcast %336 : vector<12x1xf32> to vector<12x16xf32>
    %338 = arith.mulf %333, %337 : vector<12x16xf32>
    %339 = vector.broadcast %319 : vector<1x16xf32> to vector<12x16xf32>
    %340 = arith.mulf %338, %339 : vector<12x16xf32>
    %341 = vector.broadcast %320 : vector<1x16xf32> to vector<12x16xf32>
    %342 = arith.addf %340, %341 : vector<12x16xf32>
    %343 = arith.truncf %318 : vector<12x16xf32> to vector<12x16xbf16>
    %344 = arith.truncf %342 : vector<12x16xf32> to vector<12x16xbf16>
    %cst_124 = arith.constant dense<0.000000e+00> : vector<12x12xf32>
    %345 = tpu.matmul %343, %344, %cst_124 {dimension_numbers = #tpu.dot_dimension_numbers<[1], [1], [0], [0], [0, 0, 1, 0], [], []>} : vector<12x16xbf16>, vector<12x16xbf16>, vector<12x12xf32> -> vector<12x12xf32>
    %cst_125 = arith.constant 2.500000e-01 : f32
    %346 = vector.broadcast %cst_125 : f32 to vector<12x12xf32>
    %347 = arith.mulf %345, %346 : vector<12x12xf32>
    %cst_126 = arith.constant dense<0xFF800000> : vector<12xf32>
    %348 = vector.multi_reduction <maximumf>, %347, %cst_126 [1] : vector<12x12xf32> to vector<12xf32>
    %349 = vector.shape_cast %348 : vector<12xf32> to vector<12x1xf32>
    %350 = vector.broadcast %349 : vector<12x1xf32> to vector<12x12xf32>
    %351 = arith.subf %347, %350 : vector<12x12xf32>
    %352 = math.exp %351 : vector<12x12xf32>
    %cst_127 = arith.constant dense<0.000000e+00> : vector<12xf32>
    %353 = vector.multi_reduction <add>, %352, %cst_127 [1] : vector<12x12xf32> to vector<12xf32>
    %354 = vector.shape_cast %353 : vector<12xf32> to vector<12x1xf32>
    %355 = tpu.reciprocal %354 {approx = true} : vector<12x1xf32> -> vector<12x1xf32>
    %356 = vector.broadcast %355 : vector<12x1xf32> to vector<12x12xf32>
    %357 = arith.mulf %352, %356 : vector<12x12xf32>
    %358 = arith.truncf %357 : vector<12x12xf32> to vector<12x12xbf16>
    %359 = arith.truncf %294 : vector<12x16xf32> to vector<12x16xbf16>
    %cst_128 = arith.constant dense<0.000000e+00> : vector<12x16xf32>
    %360 = tpu.matmul %358, %359, %cst_128 {dimension_numbers = #tpu.dot_dimension_numbers<[1], [0], [0], [1], [0, 0, 1, 1], [], []>} : vector<12x12xbf16>, vector<12x16xbf16>, vector<12x16xf32> -> vector<12x16xf32>
    %361 = arith.truncf %360 : vector<12x16xf32> to vector<12x16xbf16>
    %c48 = arith.constant 48 : index
    %c0_129 = arith.constant 0 : index
    %362 = vector.load %arg11[%c48, %c0_129] : memref<64x64xbf16, #tpu.memory_space<vmem>>, vector<16x64xbf16>
    %cst_130 = arith.constant dense<0.000000e+00> : vector<12x64xf32>
    %363 = tpu.matmul %361, %362, %cst_130 {dimension_numbers = #tpu.dot_dimension_numbers<[1], [0], [0], [1], [0, 0, 1, 1], [], []>} : vector<12x16xbf16>, vector<16x64xbf16>, vector<12x64xf32> -> vector<12x64xf32>
    %364 = arith.addf %291, %363 : vector<12x64xf32>
    %c0_131 = arith.constant 0 : index
    %c0_132 = arith.constant 0 : index
    %365 = vector.load %arg12[%c0_131, %c0_132] : memref<1x64xf32, #tpu.memory_space<vmem>>, vector<1x64xf32>
    %366 = vector.broadcast %365 : vector<1x64xf32> to vector<12x64xf32>
    %367 = arith.addf %364, %366 : vector<12x64xf32>
    %368 = arith.mulf %37, %367 : vector<12x64xf32>
    %369 = arith.addf %1, %368 : vector<12x64xf32>
    %c0_133 = arith.constant 0 : index
    %c0_134 = arith.constant 0 : index
    %c0_135 = arith.constant 0 : index
    %370 = vector.load %arg13[%c0_133, %c0_134, %c0_135] : memref<1x12x64xf32, #tpu.memory_space<vmem>>, vector<1x12x64xf32>
    %371 = vector.shape_cast %370 : vector<1x12x64xf32> to vector<12x64xf32>
    %372 = vector.shape_cast %369 : vector<12x64xf32> to vector<1x12x64xf32>
    tpu.vector_store %arg13[%c0_133, %c0_134, %c0_135], %372 {strides = array<i32>} : memref<1x12x64xf32, #tpu.memory_space<vmem>>, vector<1x12x64xf32>,
    return
  }
  func.func @transform_0(%arg0: i32) -> (i32, i32, i32) {
    %c0_i32 = arith.constant 0 : i32
    %c0_i32_0 = arith.constant 0 : i32
    %c0_i32_1 = arith.constant 0 : i32
    return %arg0, %c0_i32, %c0_i32_0 : i32, i32, i32
  }
  func.func @transform_1(%arg0: i32) -> (i32, i32, i32) {
    %c0_i32 = arith.constant 0 : i32
    %c0_i32_0 = arith.constant 0 : i32
    %c0_i32_1 = arith.constant 0 : i32
    return %arg0, %c0_i32, %c0_i32_0 : i32, i32, i32
  }
  func.func @transform_2(%arg0: i32) -> (i32, i32) {
    %c0_i32 = arith.constant 0 : i32
    %c0_i32_0 = arith.constant 0 : i32
    %c0_i32_1 = arith.constant 0 : i32
    return %c0_i32, %c0_i32_0 : i32, i32
  }
  func.func @transform_3(%arg0: i32) -> (i32, i32) {
    %c0_i32 = arith.constant 0 : i32
    %c0_i32_0 = arith.constant 0 : i32
    %c0_i32_1 = arith.constant 0 : i32
    return %c0_i32, %c0_i32_0 : i32, i32
  }
  func.func @transform_4(%arg0: i32) -> (i32, i32) {
    %c0_i32 = arith.constant 0 : i32
    %c0_i32_0 = arith.constant 0 : i32
    %c0_i32_1 = arith.constant 0 : i32
    return %c0_i32, %c0_i32_0 : i32, i32
  }
  func.func @transform_5(%arg0: i32) -> (i32, i32) {
    %c0_i32 = arith.constant 0 : i32
    %c0_i32_0 = arith.constant 0 : i32
    %c0_i32_1 = arith.constant 0 : i32
    return %c0_i32, %c0_i32_0 : i32, i32
  }
  func.func @transform_6(%arg0: i32) -> (i32, i32) {
    %c0_i32 = arith.constant 0 : i32
    %c0_i32_0 = arith.constant 0 : i32
    %c0_i32_1 = arith.constant 0 : i32
    return %c0_i32, %c0_i32_0 : i32, i32
  }
  func.func @transform_7(%arg0: i32) -> (i32, i32) {
    %c0_i32 = arith.constant 0 : i32
    %c0_i32_0 = arith.constant 0 : i32
    %c0_i32_1 = arith.constant 0 : i32
    return %c0_i32, %c0_i32_0 : i32, i32
  }
  func.func @transform_8(%arg0: i32) -> (i32, i32) {
    %c0_i32 = arith.constant 0 : i32
    %c0_i32_0 = arith.constant 0 : i32
    %c0_i32_1 = arith.constant 0 : i32
    return %c0_i32, %c0_i32_0 : i32, i32
  }
  func.func @transform_9(%arg0: i32) -> (i32, i32) {
    %c0_i32 = arith.constant 0 : i32
    %c0_i32_0 = arith.constant 0 : i32
    %c0_i32_1 = arith.constant 0 : i32
    return %c0_i32, %c0_i32_0 : i32, i32
  }
  func.func @transform_10(%arg0: i32) -> (i32, i32) {
    %c0_i32 = arith.constant 0 : i32
    %c0_i32_0 = arith.constant 0 : i32
    %c0_i32_1 = arith.constant 0 : i32
    return %c0_i32, %c0_i32_0 : i32, i32
  }
  func.func @transform_11(%arg0: i32) -> (i32, i32) {
    %c0_i32 = arith.constant 0 : i32
    %c0_i32_0 = arith.constant 0 : i32
    %c0_i32_1 = arith.constant 0 : i32
    return %c0_i32, %c0_i32_0 : i32, i32
  }
  func.func @transform_12(%arg0: i32) -> (i32, i32, i32) {
    %c0_i32 = arith.constant 0 : i32
    %c0_i32_0 = arith.constant 0 : i32
    %c0_i32_1 = arith.constant 0 : i32
    return %arg0, %c0_i32, %c0_i32_0 : i32, i32, i32
  }
}

module attributes {stable_mosaic.version = 11 : i64} {
  func.func @_final_ln_kernel(%arg0: i32, %arg1: memref<1x12x64xf32, #tpu.memory_space<vmem>>, %arg2: memref<1x64xf32, #tpu.memory_space<vmem>>, %arg3: memref<1x64xf32, #tpu.memory_space<vmem>>, %arg4: memref<1x4x64xf32, #tpu.memory_space<vmem>>) attributes {dimension_semantics = [#tpu.dimension_semantics<parallel>], iteration_bounds = array<i64: 2>, scalar_prefetch = 0 : i64, scratch_operands = 0 : i64, tpu.core_type = #tpu.core_type<tc>, window_params = [{transform_indices = @transform_0, window_bounds = array<i64: 1, 12, 64>}, {pipeline_mode = #tpu.pipeline_mode<synchronous>, transform_indices = @transform_1, window_bounds = array<i64: 1, 64>}, {pipeline_mode = #tpu.pipeline_mode<synchronous>, transform_indices = @transform_2, window_bounds = array<i64: 1, 64>}, {transform_indices = @transform_3, window_bounds = array<i64: 1, 4, 64>}]} {
    %c0 = arith.constant 0 : index
    %c8 = arith.constant 8 : index
    %c0_0 = arith.constant 0 : index
    %0 = vector.load %arg1[%c0, %c8, %c0_0] : memref<1x12x64xf32, #tpu.memory_space<vmem>>, vector<1x4x64xf32>
    %1 = vector.shape_cast %0 : vector<1x4x64xf32> to vector<4x64xf32>
    %c0_1 = arith.constant 0 : index
    %c0_2 = arith.constant 0 : index
    %2 = vector.load %arg2[%c0_1, %c0_2] : memref<1x64xf32, #tpu.memory_space<vmem>>, vector<1x64xf32>
    %c0_3 = arith.constant 0 : index
    %c0_4 = arith.constant 0 : index
    %3 = vector.load %arg3[%c0_3, %c0_4] : memref<1x64xf32, #tpu.memory_space<vmem>>, vector<1x64xf32>
    %cst = arith.constant dense<0.000000e+00> : vector<4xf32>
    %4 = vector.multi_reduction <add>, %1, %cst [1] : vector<4x64xf32> to vector<4xf32>
    %5 = vector.shape_cast %4 : vector<4xf32> to vector<4x1xf32>
    %cst_5 = arith.constant 6.400000e+01 : f32
    %6 = vector.broadcast %cst_5 : f32 to vector<4x1xf32>
    %7 = arith.divf %5, %6 : vector<4x1xf32>
    %8 = vector.broadcast %7 : vector<4x1xf32> to vector<4x64xf32>
    %9 = arith.subf %1, %8 : vector<4x64xf32>
    %10 = arith.mulf %9, %9 : vector<4x64xf32>
    %cst_6 = arith.constant dense<0.000000e+00> : vector<4xf32>
    %11 = vector.multi_reduction <add>, %10, %cst_6 [1] : vector<4x64xf32> to vector<4xf32>
    %12 = vector.shape_cast %11 : vector<4xf32> to vector<4x1xf32>
    %cst_7 = arith.constant 6.400000e+01 : f32
    %13 = vector.broadcast %cst_7 : f32 to vector<4x1xf32>
    %14 = arith.divf %12, %13 : vector<4x1xf32>
    %15 = vector.broadcast %7 : vector<4x1xf32> to vector<4x64xf32>
    %16 = arith.subf %1, %15 : vector<4x64xf32>
    %cst_8 = arith.constant 9.99999974E-6 : f32
    %17 = vector.broadcast %cst_8 : f32 to vector<4x1xf32>
    %18 = arith.addf %14, %17 : vector<4x1xf32>
    %19 = math.rsqrt %18 : vector<4x1xf32>
    %20 = vector.broadcast %19 : vector<4x1xf32> to vector<4x64xf32>
    %21 = arith.mulf %16, %20 : vector<4x64xf32>
    %22 = vector.broadcast %2 : vector<1x64xf32> to vector<4x64xf32>
    %23 = arith.mulf %21, %22 : vector<4x64xf32>
    %24 = vector.broadcast %3 : vector<1x64xf32> to vector<4x64xf32>
    %25 = arith.addf %23, %24 : vector<4x64xf32>
    %c0_9 = arith.constant 0 : index
    %c0_10 = arith.constant 0 : index
    %c0_11 = arith.constant 0 : index
    %26 = vector.load %arg4[%c0_9, %c0_10, %c0_11] : memref<1x4x64xf32, #tpu.memory_space<vmem>>, vector<1x4x64xf32>
    %27 = vector.shape_cast %26 : vector<1x4x64xf32> to vector<4x64xf32>
    %28 = vector.shape_cast %25 : vector<4x64xf32> to vector<1x4x64xf32>
    tpu.vector_store %arg4[%c0_9, %c0_10, %c0_11], %28 {strides = array<i32>} : memref<1x4x64xf32, #tpu.memory_space<vmem>>, vector<1x4x64xf32>,
    return
  }
  func.func @transform_0(%arg0: i32) -> (i32, i32, i32) {
    %c0_i32 = arith.constant 0 : i32
    %c0_i32_0 = arith.constant 0 : i32
    %c0_i32_1 = arith.constant 0 : i32
    return %arg0, %c0_i32, %c0_i32_0 : i32, i32, i32
  }
  func.func @transform_1(%arg0: i32) -> (i32, i32) {
    %c0_i32 = arith.constant 0 : i32
    %c0_i32_0 = arith.constant 0 : i32
    %c0_i32_1 = arith.constant 0 : i32
    return %c0_i32, %c0_i32_0 : i32, i32
  }
  func.func @transform_2(%arg0: i32) -> (i32, i32) {
    %c0_i32 = arith.constant 0 : i32
    %c0_i32_0 = arith.constant 0 : i32
    %c0_i32_1 = arith.constant 0 : i32
    return %c0_i32, %c0_i32_0 : i32, i32
  }
  func.func @transform_3(%arg0: i32) -> (i32, i32, i32) {
    %c0_i32 = arith.constant 0 : i32
    %c0_i32_0 = arith.constant 0 : i32
    %c0_i32_1 = arith.constant 0 : i32
    return %arg0, %c0_i32, %c0_i32_0 : i32, i32, i32
  }
}

module attributes {stable_mosaic.version = 11 : i64} {
  func.func @_ffn_block_kernel(%arg0: i32, %arg1: memref<1x12x64xf32, #tpu.memory_space<vmem>>, %arg2: memref<1x6x64xf32, #tpu.memory_space<vmem>>, %arg3: memref<1x64xf32, #tpu.memory_space<vmem>>, %arg4: memref<1x64xf32, #tpu.memory_space<vmem>>, %arg5: memref<64x256xbf16, #tpu.memory_space<vmem>>, %arg6: memref<1x256xf32, #tpu.memory_space<vmem>>, %arg7: memref<256x64xbf16, #tpu.memory_space<vmem>>, %arg8: memref<1x64xf32, #tpu.memory_space<vmem>>, %arg9: memref<1x12x64xf32, #tpu.memory_space<vmem>>) attributes {dimension_semantics = [#tpu.dimension_semantics<parallel>], iteration_bounds = array<i64: 2>, scalar_prefetch = 0 : i64, scratch_operands = 0 : i64, tpu.core_type = #tpu.core_type<tc>, window_params = [{transform_indices = @transform_0, window_bounds = array<i64: 1, 12, 64>}, {transform_indices = @transform_1, window_bounds = array<i64: 1, 6, 64>}, {pipeline_mode = #tpu.pipeline_mode<synchronous>, transform_indices = @transform_2, window_bounds = array<i64: 1, 64>}, {pipeline_mode = #tpu.pipeline_mode<synchronous>, transform_indices = @transform_3, window_bounds = array<i64: 1, 64>}, {pipeline_mode = #tpu.pipeline_mode<synchronous>, transform_indices = @transform_4, window_bounds = array<i64: 64, 256>}, {pipeline_mode = #tpu.pipeline_mode<synchronous>, transform_indices = @transform_5, window_bounds = array<i64: 1, 256>}, {pipeline_mode = #tpu.pipeline_mode<synchronous>, transform_indices = @transform_6, window_bounds = array<i64: 256, 64>}, {pipeline_mode = #tpu.pipeline_mode<synchronous>, transform_indices = @transform_7, window_bounds = array<i64: 1, 64>}, {transform_indices = @transform_8, window_bounds = array<i64: 1, 12, 64>}]} {
    %c0 = arith.constant 0 : index
    %c0_0 = arith.constant 0 : index
    %c0_1 = arith.constant 0 : index
    %0 = vector.load %arg1[%c0, %c0_0, %c0_1] : memref<1x12x64xf32, #tpu.memory_space<vmem>>, vector<1x12x64xf32>
    %1 = vector.shape_cast %0 : vector<1x12x64xf32> to vector<12x64xf32>
    %2 = tpu.iota {dimensions = array<i32: 0>} : vector<12x1xi32>
    %c8_i32 = arith.constant 8 : i32
    %3 = vector.broadcast %c8_i32 : i32 to vector<12x1xi32>
    %4 = arith.cmpi slt, %2, %3 : vector<12x1xi32>
    %c0_2 = arith.constant 0 : index
    %c3 = arith.constant 3 : index
    %c0_3 = arith.constant 0 : index
    %5 = vector.load %arg2[%c0_2, %c3, %c0_3] : memref<1x6x64xf32, #tpu.memory_space<vmem>>, vector<1x1x64xf32>
    %6 = vector.shape_cast %5 : vector<1x1x64xf32> to vector<1x64xf32>
    %c0_4 = arith.constant 0 : index
    %c0_5 = arith.constant 0 : index
    %c0_6 = arith.constant 0 : index
    %7 = vector.load %arg2[%c0_4, %c0_5, %c0_6] : memref<1x6x64xf32, #tpu.memory_space<vmem>>, vector<1x1x64xf32>
    %8 = vector.shape_cast %7 : vector<1x1x64xf32> to vector<1x64xf32>
    %9 = vector.shape_cast %4 : vector<12x1xi1> to vector<12x1xi1>
    %10 = vector.broadcast %9 : vector<12x1xi1> to vector<12x64xi1>
    %11 = vector.shape_cast %6 : vector<1x64xf32> to vector<1x64xf32>
    %12 = vector.broadcast %11 : vector<1x64xf32> to vector<12x64xf32>
    %13 = vector.shape_cast %8 : vector<1x64xf32> to vector<1x64xf32>
    %14 = vector.broadcast %13 : vector<1x64xf32> to vector<12x64xf32>
    %15 = arith.select %10, %12, %14 : vector<12x64xi1>, vector<12x64xf32>
    %c0_7 = arith.constant 0 : index
    %c4 = arith.constant 4 : index
    %c0_8 = arith.constant 0 : index
    %16 = vector.load %arg2[%c0_7, %c4, %c0_8] : memref<1x6x64xf32, #tpu.memory_space<vmem>>, vector<1x1x64xf32>
    %17 = vector.shape_cast %16 : vector<1x1x64xf32> to vector<1x64xf32>
    %c0_9 = arith.constant 0 : index
    %c1 = arith.constant 1 : index
    %c0_10 = arith.constant 0 : index
    %18 = vector.load %arg2[%c0_9, %c1, %c0_10] : memref<1x6x64xf32, #tpu.memory_space<vmem>>, vector<1x1x64xf32>
    %19 = vector.shape_cast %18 : vector<1x1x64xf32> to vector<1x64xf32>
    %20 = vector.shape_cast %4 : vector<12x1xi1> to vector<12x1xi1>
    %21 = vector.broadcast %20 : vector<12x1xi1> to vector<12x64xi1>
    %22 = vector.shape_cast %17 : vector<1x64xf32> to vector<1x64xf32>
    %23 = vector.broadcast %22 : vector<1x64xf32> to vector<12x64xf32>
    %24 = vector.shape_cast %19 : vector<1x64xf32> to vector<1x64xf32>
    %25 = vector.broadcast %24 : vector<1x64xf32> to vector<12x64xf32>
    %26 = arith.select %21, %23, %25 : vector<12x64xi1>, vector<12x64xf32>
    %c0_11 = arith.constant 0 : index
    %c5 = arith.constant 5 : index
    %c0_12 = arith.constant 0 : index
    %27 = vector.load %arg2[%c0_11, %c5, %c0_12] : memref<1x6x64xf32, #tpu.memory_space<vmem>>, vector<1x1x64xf32>
    %28 = vector.shape_cast %27 : vector<1x1x64xf32> to vector<1x64xf32>
    %c0_13 = arith.constant 0 : index
    %c2 = arith.constant 2 : index
    %c0_14 = arith.constant 0 : index
    %29 = vector.load %arg2[%c0_13, %c2, %c0_14] : memref<1x6x64xf32, #tpu.memory_space<vmem>>, vector<1x1x64xf32>
    %30 = vector.shape_cast %29 : vector<1x1x64xf32> to vector<1x64xf32>
    %31 = vector.shape_cast %4 : vector<12x1xi1> to vector<12x1xi1>
    %32 = vector.broadcast %31 : vector<12x1xi1> to vector<12x64xi1>
    %33 = vector.shape_cast %28 : vector<1x64xf32> to vector<1x64xf32>
    %34 = vector.broadcast %33 : vector<1x64xf32> to vector<12x64xf32>
    %35 = vector.shape_cast %30 : vector<1x64xf32> to vector<1x64xf32>
    %36 = vector.broadcast %35 : vector<1x64xf32> to vector<12x64xf32>
    %37 = arith.select %32, %34, %36 : vector<12x64xi1>, vector<12x64xf32>
    %c0_15 = arith.constant 0 : index
    %c0_16 = arith.constant 0 : index
    %38 = vector.load %arg3[%c0_15, %c0_16] : memref<1x64xf32, #tpu.memory_space<vmem>>, vector<1x64xf32>
    %c0_17 = arith.constant 0 : index
    %c0_18 = arith.constant 0 : index
    %39 = vector.load %arg4[%c0_17, %c0_18] : memref<1x64xf32, #tpu.memory_space<vmem>>, vector<1x64xf32>
    %cst = arith.constant dense<0.000000e+00> : vector<12xf32>
    %40 = vector.multi_reduction <add>, %1, %cst [1] : vector<12x64xf32> to vector<12xf32>
    %41 = vector.shape_cast %40 : vector<12xf32> to vector<12x1xf32>
    %cst_19 = arith.constant 6.400000e+01 : f32
    %42 = vector.broadcast %cst_19 : f32 to vector<12x1xf32>
    %43 = arith.divf %41, %42 : vector<12x1xf32>
    %44 = vector.broadcast %43 : vector<12x1xf32> to vector<12x64xf32>
    %45 = arith.subf %1, %44 : vector<12x64xf32>
    %46 = arith.mulf %45, %45 : vector<12x64xf32>
    %cst_20 = arith.constant dense<0.000000e+00> : vector<12xf32>
    %47 = vector.multi_reduction <add>, %46, %cst_20 [1] : vector<12x64xf32> to vector<12xf32>
    %48 = vector.shape_cast %47 : vector<12xf32> to vector<12x1xf32>
    %cst_21 = arith.constant 6.400000e+01 : f32
    %49 = vector.broadcast %cst_21 : f32 to vector<12x1xf32>
    %50 = arith.divf %48, %49 : vector<12x1xf32>
    %51 = vector.broadcast %43 : vector<12x1xf32> to vector<12x64xf32>
    %52 = arith.subf %1, %51 : vector<12x64xf32>
    %cst_22 = arith.constant 9.99999974E-6 : f32
    %53 = vector.broadcast %cst_22 : f32 to vector<12x1xf32>
    %54 = arith.addf %50, %53 : vector<12x1xf32>
    %55 = math.rsqrt %54 : vector<12x1xf32>
    %56 = vector.broadcast %55 : vector<12x1xf32> to vector<12x64xf32>
    %57 = arith.mulf %52, %56 : vector<12x64xf32>
    %58 = vector.broadcast %38 : vector<1x64xf32> to vector<12x64xf32>
    %59 = arith.mulf %57, %58 : vector<12x64xf32>
    %60 = vector.broadcast %39 : vector<1x64xf32> to vector<12x64xf32>
    %61 = arith.addf %59, %60 : vector<12x64xf32>
    %cst_23 = arith.constant 1.000000e+00 : f32
    %62 = vector.broadcast %cst_23 : f32 to vector<12x64xf32>
    %63 = arith.addf %62, %26 : vector<12x64xf32>
    %64 = arith.mulf %61, %63 : vector<12x64xf32>
    %65 = arith.addf %64, %15 : vector<12x64xf32>
    %66 = arith.truncf %65 : vector<12x64xf32> to vector<12x64xbf16>
    %c0_24 = arith.constant 0 : index
    %c0_25 = arith.constant 0 : index
    %67 = vector.load %arg5[%c0_24, %c0_25] : memref<64x256xbf16, #tpu.memory_space<vmem>>, vector<64x256xbf16>
    %cst_26 = arith.constant dense<0.000000e+00> : vector<12x256xf32>
    %68 = tpu.matmul %66, %67, %cst_26 {dimension_numbers = #tpu.dot_dimension_numbers<[1], [0], [0], [1], [0, 0, 1, 1], [], []>} : vector<12x64xbf16>, vector<64x256xbf16>, vector<12x256xf32> -> vector<12x256xf32>
    %c0_27 = arith.constant 0 : index
    %c0_28 = arith.constant 0 : index
    %69 = vector.load %arg6[%c0_27, %c0_28] : memref<1x256xf32, #tpu.memory_space<vmem>>, vector<1x256xf32>
    %70 = vector.broadcast %69 : vector<1x256xf32> to vector<12x256xf32>
    %71 = arith.addf %68, %70 : vector<12x256xf32>
    %cst_29 = arith.constant 5.000000e-01 : f32
    %72 = vector.broadcast %cst_29 : f32 to vector<12x256xf32>
    %73 = arith.mulf %72, %71 : vector<12x256xf32>
    %cst_30 = arith.constant 4.471500e-02 : f32
    %74 = vector.broadcast %cst_30 : f32 to vector<12x256xf32>
    %75 = arith.mulf %74, %71 : vector<12x256xf32>
    %76 = arith.mulf %75, %71 : vector<12x256xf32>
    %77 = arith.mulf %76, %71 : vector<12x256xf32>
    %78 = arith.addf %71, %77 : vector<12x256xf32>
    %cst_31 = arith.constant 0.797884583 : f32
    %79 = vector.broadcast %cst_31 : f32 to vector<12x256xf32>
    %80 = arith.mulf %79, %78 : vector<12x256xf32>
    %81 = math.tanh %80 : vector<12x256xf32>
    %cst_32 = arith.constant 1.000000e+00 : f32
    %82 = vector.broadcast %cst_32 : f32 to vector<12x256xf32>
    %83 = arith.addf %82, %81 : vector<12x256xf32>
    %84 = arith.mulf %73, %83 : vector<12x256xf32>
    %85 = arith.truncf %84 : vector<12x256xf32> to vector<12x256xbf16>
    %c0_33 = arith.constant 0 : index
    %c0_34 = arith.constant 0 : index
    %86 = vector.load %arg7[%c0_33, %c0_34] : memref<256x64xbf16, #tpu.memory_space<vmem>>, vector<256x64xbf16>
    %cst_35 = arith.constant dense<0.000000e+00> : vector<12x64xf32>
    %87 = tpu.matmul %85, %86, %cst_35 {dimension_numbers = #tpu.dot_dimension_numbers<[1], [0], [0], [1], [0, 0, 1, 1], [], []>} : vector<12x256xbf16>, vector<256x64xbf16>, vector<12x64xf32> -> vector<12x64xf32>
    %c0_36 = arith.constant 0 : index
    %c0_37 = arith.constant 0 : index
    %88 = vector.load %arg8[%c0_36, %c0_37] : memref<1x64xf32, #tpu.memory_space<vmem>>, vector<1x64xf32>
    %89 = vector.broadcast %88 : vector<1x64xf32> to vector<12x64xf32>
    %90 = arith.addf %87, %89 : vector<12x64xf32>
    %91 = arith.mulf %37, %90 : vector<12x64xf32>
    %92 = arith.addf %1, %91 : vector<12x64xf32>
    %c0_38 = arith.constant 0 : index
    %c0_39 = arith.constant 0 : index
    %c0_40 = arith.constant 0 : index
    %93 = vector.load %arg9[%c0_38, %c0_39, %c0_40] : memref<1x12x64xf32, #tpu.memory_space<vmem>>, vector<1x12x64xf32>
    %94 = vector.shape_cast %93 : vector<1x12x64xf32> to vector<12x64xf32>
    %95 = vector.shape_cast %92 : vector<12x64xf32> to vector<1x12x64xf32>
    tpu.vector_store %arg9[%c0_38, %c0_39, %c0_40], %95 {strides = array<i32>} : memref<1x12x64xf32, #tpu.memory_space<vmem>>, vector<1x12x64xf32>,
    return
  }
  func.func @transform_0(%arg0: i32) -> (i32, i32, i32) {
    %c0_i32 = arith.constant 0 : i32
    %c0_i32_0 = arith.constant 0 : i32
    %c0_i32_1 = arith.constant 0 : i32
    return %arg0, %c0_i32, %c0_i32_0 : i32, i32, i32
  }
  func.func @transform_1(%arg0: i32) -> (i32, i32, i32) {
    %c0_i32 = arith.constant 0 : i32
    %c0_i32_0 = arith.constant 0 : i32
    %c0_i32_1 = arith.constant 0 : i32
    return %arg0, %c0_i32, %c0_i32_0 : i32, i32, i32
  }
  func.func @transform_2(%arg0: i32) -> (i32, i32) {
    %c0_i32 = arith.constant 0 : i32
    %c0_i32_0 = arith.constant 0 : i32
    %c0_i32_1 = arith.constant 0 : i32
    return %c0_i32, %c0_i32_0 : i32, i32
  }
  func.func @transform_3(%arg0: i32) -> (i32, i32) {
    %c0_i32 = arith.constant 0 : i32
    %c0_i32_0 = arith.constant 0 : i32
    %c0_i32_1 = arith.constant 0 : i32
    return %c0_i32, %c0_i32_0 : i32, i32
  }
  func.func @transform_4(%arg0: i32) -> (i32, i32) {
    %c0_i32 = arith.constant 0 : i32
    %c0_i32_0 = arith.constant 0 : i32
    %c0_i32_1 = arith.constant 0 : i32
    return %c0_i32, %c0_i32_0 : i32, i32
  }
  func.func @transform_5(%arg0: i32) -> (i32, i32) {
    %c0_i32 = arith.constant 0 : i32
    %c0_i32_0 = arith.constant 0 : i32
    %c0_i32_1 = arith.constant 0 : i32
    return %c0_i32, %c0_i32_0 : i32, i32
  }
  func.func @transform_6(%arg0: i32) -> (i32, i32) {
    %c0_i32 = arith.constant 0 : i32
    %c0_i32_0 = arith.constant 0 : i32
    %c0_i32_1 = arith.constant 0 : i32
    return %c0_i32, %c0_i32_0 : i32, i32
  }
  func.func @transform_7(%arg0: i32) -> (i32, i32) {
    %c0_i32 = arith.constant 0 : i32
    %c0_i32_0 = arith.constant 0 : i32
    %c0_i32_1 = arith.constant 0 : i32
    return %c0_i32, %c0_i32_0 : i32, i32
  }
  func.func @transform_8(%arg0: i32) -> (i32, i32, i32) {
    %c0_i32 = arith.constant 0 : i32
    %c0_i32_0 = arith.constant 0 : i32
    %c0_i32_1 = arith.constant 0 : i32
    return %arg0, %c0_i32, %c0_i32_0 : i32, i32, i32
  }
}

</mosaic_0001>

<bundles_post_ra>
// kernel: cogvideox_forward.7
= control target key start
LH: loop header
LB: loop body
LE: loop exit
PB: predicated region body
PF: predicated region fallthrough
CT: control target
= control target key end

     0   :  { %v247_v0 = vmov 0   ;;  %vm130_vm0 = vcmask 523264   ;;  %vm186_vm1 = vcmask 130048   ;;  %s367_s1 = inlined_call_operand.vmem [shape: bf16[192,16], index: 1, kind: input, shape index: {}]   ;;  %s368_s0 = inlined_call_operand.vmem [shape: f32[32,192], index: 0, kind: input, shape index: {}]   ;;  %s369_s2 = inlined_call_operand.vmem [shape: f32[1,16], index: 2, kind: input, shape index: {}]   ;;  %s370_s3 = inlined_call_operand.vmem [shape: f32[32,16], index: 3, kind: output, shape index: {}]  }
   0x1   :  { %137 = vmatprep.subr.bf16.mxu0 %v247_v0  ;;  %210 = vmatprep.subr.bf16.mxu1 %v247_v0  ;;  %v235_v1 = vld [vmem:[%s367_s1] sm:$0xff]   ;;  %v236_v2 = vld [vmem:[%s367_s1 + $0x8] sm:$0xff]   ;;  %v237_v3 = vld [vmem:[%s367_s1 + $0x10] sm:$0xff]  }
   0x2   :  { %138 = vmatpush1.bf16.msra.mxu0 %v235_v1  ;;  %222 = vmatpush1.bf16.msra.mxu1 %v235_v1  ;;  %v238_v4 = vld [vmem:[%s367_s1 + $0x18] sm:$0xff]   ;;  %v16_v5 = vld [vmem:[%s368_s0 + $0x8] sm:$0xff]  ;;  %v239_v10 = vld [vmem:[%s367_s1 + $0x20] sm:$0xff]  }
   0x3   :  { %139 = vmatprep.subr.bf16.mxu0 %v247_v0  ;;  %211 = vmatprep.subr.bf16.mxu1 %v247_v0  ;;  %v18_v6 = vld [vmem:[%s368_s0 + $0x18] sm:$0xff]  ;;  %v20_v7 = vld [vmem:[%s368_s0 + $0x28] sm:$0xff]  ;;  %v241_v13 = vld [vmem:[%s367_s1 + $0x30] sm:$0xff]  }
   0x4   :  { %v24_v8 = vpack.c.bf16 %v18_v6, %v16_v5  ;;  %v22_v9 = vld [vmem:[%s368_s0 + $0x38] sm:$0xff]  ;;  %v240_v12 = vld [vmem:[%s367_s1 + $0x28] sm:$0xff]   ;;  %v243_v15 = vld [vmem:[%s367_s1 + $0x40] sm:$0xff]  }
   0x5   :  { %v26_v11 = vpack.c.bf16 %v22_v9, %v20_v7  ;;  %v242_v14 = vld [vmem:[%s367_s1 + $0x38] sm:$0xff]   ;;  %v244_v16 = vld [vmem:[%s367_s1 + $0x48] sm:$0xff]   ;;  %v245_v17 = vld [vmem:[%s367_s1 + $0x50] sm:$0xff]  }
   0x6   :  { %140 = vmatpush1.bf16.msra.mxu0 %v236_v2  ;;  %223 = vmatpush1.bf16.msra.mxu1 %v236_v2  ;;  %v246_v18 = vld [vmem:[%s367_s1 + $0x58] sm:$0xff]   ;;  %v15_v19 = vld [vmem:[%s368_s0] sm:$0xff]  ;;  %v17_v20 = vld [vmem:[%s368_s0 + $0x10] sm:$0xff] }
   0x7   :  { %141 = vmatprep.subr.bf16.mxu0 %v247_v0  ;;  %212 = vmatprep.subr.bf16.mxu1 %v247_v0  ;;  %v19_v21 = vld [vmem:[%s368_s0 + $0x20] sm:$0xff]  ;;  %v21_v22 = vld [vmem:[%s368_s0 + $0x30] sm:$0xff]  ;;  %v23_v23 = vpack.c.bf16 %v17_v20, %v15_v19 }
   0x8   :  { %208 = vmatprep.mubr.msk.bf16.mxu0 %vm130_vm0, %v24_v8  ;;  %209 = vmatprep.mubr.msk.bf16.mxu1 %vm130_vm0, %v26_v11  ;;  %v25_v24 = vpack.c.bf16 %v21_v22, %v19_v21  ;;  %v195_v25 = vld [vmem:[%s369_s2] ss:$0 sm:$0xff] }
   0xa   :  { %142 = vmatpush1.bf16.msra.mxu0 %v237_v3  ;;  %224 = vmatpush1.bf16.msra.mxu1 %v237_v3 }
   0xb   :  { %143 = vmatprep.subr.bf16.mxu0 %v247_v0  ;;  %213 = vmatprep.subr.bf16.mxu1 %v247_v0 }
   0xe   :  { %144 = vmatpush1.bf16.msra.mxu0 %v238_v4  ;;  %225 = vmatpush1.bf16.msra.mxu1 %v238_v4 }
   0xf   :  { %145 = vmatprep.subr.bf16.mxu0 %v247_v0  ;;  %214 = vmatprep.subr.bf16.mxu1 %v247_v0 }
  0x12   :  { %146 = vmatpush1.bf16.msra.mxu0 %v239_v10  ;;  %226 = vmatpush1.bf16.msra.mxu1 %v239_v10 }
  0x13   :  { %147 = vmatprep.subr.bf16.mxu0 %v247_v0  ;;  %215 = vmatprep.subr.bf16.mxu1 %v247_v0 }
  0x16   :  { %148 = vmatpush1.bf16.msra.mxu0 %v240_v12  ;;  %227 = vmatpush1.bf16.msra.mxu1 %v240_v12 }
  0x17   :  { %149 = vmatprep.subr.bf16.mxu0 %v247_v0  ;;  %216 = vmatprep.subr.bf16.mxu1 %v247_v0 }
  0x1a   :  { %150 = vmatpush1.bf16.msra.mxu0 %v241_v13  ;;  %228 = vmatpush1.bf16.msra.mxu1 %v241_v13 }
  0x1b   :  { %151 = vmatprep.subr.bf16.mxu0 %v247_v0  ;;  %217 = vmatprep.subr.bf16.mxu1 %v247_v0 }
  0x1e   :  { %152 = vmatpush1.bf16.msra.mxu0 %v242_v14  ;;  %229 = vmatpush1.bf16.msra.mxu1 %v242_v14 }
  0x1f   :  { %153 = vmatprep.subr.bf16.mxu0 %v247_v0  ;;  %218 = vmatprep.subr.bf16.mxu1 %v247_v0 }
  0x22   :  { %154 = vmatpush1.bf16.msra.mxu0 %v243_v15  ;;  %230 = vmatpush1.bf16.msra.mxu1 %v243_v15 }
  0x23   :  { %155 = vmatprep.subr.bf16.mxu0 %v247_v0  ;;  %219 = vmatprep.subr.bf16.mxu1 %v247_v0 }
  0x26   :  { %156 = vmatpush1.bf16.msra.mxu0 %v244_v16  ;;  %231 = vmatpush1.bf16.msra.mxu1 %v244_v16 }
  0x27   :  { %157 = vmatprep.subr.bf16.mxu0 %v247_v0  ;;  %220 = vmatprep.subr.bf16.mxu1 %v247_v0 }
  0x2a   :  { %158 = vmatpush1.bf16.msra.mxu0 %v245_v17  ;;  %232 = vmatpush1.bf16.msra.mxu1 %v245_v17 }
  0x2b   :  { %159 = vmatprep.subr.bf16.mxu0 %v247_v0  ;;  %221 = vmatprep.subr.bf16.mxu1 %v247_v0 }
  0x2e   :  { %160 = vmatpush1.bf16.msra.mxu0 %v246_v18  ;;  %233 = vmatpush1.bf16.msra.mxu1 %v246_v18 }
  0x31   :  { %170 = vmatmul.mubr.bf16.vlgmr.msra.gmra.mrb[0].mxu0 %v23_v23  ;;  %178 = vmatmul.mubr.bf16.vlgmr.msra.gmra.mrb[0].mxu1 %v25_v24 }
 0x104   :  { %v171_v26 = vpop.f32.mrb[0].mxu0  ;;  %v179_v27 = vpop.f32.mrb[0].mxu1 }
 0x105   :  { %v172_v28 = vadd.f32 %v195_v25, %v171_v26  ;;  %v180_v29 = vadd.f32 %v195_v25, %v179_v27  ;;  %v173_v30 = vpop.f32.mrb[1].mxu0  ;;  %v181_v31 = vpop.f32.mrb[1].mxu1 }
 0x106   :  { %v174_v32 = vpop.f32.mrb[2].mxu0  ;;  %v182_v33 = vpop.f32.mrb[2].mxu1 }
 0x107   :  { %187 = vst.msk [vmem:[%s370_s3] sm:$0xff] %vm186_vm1, %v172_v28  ;;  %189 = vst.msk [vmem:[%s370_s3 + $0x10] sm:$0xff] %vm186_vm1, %v180_v29  ;;  %v175_v34 = vadd.f32 %v195_v25, %v174_v32  ;;  %v183_v35 = vadd.f32 %v195_v25, %v182_v33  ;;  %v176_v36 = vpop.f32.mrb[3].mxu0  ;;  %v184_v37 = vpop.f32.mrb[3].mxu1 }
 0x109   :  { %188 = vst.msk [vmem:[%s370_s3 + $0x8] sm:$0xff] %vm186_vm1, %v175_v34  ;;  %190 = vst.msk [vmem:[%s370_s3 + $0x18] sm:$0xff] %vm186_vm1, %v183_v35 }

// kernel: cogvideox_forward.8
= control target key start
LH: loop header
LB: loop body
LE: loop exit
PB: predicated region body
PF: predicated region fallthrough
CT: control target
= control target key end

     0   :  { %s572_s21 = smov 0   ;;  %s616_s0 = inlined_call_operand.vmem [shape: f32[8,32], index: 0, kind: input, shape index: {}]   ;;  %s617_s1 = inlined_call_operand.vmem [shape: f32[2,4,64], index: 1, kind: input, shape index: {}]   ;;  %s618_s2 = inlined_call_operand.vmem [shape: bf16[32,64], index: 2, kind: input, shape index: {}]   ;;  %s619_s3 = inlined_call_operand.vmem [shape: f32[1,64], index: 3, kind: input, shape index: {}]   ;;  %s620_s4 = inlined_call_operand.vmem [shape: bf16[64,64], index: 4, kind: input, shape index: {}]   ;;  %s621_s5 = inlined_call_operand.vmem [shape: f32[1,64], index: 5, kind: input, shape index: {}]   ;;  %s622_s6 = inlined_call_operand.vmem [shape: f32[2,12,64], index: 6, kind: output, shape index: {}]  }
   0x1 LB: > { %s462_s22 = sadd.s32 4294967295, %s533_s21   ;;  %p466_p0 = scmp.ge.s32.totalorder %s533_s21, 1  ;;  %s533_s21 = sphi %s572_s21, %s16_s21  }
   0x2   : > { %p211_p1 = scmp.lt.s32.totalorder %s533_s21, 3 }
   0x4   : > { %p212_p2 = pnand %p466_p0, %p211_p1 }
   0x5   : > { %v521_v0 = vld [vmem:[%s620_s4] sm:$0xff] (!%p212_p2)   ;;  %v535_v1 = vmov (!%p212_p2), 0.0   ;;  %v522_v2 = vld [vmem:[%s620_s4 + $0x8] sm:$0xff] (!%p212_p2)   ;;  %vm536_vm0 = vmmov (!%p212_p2), 0   ;;  %p240_p3 = scmp.lt.s32.totalorder (!%p212_p2), %s462_s22, 1  ;;  %v524_v6 = vld [vmem:[%s620_s4 + $0x10] sm:$0xff] (!%p212_p2)  }
   0x6   : > { %215 = sbr.rel (%p212_p2) target bundleno = 237 (0xed), region = 44  ;;  %499 = vmatprep.subr.bf16.mxu1 (!%p212_p2), %v535_v1  ;;  %491 = vmatprep.subr.bf16.mxu0 (!%p212_p2), %v535_v1  ;;  %v523_v3 = vld [vmem:[%s618_s2] sm:$0xff] (!%p212_p2)   ;;  %v525_v4 = vld [vmem:[%s618_s2 + $0x8] sm:$0xff] (!%p212_p2)   ;;  %vm275_vm1 = vcmask (!%p212_p2), 261120   ;;  %v526_v8 = vld [vmem:[%s620_s4 + $0x18] sm:$0xff] (!%p212_p2)   ;;  %vm360_vm2 = vcmask (!%p212_p2), 523264  }
   0x7   : > { %500 = vmatpush3.bf16.msra.mxu1 (!%p212_p2), %v521_v0  ;;  %495 = vmatprep.mubr.msk.bf16.mxu0 (!%p212_p2), %vm536_vm0, %v535_v1  ;;  %v250_v5 = vld [vmem:[%s616_s0] sm:$0xff] (!%p212_p2)  ;;  %vm405_vm3 = vcmask (!%p212_p2), 519168  }
   0x8   : > { %501 = vmatprep.subr.bf16.mxu1 (!%p212_p2), %v535_v1  ;;  %507 = vmatprep.mubr.msk.bf16.mxu1 (!%p212_p2), %vm536_vm0, %v535_v1  ;;  %v251_v7 = vpack.c.bf16 (!%p212_p2), %v250_v5, %v250_v5  ;;  %v470_v11 = vld [vmem:[%s619_s3] ss:$0 sm:$0xff] (!%p212_p2) }
   0x9   : > { %492 = vmatpush3.bf16.msra.mxu0 (!%p212_p2), %v523_v3  ;;  %v474_v17 = vld [vmem:[%s621_s5] ss:$0 sm:$0xff] (!%p212_p2) }
   0xa   : > { %493 = vmatprep.subr.bf16.mxu0 (!%p212_p2), %v535_v1 }
   0xb   : > { %502 = vmatpush3.bf16.msra.mxu1 (!%p212_p2), %v522_v2 }
   0xc   : > { %503 = vmatprep.subr.bf16.mxu1 (!%p212_p2), %v535_v1 }
   0xd   : > { %s624_s22 = smov (!%p240_p3, %s462_s22), 1  ;;  %494 = vmatpush3.bf16.msra.mxu0 %v525_v4 }
   0xe   : > { %s467_s11 = sshll.u32 %s624_s22, 2  ;;  %s482_s17 = sshll.u32 %s624_s22, 4 }
   0xf   : > { %s243_s14 = scalar_lea.vmem %s617_s1, %s467_s11  ;;  %504 = vmatpush3.bf16.msra.mxu1 %v524_v6  ;;  %s248_s24 = scalar_lea.vmem %s622_s6, %s482_s17 }
  0x10   : > { %v319_v9 = vld [vmem:[%s243_s14] sm:$0xf]  ;;  %505 = vmatprep.subr.bf16.mxu1 %v535_v1  ;;  %496 = vmatmul.mubr.msk.bf16.vlgmr.msra.gmra.mrb[0].mxu0 %vm275_vm1, %v251_v7 }
  0x11   : > { %v320_v10 = vpack.c.bf16 %v319_v9, %v319_v9 }
  0x13   : > { %506 = vmatpush3.bf16.msra.mxu1 %v526_v8 }
  0x16   : > { %508 = vmatmul.mubr.msk.bf16.vlgmr.msra.gmra.mrb[0].mxu1 %vm360_vm2, %v320_v10 }
  0xe3   : > { %v313_v12 = vpop.f32.mrb[0].mxu0 }
  0xe4   : > { %v314_v13 = vadd.f32 %v470_v11, %v313_v12  ;;  %v497_v14 = vpop.f32.mrb[1].mxu0 }
  0xe5   : > { %v316_v15 = vpop.f32.mrb[2].mxu0 }
  0xe6   : > { %404 = vst.msk [vmem:[%s248_s24] sm:$0xff] %vm360_vm2, %v314_v13  ;;  %v498_v16 = vpop.f32.mrb[3].mxu0 }
  0xe9   : > { %v398_v18 = vpop.f32.mrb[0].mxu1 }
  0xea   : > { %v399_v19 = vadd.f32 %v474_v17, %v398_v18  ;;  %v509_v20 = vpop.f32.mrb[1].mxu1 }
  0xeb   : > { %v401_v21 = vpop.f32.mrb[2].mxu1 }
  0xec   : > { %406 = vst.msk [vmem:[%s248_s24 + $0x8] sm:$0xf] %vm405_vm3, %v399_v19  ;;  %v510_v22 = vpop.f32.mrb[3].mxu1 }
  0xed PF: > { %s16_s21 = sadd.s32 1, %s533_s21  }
  0xee   : > { %p13_p4 = scmp.ge.s32.totalorder %s16_s21, 4  }
  0xf0   :  { %15 = sbr.rel (!%p13_p4) target bundleno = 1 (0x1), region = 74 }

// kernel: cogvideox_forward.13
= control target key start
LH: loop header
LB: loop body
LE: loop exit
PB: predicated region body
PF: predicated region fallthrough
CT: control target
= control target key end

     0   :  { %8 = vsyncpa [#allocation3], 0  ;;  %s524_s0 = inlined_call_operand.vmem [shape: f32[2,12,64], index: 0, kind: input, shape index: {}]   ;;  %s525_s1 = inlined_call_operand.vmem [shape: f32[1,64], index: 1, kind: input, shape index: {}]   ;;  %s526_s2 = inlined_call_operand.vmem [shape: f32[1,64], index: 2, kind: input, shape index: {}]   ;;  %s527_s3 = inlined_call_operand.hbm [shape: f32[2,4,64], index: 3, kind: output, shape index: {}]  }
   0x1   :  { %10 = vsyncpa [#allocation3 + $0x1], 0  ;;  %s415_s12 = smov 0   ;;  %s417_s13 = smov 0  }
   0x2   :  { %s419_s14 = smov 0   ;;  %s421_s15 = smov 0  }
   0x3 LB: > { %s436_s16 = sadd.s32 4294967295, %s392_s15   ;;  %s275_s17 = sadd.s32 4294967294, %s392_s15   ;;  %s392_s15 = sphi %s421_s15, %s533_s15   ;;  %s388_s14 = sphi %s419_s14, %s532_s14   ;;  %s384_s13 = sphi %s417_s13, %s531_s13   ;;  %s380_s12 = sphi %s415_s12, %s530_s12  }
   0x4   : > { %s440_s18 = sadd.s32 1, %s392_s15   ;;  %s91_s19 = sadd.s32 1, %s388_s14 }
   0x5   : > { %s88_s20 = ssub.s32 %s392_s15, %s440_s18  ;;  %p101_p0 = scmp.ne.s32.totalorder %s388_s14, %s384_s13 }
   0x6   : > { %p89_p1 = scmp.eq.s32.totalorder %s88_s20, 0  ;;  %p102_p2 = scmp.eq.s32.totalorder %s436_s16, 1 }
   0x7   : > { %p107_p3 = scmp.ne.s32.totalorder %s384_s13, %s380_s12  ;;  %p108_p4 = scmp.eq.s32.totalorder %s275_s17, 1 }
   0x8   : > { %s451_s21 = scalar_select %p89_p1, %s388_s14, %s91_s19  }
   0x9   : > { %p453_p5 = por %p102_p2, %p101_p0  ;;  %p457_p6 = por %p108_p4, %p107_p3 }
   0xa   : > { %p278_p7 = scmp.ge.s32.totalorder %s392_s15, 1  ;;  %p140_p8 = scmp.lt.s32.totalorder %s392_s15, 3 }
   0xc   : > { %p141_p9 = pnand %p278_p7, %p140_p8 }
   0xd   : > { %p164_p10 = scmp.lt.s32.totalorder (!%p141_p9), %s436_s16, 1  ;;  %vm172_vm0 = vcmask (!%p141_p9), 519168   ;;  %s161_s29 = sand.u32 (!%p141_p9), 1, %s384_s13   ;;  %v282_v11 = vld [vmem:[%s525_s1] ss:$0 sm:$0xff] (!%p141_p9) }
   0xe   : > { %144 = sbr.rel (%p141_p9) target bundleno = 353 (0x161), region = 32  ;;  %s279_s30 = sshll.u32 (!%p141_p9), %s161_s29, 2  ;;  %v283_v13 = vld [vmem:[%s526_s2] ss:$0 sm:$0xff] (!%p141_p9) }
   0xf   : > { %s285_s8 = sshll.u32 (!%p141_p9), %s436_s16, 6  ;;  %s163_s9 = scalar_lea.vmem (!%p141_p9), [#allocation2], %s279_s30 }
  0x10   : > { %s216_s10 = sshll.u32 (!%p141_p9), %s163_s9, 4  ;;  %s481_s19 = scalar_lea.hbm (!%p141_p9), %s527_s3, %s285_s8  ;;  %s483_s10 = int_to_ptr.vmem [resolvable:$true] %s216_s10 }
  0x11   : > { %s203_s20 = scalar_lea.sflag (!%p141_p9), [#allocation3], %s161_s29 }
  0x15   : > { %s165_s24 = scalar_select %p164_p10, %s436_s16, 1 }
  0x16   : > { %s394_s16 = smov [#allocation2]  }
  0x17   : > { %s288_s25 = sshll.u32 %s165_s24, 4  ;;  %s330_s24 = scalar_lea.vmem %s483_s10, 64 }
  0x18   : > { %s168_s28 = scalar_lea.vmem %s524_s0, %s288_s25  ;;  %p331_p11 = scmp.ne.s32.totalorder %s483_s10, %s330_s24 }
  0x19   : > { %v169_v0 = vld [vmem:[%s168_s28 + $0x8] sm:$0xf]  ;;  %s334_s25 = sshll.u32 %s394_s16, 4  ;;  %s335_s25 = int_to_ptr.vmem [resolvable:$false] %s334_s25 }
  0x1a   : > { %v173_v1 = vsel %vm172_vm0, %v169_v0, 0.0  ;;  %p332_p12 = pnand %p331_p11, %p453_p5  ;;  %s336_s26 = scalar_lea.vmem %s335_s25, 128 }
  0x1b   : > { %174 = vadd.xlane.f32.xlu0 %v173_v1  ;;  %p337_p0 = scmp.lt.s32.totalorder %s483_s10, %s335_s25  ;;  %p338_p1 = scmp.lt.s32.totalorder %s336_s26, %s330_s24 }
  0x1c   : > { %p333_p13 = pneg %p332_p12 }
  0x1d   : > { %p339_p2 = por %p338_p1, %p337_p0 }
  0x1f   : > { %p340_p3 = pnand %p339_p2, %p333_p13 }
  0xa8   : > { %v175_v2 = vpop.xlane.xlu0 %174 }
  0xa9   : > { %v177_v3 = vmul.f32 0.015625, %v175_v2 }
  0xab   : > { %v178_v4 = vsub.f32 %v169_v0, %v177_v3 }
  0xad   : > { %v179_v5 = vmul.f32 %v178_v4, %v178_v4 }
  0xaf   : > { %v180_v6 = vsel %vm172_vm0, %v179_v5, 0.0 }
  0xb0   : > { %181 = vadd.xlane.f32.xlu0 %v180_v6 }
 0x13d   : > { %v182_v7 = vpop.xlane.xlu0 %181 }
 0x13e   : > { %v183_v8 = vmul.f32 0.015625, %v182_v7 }
 0x140   : > { %v184_v9 = vadd.f32 1e-05, %v183_v8 }
 0x142   : > { %328 = vrsqrt.f32 %v184_v9 }
 0x14c   : > { %v329_v10 = vpop.eup %328 }
 0x14d   : > { %v186_v12 = vmul.f32 %v329_v10, %v178_v4 }
 0x14f   : > { %v193_v14 = vmul.f32 %v282_v11, %v186_v12 }
 0x151   : > { %v200_v15 = vadd.f32 %v283_v13, %v193_v14 }
 0x153   : > { %201 = vst.msk [vmem:[%s163_s9] sm:$0xf] %vm172_vm0, %v200_v15 }
 0x154   : > { %343 = shalt.err (!%p340_p3)
}
 0x155   : > { %s344_s27 = scalar_lea.hbm %s481_s19, 64  ;;  %s348_s30 = scalar_lea.hbm %s527_s3, 128 }
 0x156   : > { %p345_p4 = scmp.ne.s32.totalorder %s481_s19, %s344_s27  ;;  %p349_p9 = scmp.lt.u32.totalorder %s481_s19, %s527_s3 }
 0x157   : > { %p350_p10 = scmp.lt.u32.totalorder %s348_s30, %s344_s27  ;;  %p352_p12 = scmp.lt.u32.totalorder %s344_s27, %s481_s19 }
 0x158   : > { %p346_p7 = pnand %p345_p4, %p453_p5 }
 0x159   : > { %p351_p11 = por %p350_p10, %p349_p9 }
 0x15a   : > { %p347_p8 = pneg %p346_p7 }
 0x15b   : > { %p353_p13 = por %p352_p12, %p351_p11 }
 0x15d   : > { %p354_p0 = pnand %p353_p13, %p347_p8 }
 0x15f   : > { %357 = shalt.err (!%p354_p0)
}
 0x160   : > { %289 = dma.vmem_to_hbm [thread:$0]  (%p453_p5), %s483_s10, 64, %s481_s19, %s203_s20  }
 0x161 PF: > { %p295_p1 = scmp.ge.s32.totalorder %s392_s15, 2  ;;  %s228_s6 = sand.u32 1, %s380_s12  }
 0x162   : > { %s229_s7 = scalar_lea.sflag [#allocation3], %s228_s6 }
 0x163   : > { %p292_p2 = pnand %p295_p1, %p457_p6 }
 0x165   : > { %375 = dma.done.wait (!%p292_p2), %s229_s7, 64  }
 0x166   : > { %377 = vsyncadd (!%p292_p2), %s229_s7, 4294967232  ;;  %p13_p3 = scmp.ge.s32.totalorder %s440_s18, 4   ;;  %s530_s12 = smov %s384_s13 }
 0x167   : > { %s531_s13 = smov %s388_s14  ;;  %s532_s14 = smov %s451_s21 }
 0x168   : > { %s533_s15 = smov %s440_s18  ;;  %15 = sbr.rel (!%p13_p3) target bundleno = 3 (0x3), region = 67 }
 0x16f   :  { %234 = vsyncpa [#allocation3], 1 }
 0x170   :  { %236 = vsyncpa [#allocation3 + $0x1], 1 }

// kernel: cogvideox_forward.10
= control target key start
LH: loop header
LB: loop body
LE: loop exit
PB: predicated region body
PF: predicated region fallthrough
CT: control target
= control target key end

     0   :  { %s991_s27 = smov 0   ;;  %s1128_s0 = inlined_call_operand.vmem [shape: f32[2,12,64], index: 0, kind: input, shape index: {}]   ;;  %s1129_s1 = inlined_call_operand.vmem [shape: f32[2,6,64], index: 1, kind: input, shape index: {}]   ;;  %s1130_s2 = inlined_call_operand.vmem [shape: f32[1,64], index: 2, kind: input, shape index: {}]   ;;  %s1131_s3 = inlined_call_operand.vmem [shape: f32[1,64], index: 3, kind: input, shape index: {}]   ;;  %s1132_s4 = inlined_call_operand.vmem [shape: bf16[64,256], index: 4, kind: input, shape index: {}]   ;;  %s1133_s5 = inlined_call_operand.vmem [shape: f32[1,256], index: 5, kind: input, shape index: {}]   ;;  %s1134_s6 = inlined_call_operand.vmem [shape: bf16[256,64], index: 6, kind: input, shape index: {}]   ;;  %s1135_s7 = inlined_call_operand.vmem [shape: f32[1,64], index: 7, kind: input, shape index: {}]   ;;  %s1136_s8 = inlined_call_operand.vmem [shape: f32[2,12,64], index: 8, kind: output, shape index: {}]  }
   0x1 LB: > { %s818_s28 = sadd.s32 4294967295, %s943_s27   ;;  %p822_p0 = scmp.ge.s32.totalorder %s943_s27, 1  ;;  %s943_s27 = sphi %s991_s27, %s18_s27  }
   0x2   : > { %p271_p1 = scmp.lt.s32.totalorder %s943_s27, 3 }
   0x4   : > { %p272_p2 = pnand %p822_p0, %p271_p1 }
   0x5   : > { %p309_p3 = scmp.lt.s32.totalorder (!%p272_p2), %s818_s28, 1  ;;  %vm373_vm0 = vcmask (!%p272_p2), 523264   ;;  %vm377_vm1 = vcmask (!%p272_p2), 519168   ;;  %v897_v14 = vld [vmem:[%s1132_s4 + $0x4] ss:$8 sps:$4 sm:$0xff] (!%p272_p2)   ;;  %v945_v21 = vmov (!%p272_p2), 0  }
   0x6   : > { %275 = sbr.rel (%p272_p2) target bundleno = 809 (0x329), region = 52  ;;  %v899_v15 = vld [vmem:[%s1132_s4] ss:$8 sps:$4 sm:$0xff] (!%p272_p2)   ;;  %488 = vmatprep.subr.bf16.mxu0 (!%p272_p2), %v897_v14  ;;  %v900_v16 = vld [vmem:[%s1132_s4 + $0x14] ss:$8 sps:$4 sm:$0xff] (!%p272_p2)   ;;  %520 = vmatprep.mubr.bf16.mxu0 (!%p272_p2), %v945_v21 }
   0x7   : > { %489 = vmatpush1.bf16.msra.mxu0 (!%p272_p2), %v899_v15  ;;  %v902_v17 = vld [vmem:[%s1132_s4 + $0x10] ss:$8 sps:$4 sm:$0xff] (!%p272_p2)   ;;  %v903_v18 = vld [vmem:[%s1132_s4 + $0x24] ss:$8 sps:$4 sm:$0xff] (!%p272_p2)   ;;  %v905_v19 = vld [vmem:[%s1132_s4 + $0x20] ss:$8 sps:$4 sm:$0xff] (!%p272_p2)  }
   0x8   : > { %490 = vmatprep.subr.bf16.mxu0 (!%p272_p2), %v900_v16  ;;  %v906_v20 = vld [vmem:[%s1132_s4 + $0x34] ss:$8 sps:$4 sm:$0xff] (!%p272_p2)   ;;  %v908_v22 = vld [vmem:[%s1132_s4 + $0x30] ss:$8 sps:$4 sm:$0xff] (!%p272_p2)   ;;  %v834_v30 = vld [vmem:[%s1130_s2] ss:$0 sm:$0xff] (!%p272_p2) }
   0x9   : > { %v835_v33 = vld [vmem:[%s1131_s3] ss:$0 sm:$0xff] (!%p272_p2)  ;;  %v911_v52 = vld [vmem:[%s1134_s6 + $0x48] sm:$0xff] (!%p272_p2)   ;;  %v913_v54 = vld [vmem:[%s1134_s6 + $0x50] sm:$0xff] (!%p272_p2)  }
   0xa   : > { %v909_v50 = vld [vmem:[%s1134_s6 + $0x40] sm:$0xff] (!%p272_p2)   ;;  %v912_v53 = vld [vmem:[%s1134_s6 + $0x8] sm:$0xff] (!%p272_p2)   ;;  %v914_v55 = vld [vmem:[%s1134_s6 + $0x10] sm:$0xff] (!%p272_p2)  }
   0xb   : > { %491 = vmatpush1.bf16.msra.mxu0 (!%p272_p2), %v902_v17  ;;  %v910_v51 = vld [vmem:[%s1134_s6] sm:$0xff] (!%p272_p2)   ;;  %866 = vmatprep.subr.bf16.mxu1 (!%p272_p2), %v909_v50  ;;  %v915_v56 = vld [vmem:[%s1134_s6 + $0x58] sm:$0xff] (!%p272_p2)   ;;  %v919_v60 = vld [vmem:[%s1134_s6 + $0x68] sm:$0xff] (!%p272_p2)  }
   0xc   : > { %492 = vmatprep.subr.bf16.mxu0 (!%p272_p2), %v903_v18  ;;  %867 = vmatpush3.bf16.msra.mxu1 (!%p272_p2), %v910_v51  ;;  %v916_v57 = vld [vmem:[%s1134_s6 + $0x18] sm:$0xff] (!%p272_p2)   ;;  %v917_v58 = vld [vmem:[%s1134_s6 + $0x60] sm:$0xff] (!%p272_p2)   ;;  %v920_v61 = vld [vmem:[%s1134_s6 + $0x28] sm:$0xff] (!%p272_p2)  }
   0xd   : > { %s1138_s28 = smov (!%p309_p3, %s818_s28), 1  ;;  %868 = vmatprep.subr.bf16.mxu1 %v911_v52  ;;  %v918_v59 = vld [vmem:[%s1134_s6 + $0x20] sm:$0xff]   ;;  %v921_v62 = vld [vmem:[%s1134_s6 + $0x70] sm:$0xff]  }
   0xe   : > { %s864_s29 = sshll.u32 %s1138_s28, 4  ;;  %s825_s30 = sshll.u32 %s1138_s28, 3  ;;  %v922_v63 = vld [vmem:[%s1134_s6 + $0x30] sm:$0xff]  }
   0xf   : > { %s313_s10 = scalar_lea.vmem %s1128_s0, %s864_s29  ;;  %493 = vmatpush1.bf16.msra.mxu0 %v905_v19  ;;  %s1047_s11 = scalar_lea.vmem %s1129_s1, %s825_s30 }
  0x10   : > { %v1007_v0 = vld [vmem:[%s313_s10] sm:$0xff]  ;;  %v1009_v1 = vld [vmem:[%s313_s10 + $0x8] sm:$0xf]  ;;  %494 = vmatprep.subr.bf16.mxu0 %v906_v20  ;;  %869 = vmatpush3.bf16.msra.mxu1 %v912_v53  ;;  %s322_s18 = scalar_lea.vmem %s1136_s8, %s864_s29 }
  0x11   : > { %v374_v2 = vsel %vm373_vm0, %v1007_v0, 0.0  ;;  %v378_v3 = vsel %vm377_vm1, %v1009_v1, 0.0  ;;  %v830_v32 = vld [vmem:[%s1047_s11 + $0x4] ss:$0 sm:$0xff]  ;;  %v831_v36 = vld [vmem:[%s1047_s11 + $0x1] ss:$0 sm:$0xff]  ;;  %870 = vmatprep.subr.bf16.mxu1 %v913_v54 }
  0x12   : > { %375 = vadd.xlane.f32.xlu0 %v374_v2  ;;  %v418_v39 = vadd.f32 1.0, %v830_v32  ;;  %v419_v41 = vadd.f32 1.0, %v831_v36  ;;  %v828_v44 = vld [vmem:[%s1047_s11 + $0x3] ss:$0 sm:$0xff]  ;;  %v829_v45 = vld [vmem:[%s1047_s11] ss:$0 sm:$0xff] }
  0x13   : > { %495 = vmatpush1.bf16.msra.mxu0 %v908_v22  ;;  %v923_v2 = vld [vmem:[%s1134_s6 + $0x78] sm:$0xff]  }
  0x14   : > { %871 = vmatpush3.bf16.msra.mxu1 %v914_v55 }
  0x15   : > { %872 = vmatprep.subr.bf16.mxu1 %v915_v56 }
  0x16   : > { %379 = vadd.xlane.f32.xlu0 %v378_v3  ;;  %v924_v3 = vld [vmem:[%s1134_s6 + $0x38] sm:$0xff]  }
  0x18   : > { %873 = vmatpush3.bf16.msra.mxu1 %v916_v57 }
  0x19   : > { %874 = vmatprep.subr.bf16.mxu1 %v917_v58  ;;  %v845_v58 = vld [vmem:[%s1135_s7] ss:$0 sm:$0xff] }
  0x1c   : > { %875 = vmatpush3.bf16.msra.mxu1 %v918_v59 }
  0x1d   : > { %876 = vmatprep.subr.bf16.mxu1 %v919_v60 }
  0x20   : > { %877 = vmatpush3.bf16.msra.mxu1 %v920_v61 }
  0x21   : > { %878 = vmatprep.subr.bf16.mxu1 %v921_v62  ;;  %v832_v62 = vld [vmem:[%s1047_s11 + $0x5] ss:$0 sm:$0xff] }
  0x24   : > { %879 = vmatpush3.bf16.msra.mxu1 %v922_v63 }
  0x25   : > { %880 = vmatprep.subr.bf16.mxu1 %v923_v2 }
  0x28   : > { %881 = vmatpush3.bf16.msra.mxu1 %v924_v3 }
  0x9f   : > { %v376_v4 = vpop.xlane.xlu0 %375 }
  0xa0   : > { %v382_v5 = vmul.f32 0.015625, %v376_v4  ;;  %v435_v4 = vlaneseq }
  0xa2   : > { %v384_v6 = vsub.f32 %v1007_v0, %v382_v5  ;;  %v436_v5 = vshrl.u32 %v435_v4, 7  ;;  %v833_v4 = vld [vmem:[%s1047_s11 + $0x2] ss:$0 sm:$0xff] }
  0xa3   : > { %v380_v7 = vpop.xlane.xlu0 %379 }
  0xa4   : > { %v383_v8 = vmul.f32 0.015625, %v380_v7  ;;  %v386_v9 = vmul.f32 %v384_v6, %v384_v6  ;;  %v433_v7 = vld [vmem:[%s1133_s5] sm:$0x3] }
  0xa6   : > { %v385_v10 = vsub.f32 %v1009_v1, %v383_v8  ;;  %v388_v11 = vsel %vm373_vm0, %v386_v9, 0.0  ;;  %v441_v8 = vsub.s32 1, %v436_v5 }
  0xa7   : > { %389 = vadd.xlane.f32.xlu1 %v388_v11 }
  0xa8   : > { %v387_v12 = vmul.f32 %v385_v10, %v385_v10 }
  0xaa   : > { %v391_v13 = vsel %vm377_vm1, %v387_v12, 0.0 }
  0xab   : > { %392 = vadd.xlane.f32.xlu1 %v391_v13 }
 0x134   : > { %v390_v23 = vpop.xlane.xlu1 %389 }
 0x135   : > { %v394_v24 = vmul.f32 0.015625, %v390_v23 }
 0x137   : > { %v396_v25 = vadd.f32 1e-05, %v394_v24 }
 0x138   : > { %v393_v26 = vpop.xlane.xlu1 %392 }
 0x139   : > { %925 = vrsqrt.f32 %v396_v25  ;;  %v395_v27 = vmul.f32 0.015625, %v393_v26 }
 0x13b   : > { %v397_v28 = vadd.f32 1e-05, %v395_v27 }
 0x13d   : > { %927 = vrsqrt.f32 %v397_v28 }
 0x143   : > { %v926_v29 = vpop.eup %925 }
 0x144   : > { %v400_v31 = vmul.f32 %v926_v29, %v384_v6  ;;  %v437_v6 = vsub.s32 0, %v436_v5 }
 0x146   : > { %v408_v34 = vmul.f32 %v834_v30, %v400_v31  ;;  %v438_v9 = vrot.slane %v433_v7, %v437_v6 }
 0x147   : > { %v928_v35 = vpop.eup %927 }
 0x148   : > { %v401_v37 = vmul.f32 %v928_v35, %v385_v10  ;;  %v416_v38 = vadd.f32 %v835_v33, %v408_v34  ;;  %v442_v10 = vrot.slane %v433_v7, %v441_v8 }
 0x14a   : > { %v409_v40 = vmul.f32 %v834_v30, %v401_v37  ;;  %v420_v43 = vmul.f32 %v418_v39, %v416_v38 }
 0x14c   : > { %v417_v42 = vadd.f32 %v835_v33, %v409_v40  ;;  %v422_v47 = vadd.f32 %v828_v44, %v420_v43 }
 0x14e   : > { %v421_v46 = vmul.f32 %v419_v41, %v417_v42 }
 0x150   : > { %v423_v48 = vadd.f32 %v829_v45, %v421_v46 }
 0x152   : > { %v424_v49 = vpack.c.bf16 %v423_v48, %v422_v47 }
 0x154   : > { %844 = vmatmul.mubr.msk.bf16.vlgmr.msra.gmra.mrb[0].mxu0 %vm373_vm0, %v424_v49 }
 0x227   : > { %v522_v11 = vpop.f32.mrb[0].mxu0 }
 0x228   : > { %v523_v12 = vadd.f32 %v522_v11, %v438_v9  ;;  %v524_v13 = vpop.f32.mrb[1].mxu0 }
 0x229   : > { %v525_v14 = vadd.f32 %v524_v13, %v442_v10  ;;  %v526_v15 = vpop.f32.mrb[2].mxu0 }
 0x22a   : > { %v535_v16 = vmul.f32 0.044715, %v523_v12  ;;  %v527_v17 = vadd.f32 %v526_v15, %v438_v9  ;;  %v528_v18 = vpop.f32.mrb[3].mxu0  ;;  %v531_v45 = vmul.f32 0.5, %v523_v12 }
 0x22b   : > { %v536_v19 = vmul.f32 0.044715, %v525_v14  ;;  %v529_v20 = vadd.f32 %v528_v18, %v442_v10  ;;  %v532_v48 = vmul.f32 0.5, %v525_v14 }
 0x22c   : > { %v539_v21 = vmul.f32 %v535_v16, %v523_v12  ;;  %v537_v22 = vmul.f32 0.044715, %v527_v17  ;;  %v533_v46 = vmul.f32 0.5, %v527_v17 }
 0x22d   : > { %v538_v23 = vmul.f32 0.044715, %v529_v20  ;;  %v540_v24 = vmul.f32 %v536_v19, %v525_v14  ;;  %v534_v49 = vmul.f32 0.5, %v529_v20 }
 0x22e   : > { %v543_v25 = vmul.f32 %v539_v21, %v523_v12  ;;  %v541_v26 = vmul.f32 %v537_v22, %v527_v17 }
 0x22f   : > { %v542_v27 = vmul.f32 %v538_v23, %v529_v20  ;;  %v544_v28 = vmul.f32 %v540_v24, %v525_v14 }
 0x230   : > { %v545_v29 = vmul.f32 %v541_v26, %v527_v17  ;;  %v547_v30 = vadd.f32 %v543_v25, %v523_v12 }
 0x231   : > { %v546_v31 = vmul.f32 %v542_v27, %v529_v20  ;;  %v548_v32 = vadd.f32 %v544_v28, %v525_v14 }
 0x232   : > { %v549_v33 = vadd.f32 %v545_v29, %v527_v17  ;;  %v551_v34 = vmul.f32 0.7978846, %v547_v30 }
 0x233   : > { %v550_v35 = vadd.f32 %v546_v31, %v529_v20  ;;  %v552_v36 = vmul.f32 0.7978846, %v548_v32 }
 0x234   : > { %v553_v37 = vmul.f32 0.7978846, %v549_v33  ;;  %929 = vtanh.f32 %v551_v34 }
 0x235   : > { %v554_v38 = vmul.f32 0.7978846, %v550_v35  ;;  %931 = vtanh.f32 %v552_v36 }
 0x236   : > { %933 = vtanh.f32 %v553_v37 }
 0x237   : > { %935 = vtanh.f32 %v554_v38 }
 0x23e   : > { %v930_v39 = vpop.eup %929 }
 0x23f   : > { %v932_v40 = vpop.eup %931  ;;  %v559_v41 = vadd.f32 1.0, %v930_v39 }
 0x240   : > { %v934_v42 = vpop.eup %933  ;;  %v560_v43 = vadd.f32 1.0, %v932_v40 }
 0x241   : > { %v936_v44 = vpop.eup %935  ;;  %v561_v47 = vadd.f32 1.0, %v934_v42  ;;  %v563_v51 = vmul.f32 %v559_v41, %v531_v45 }
 0x242   : > { %v562_v50 = vadd.f32 1.0, %v936_v44  ;;  %v564_v53 = vmul.f32 %v560_v43, %v532_v48 }
 0x243   : > { %v565_v52 = vmul.f32 %v561_v47, %v533_v46 }
 0x244   : > { %v566_v54 = vmul.f32 %v562_v50, %v534_v49 }
 0x245   : > { %v567_v55 = vpack.c.bf16 %v565_v52, %v563_v51 }
 0x246   : > { %v568_v56 = vpack.c.bf16 %v566_v54, %v564_v53 }
 0x248   : > { %736 = vmatprep.mubr.bf16.mxu1 %v568_v56 }
 0x249   : > { %737 = vmatmul.mubr.bf16.vlgmr.msra.gmra.mrb[0].mxu1 %v567_v55 }
 0x31c   : > { %v882_v57 = vpop.f32.mrb[0].mxu1 }
 0x31d   : > { %v883_v59 = vpop.f32.mrb[1].mxu1 }
 0x31e   : > { %v884_v60 = vadd.f32 %v883_v59, %v882_v57  ;;  %v885_v61 = vpop.f32.mrb[2].mxu1 }
 0x31f   : > { %v886_v63 = vpop.f32.mrb[3].mxu1 }
 0x320   : > { %v739_v2 = vadd.f32 %v884_v60, %v845_v58  ;;  %v887_v3 = vadd.f32 %v886_v63, %v885_v61 }
 0x322   : > { %v745_v5 = vmul.f32 %v832_v62, %v739_v2  ;;  %v742_v6 = vadd.f32 %v887_v3, %v845_v58 }
 0x324   : > { %v747_v7 = vadd.f32 %v745_v5, %v1007_v0  ;;  %v746_v8 = vmul.f32 %v833_v4, %v742_v6 }
 0x326   : > { %749 = vst.msk [vmem:[%s322_s18] sm:$0xff] %vm373_vm0, %v747_v7  ;;  %v748_v9 = vadd.f32 %v746_v8, %v1009_v1 }
 0x328   : > { %750 = vst.msk [vmem:[%s322_s18 + $0x8] sm:$0xf] %vm377_vm1, %v748_v9 }
 0x329 PF: > { %s18_s27 = sadd.s32 1, %s943_s27  }
 0x32a   : > { %p15_p4 = scmp.ge.s32.totalorder %s18_s27, 4  }
 0x32c   :  { %17 = sbr.rel (!%p15_p4) target bundleno = 1 (0x1), region = 85 }

// kernel: cogvideox_forward.9
= control target key start
LH: loop header
LB: loop body
LE: loop exit
PB: predicated region body
PF: predicated region fallthrough
CT: control target
= control target key end

     0   :  { %s2199_s21 = smov 0   ;;  %s2618_s0 = inlined_call_operand.vmem [shape: f32[2,12,64], index: 0, kind: input, shape index: {}]   ;;  %s2619_s1 = inlined_call_operand.vmem [shape: f32[2,6,64], index: 1, kind: input, shape index: {}]   ;;  %s2620_s2 = inlined_call_operand.vmem [shape: f32[1,64], index: 2, kind: input, shape index: {}]   ;;  %s2621_s3 = inlined_call_operand.vmem [shape: f32[1,64], index: 3, kind: input, shape index: {}]   ;;  %s2622_s4 = inlined_call_operand.vmem [shape: bf16[64,192], index: 4, kind: input, shape index: {}]   ;;  %s2623_s5 = inlined_call_operand.vmem [shape: f32[1,192], index: 5, kind: input, shape index: {}]   ;;  %s2624_s6 = inlined_call_operand.vmem [shape: f32[1,16], index: 6, kind: input, shape index: {}]   ;;  %s2625_s7 = inlined_call_operand.vmem [shape: f32[1,16], index: 7, kind: input, shape index: {}]   ;;  %s2626_s8 = inlined_call_operand.vmem [shape: f32[1,16], index: 8, kind: input, shape index: {}]   ;;  %s2627_s9 = inlined_call_operand.vmem [shape: f32[1,16], index: 9, kind: input, shape index: {}]   ;;  %s2628_s10 = inlined_call_operand.vmem [shape: bf16[64,64], index: 10, kind: input, shape index: {}]   ;;  %s2629_s11 = inlined_call_operand.vmem [shape: f32[1,64], index: 11, kind: input, shape index: {}]   ;;  %s2630_s12 = inlined_call_operand.vmem [shape: f32[2,12,64], index: 12, kind: output, shape index: {}]  }
   0x1 LB: > { %s1864_s22 = sadd.s32 4294967295, %s2122_s21   ;;  %p1868_p0 = scmp.ge.s32.totalorder %s2122_s21, 1  ;;  %s2122_s21 = sphi %s2199_s21, %s22_s21  }
   0x2   : > { %p371_p1 = scmp.lt.s32.totalorder %s2122_s21, 3 }
   0x4   : > { %p372_p2 = pnand %p1868_p0, %p371_p1 }
   0x5   : > { %p417_p3 = scmp.lt.s32.totalorder (!%p372_p2), %s1864_s22, 1  ;;  %vm481_vm0 = vcmask (!%p372_p2), 523264   ;;  %vm485_vm1 = vcmask (!%p372_p2), 519168   ;;  %v2030_v14 = vld [vmem:[%s2622_s4 + $0x4] ss:$8 sps:$4 sm:$0xff] (!%p372_p2)   ;;  %v2124_v21 = vmov (!%p372_p2), 0   ;;  %v543_v50 = vlaneseq (!%p372_p2) }
   0x6   : > { %375 = sbr.rel (%p372_p2) target bundleno = 3807 (0xedf), region = 68  ;;  %v2032_v15 = vld [vmem:[%s2622_s4] ss:$8 sps:$4 sm:$0xff] (!%p372_p2)   ;;  %596 = vmatprep.subr.bf16.mxu0 (!%p372_p2), %v2030_v14  ;;  %v2033_v16 = vld [vmem:[%s2622_s4 + $0x14] ss:$8 sps:$4 sm:$0xff] (!%p372_p2)   ;;  %628 = vmatprep.mubr.bf16.mxu0 (!%p372_p2), %v2124_v21  ;;  %s2125_s24 = smov (!%p372_p2), 64  }
   0x7   : > { %597 = vmatpush1.bf16.msra.mxu0 (!%p372_p2), %v2032_v15  ;;  %v2035_v17 = vld [vmem:[%s2622_s4 + $0x10] ss:$8 sps:$4 sm:$0xff] (!%p372_p2)   ;;  %v2036_v18 = vld [vmem:[%s2622_s4 + $0x24] ss:$8 sps:$4 sm:$0xff] (!%p372_p2)   ;;  %v2038_v19 = vld [vmem:[%s2622_s4 + $0x20] ss:$8 sps:$4 sm:$0xff] (!%p372_p2)  }
   0x8   : > { %598 = vmatprep.subr.bf16.mxu0 (!%p372_p2), %v2033_v16  ;;  %v2039_v20 = vld [vmem:[%s2622_s4 + $0x34] ss:$8 sps:$4 sm:$0xff] (!%p372_p2)   ;;  %v2041_v22 = vld [vmem:[%s2622_s4 + $0x30] ss:$8 sps:$4 sm:$0xff] (!%p372_p2)   ;;  %v1880_v30 = vld [vmem:[%s2620_s2] ss:$0 sm:$0xff] (!%p372_p2) }
   0x9   : > { %v1881_v33 = vld [vmem:[%s2621_s3] ss:$0 sm:$0xff] (!%p372_p2)  ;;  %v544_v51 = vshrl.u32 (!%p372_p2), %v543_v50, 7  ;;  %s2126_s25 = smov (!%p372_p2), 112   ;;  %s2127_s27 = smov (!%p372_p2), 48   ;;  %vm641_vm2 = vcmask (!%p372_p2), 130048  }
   0xa   : > { %v541_v53 = vld [vmem:[%s2623_s5] sm:$0x3] (!%p372_p2)  ;;  %vm645_vm3 = vcmask (!%p372_p2), 125952   ;;  %s2128_s15 = smov (!%p372_p2), 80   ;;  %s2129_s18 = smov (!%p372_p2), 16   ;;  %vm2131_vm4 = vmmov (!%p372_p2), 0  }
   0xb   : > { %599 = vmatpush1.bf16.msra.mxu0 (!%p372_p2), %v2035_v17  ;;  %v545_v52 = vsub.s32 (!%p372_p2), 0, %v544_v51  ;;  %v549_v54 = vsub.s32 (!%p372_p2), 1, %v544_v51  ;;  %vm833_vm5 = vcmask (!%p372_p2), 1045504   ;;  %vm804_vm6 = vcmask (!%p372_p2), 97280   ;;  %s2133_s28 = smov (!%p372_p2), 96  }
   0xc   : > { %600 = vmatprep.subr.bf16.mxu0 (!%p372_p2), %v2036_v18  ;;  %vm808_vm7 = vcmask (!%p372_p2), 93184  }
   0xd   : > { %s2632_s22 = smov (!%p417_p3, %s1864_s22), 1  ;;  %v546_v55 = vrot.slane %v541_v53, %v545_v52  ;;  %v550_v57 = vrot.slane %v541_v53, %v549_v54  ;;  %v2357_v53 = vld [vmem:[%s2624_s6] ss:$0 sm:$0xff] }
   0xe   : > { %s1914_s23 = sshll.u32 %s2632_s22, 4  ;;  %s1871_s29 = sshll.u32 %s2632_s22, 3 }
   0xf   : > { %s2215_s26 = scalar_lea.vmem %s2618_s0, %s1914_s23  ;;  %601 = vmatpush1.bf16.msra.mxu0 %v2038_v19  ;;  %s2251_s14 = scalar_lea.vmem %s2619_s1, %s1871_s29 }
  0x10   : > { %v432_v0 = vld [vmem:[%s2215_s26] sm:$0xff]  ;;  %v433_v1 = vld [vmem:[%s2215_s26 + $0x8] sm:$0xf]  ;;  %602 = vmatprep.subr.bf16.mxu0 %v2039_v20 }
  0x11   : > { %v482_v2 = vsel %vm481_vm0, %v432_v0, 0.0  ;;  %v486_v3 = vsel %vm485_vm1, %v433_v1, 0.0  ;;  %v1876_v32 = vld [vmem:[%s2251_s14 + $0x4] ss:$0 sm:$0xff]  ;;  %v1877_v36 = vld [vmem:[%s2251_s14 + $0x1] ss:$0 sm:$0xff] }
  0x12   : > { %483 = vadd.xlane.f32.xlu0 %v482_v2  ;;  %v526_v39 = vadd.f32 1.0, %v1876_v32  ;;  %v527_v41 = vadd.f32 1.0, %v1877_v36  ;;  %v1874_v44 = vld [vmem:[%s2251_s14 + $0x3] ss:$0 sm:$0xff]  ;;  %v1875_v45 = vld [vmem:[%s2251_s14] ss:$0 sm:$0xff] }
  0x13   : > { %603 = vmatpush1.bf16.msra.mxu0 %v2041_v22 }
  0x16   : > { %487 = vadd.xlane.f32.xlu0 %v486_v3 }
  0x9f   : > { %v484_v4 = vpop.xlane.xlu0 %483 }
  0xa0   : > { %v490_v5 = vmul.f32 0.015625, %v484_v4 }
  0xa2   : > { %v492_v6 = vsub.f32 %v432_v0, %v490_v5 }
  0xa3   : > { %v488_v7 = vpop.xlane.xlu0 %487 }
  0xa4   : > { %v491_v8 = vmul.f32 0.015625, %v488_v7  ;;  %v494_v9 = vmul.f32 %v492_v6, %v492_v6 }
  0xa6   : > { %v493_v10 = vsub.f32 %v433_v1, %v491_v8  ;;  %v496_v11 = vsel %vm481_vm0, %v494_v9, 0.0 }
  0xa7   : > { %497 = vadd.xlane.f32.xlu1 %v496_v11 }
  0xa8   : > { %v495_v12 = vmul.f32 %v493_v10, %v493_v10 }
  0xaa   : > { %v499_v13 = vsel %vm485_vm1, %v495_v12, 0.0 }
  0xab   : > { %500 = vadd.xlane.f32.xlu1 %v499_v13 }
 0x134   : > { %v498_v23 = vpop.xlane.xlu1 %497 }
 0x135   : > { %v502_v24 = vmul.f32 0.015625, %v498_v23 }
 0x137   : > { %v504_v25 = vadd.f32 1e-05, %v502_v24 }
 0x138   : > { %v501_v26 = vpop.xlane.xlu1 %500 }
 0x139   : > { %2046 = vrsqrt.f32 %v504_v25  ;;  %v503_v27 = vmul.f32 0.015625, %v501_v26 }
 0x13b   : > { %v505_v28 = vadd.f32 1e-05, %v503_v27 }
 0x13d   : > { %2048 = vrsqrt.f32 %v505_v28 }
 0x143   : > { %v2047_v29 = vpop.eup %2046 }
 0x144   : > { %v508_v31 = vmul.f32 %v2047_v29, %v492_v6 }
 0x146   : > { %v516_v34 = vmul.f32 %v1880_v30, %v508_v31 }
 0x147   : > { %v2049_v35 = vpop.eup %2048 }
 0x148   : > { %v509_v37 = vmul.f32 %v2049_v35, %v493_v10  ;;  %v524_v38 = vadd.f32 %v1881_v33, %v516_v34 }
 0x14a   : > { %v517_v40 = vmul.f32 %v1880_v30, %v509_v37  ;;  %v528_v43 = vmul.f32 %v526_v39, %v524_v38 }
 0x14c   : > { %v525_v42 = vadd.f32 %v1881_v33, %v517_v40  ;;  %v530_v47 = vadd.f32 %v1874_v44, %v528_v43  ;;  %v2334_v40 = vld [vmem:[%s2627_s9] ss:$0 sm:$0xff] }
 0x14e   : > { %v529_v46 = vmul.f32 %v527_v41, %v525_v42  ;;  %v2341_v41 = vld [vmem:[%s2626_s8] ss:$0 sm:$0xff] }
 0x150   : > { %v531_v48 = vadd.f32 %v1875_v45, %v529_v46 }
 0x152   : > { %v532_v49 = vpack.c.bf16 %v531_v48, %v530_v47 }
 0x154   : > { %1890 = vmatmul.mubr.msk.bf16.vlgmr.msra.gmra.mrb[0].mxu0 %vm481_vm0, %v532_v49 }
 0x227   : > { %v630_v56 = vpop.f32.mrb[0].mxu0 }
 0x228   : > { %v2267_v58 = vadd.f32 %v630_v56, %v546_v55  ;;  %v632_v59 = vpop.f32.mrb[1].mxu0 }
 0x229   : > { %v634_v60 = vpop.f32.mrb[2].mxu0  ;;  %v633_v63 = vadd.f32 %v632_v59, %v550_v57 }
 0x22a   : > { %v2269_v61 = vadd.f32 %v634_v60, %v546_v55  ;;  %v636_v62 = vpop.f32.mrb[3].mxu0  ;;  %690 = vrot.lane.b32.xlu0 %v2267_v58, %s2125_s24  ;;  %v642_v28 = vsel %vm641_vm2, %v2267_v58, 0.0 }
 0x22b   : > { %v637_v0 = vadd.f32 %v636_v62, %v550_v57 }
 0x22c   : > { %692 = vrot.lane.b32.xlu1 %v2269_v61, %s2125_s24  ;;  %v646_v27 = vsel %vm645_vm3, %v2269_v61, 0.0 }
 0x22d   : > { %v2275_v1 = vpack.c.bf16 %v637_v0, %v633_v63  ;;  %v2371_v63 = vld [vmem:[%s2625_s7] ss:$0 sm:$0xff] }
 0x22e   : > { %881 = vrot.lane.b32.xlu0 %v2267_v58, %s2126_s25 }
 0x230   : > { %931 = vrot.lane.b32.xlu1 %v2267_v58, %s2127_s27 }
 0x234   : > { %933 = vrot.lane.b32.xlu1 %v2269_v61, %s2127_s27 }
 0x238   : > { %883 = vrot.lane.b32.xlu1 %v2269_v61, %s2126_s25 }
 0x29c   : > { %v691_v2 = vpop.permute.xlu0 %690 }
 0x29d   : > { %v696_v3 = vsel %vm641_vm2, %v691_v2, 0.0 }
 0x29e   : > { %v693_v4 = vpop.permute.xlu1 %692  ;;  %697 = vadd.xlane.f32.xlu0 %v696_v3 }
 0x29f   : > { %v699_v5 = vsel %vm645_vm3, %v693_v4, 0.0 }
 0x2a0   : > { %700 = vadd.xlane.f32.xlu1 %v699_v5  ;;  %v882_v10 = vpop.permute.xlu0 %881 }
 0x2a1   : > { %v887_v13 = vsel %vm641_vm2, %v882_v10, 0.0 }
 0x2a2   : > { %v932_v6 = vpop.permute.xlu1 %931 }
 0x2a3   : > { %v937_v7 = vsel %vm641_vm2, %v932_v6, 0.0 }
 0x2a4   : > { %938 = vadd.xlane.f32.xlu0 %v937_v7 }
 0x2a6   : > { %v934_v8 = vpop.permute.xlu1 %933 }
 0x2a7   : > { %v940_v9 = vsel %vm645_vm3, %v934_v8, 0.0 }
 0x2a8   : > { %941 = vadd.xlane.f32.xlu0 %v940_v9 }
 0x2aa   : > { %v884_v11 = vpop.permute.xlu1 %883 }
 0x2ab   : > { %v890_v12 = vsel %vm645_vm3, %v884_v11, 0.0 }
 0x2ac   : > { %891 = vadd.xlane.f32.xlu1 %v890_v12  ;;  %888 = vadd.xlane.f32.xlu0 %v887_v13 }
 0x32b   : > { %v698_v14 = vpop.xlane.xlu0 %697 }
 0x32c   : > { %v702_v15 = vmul.f32 0.0625, %v698_v14 }
 0x32d   : > { %v701_v29 = vpop.xlane.xlu1 %700 }
 0x32e   : > { %v2292_v16 = vsub.f32 %v2267_v58, %v702_v15  ;;  %v703_v30 = vmul.f32 0.0625, %v701_v29 }
 0x330   : > { %v706_v17 = vmul.f32 %v2292_v16, %v2292_v16  ;;  %v2314_v31 = vsub.f32 %v2269_v61, %v703_v30 }
 0x331   : > { %v939_v18 = vpop.xlane.xlu0 %938 }
 0x332   : > { %v943_v19 = vmul.f32 0.0625, %v939_v18  ;;  %710 = vrot.lane.b32.xlu0 %v706_v17, %s2125_s24  ;;  %v707_v36 = vmul.f32 %v2314_v31, %v2314_v31 }
 0x334   : > { %v2298_v20 = vsub.f32 %v2267_v58, %v943_v19 }
 0x335   : > { %v942_v21 = vpop.xlane.xlu0 %941 }
 0x336   : > { %v947_v22 = vmul.f32 %v2298_v20, %v2298_v20  ;;  %v944_v32 = vmul.f32 0.0625, %v942_v21 }
 0x338   : > { %951 = vrot.lane.b32.xlu1 %v947_v22, %s2127_s27  ;;  %v2317_v34 = vsub.f32 %v2269_v61, %v944_v32 }
 0x339   : > { %v889_v23 = vpop.xlane.xlu0 %888  ;;  %v892_v33 = vpop.xlane.xlu1 %891 }
 0x33a   : > { %v893_v24 = vmul.f32 0.0625, %v889_v23  ;;  %v894_v35 = vmul.f32 0.0625, %v892_v33  ;;  %v948_v38 = vmul.f32 %v2317_v34, %v2317_v34  ;;  %v2130_v23 = vmov 0.0  }
 0x33b   : > { %1940 = vmatprep.subr.bf16.mxu1 %v2130_v23  ;;  %1952 = vmatprep.subr.bf16.mxu0 %v2130_v23 }
 0x33c   : > { %v2304_v25 = vsub.f32 %v2267_v58, %v893_v24  ;;  %v2323_v37 = vsub.f32 %v2269_v61, %v894_v35  ;;  %1942 = vmatprep.mubr.msk.bf16.mxu1 %vm2131_vm4, %v2130_v23  ;;  %1954 = vmatprep.mubr.msk.bf16.mxu0 %vm2131_vm4, %v2130_v23 }
 0x33e   : > { %v897_v26 = vmul.f32 %v2304_v25, %v2304_v25  ;;  %v898_v39 = vmul.f32 %v2323_v37, %v2323_v37 }
 0x340   : > { %901 = vrot.lane.b32.xlu0 %v897_v26, %s2126_s25 }
 0x35c   : > { %647 = vadd.xlane.f32.xlu1 %v646_v27 }
 0x35f   : > { %643 = vadd.xlane.f32.xlu0 %v642_v28 }
 0x36d   : > { %712 = vrot.lane.b32.xlu1 %v707_v36, %s2125_s24 }
 0x371   : > { %953 = vrot.lane.b32.xlu1 %v948_v38, %s2127_s27 }
 0x375   : > { %903 = vrot.lane.b32.xlu1 %v898_v39, %s2126_s25 }
 0x379   : > { %745 = vrot.lane.b32.xlu1 %v2334_v40, %s2125_s24 }
 0x37d   : > { %971 = vrot.lane.b32.xlu1 %v2341_v41, %s2128_s15 }
 0x3a4   : > { %v711_v42 = vpop.permute.xlu0 %710 }
 0x3a5   : > { %v716_v43 = vsel %vm641_vm2, %v711_v42, 0.0 }
 0x3a6   : > { %717 = vadd.xlane.f32.xlu0 %v716_v43 }
 0x3aa   : > { %v952_v44 = vpop.permute.xlu1 %951 }
 0x3ab   : > { %v957_v45 = vsel %vm641_vm2, %v952_v44, 0.0 }
 0x3ac   : > { %958 = vadd.xlane.f32.xlu0 %v957_v45 }
 0x3b2   : > { %v902_v46 = vpop.permute.xlu0 %901 }
 0x3b3   : > { %v907_v47 = vsel %vm641_vm2, %v902_v46, 0.0 }
 0x3b4   : > { %908 = vadd.xlane.f32.xlu0 %v907_v47 }
 0x3e9   : > { %v648_v48 = vpop.xlane.xlu1 %647 }
 0x3ea   : > { %v651_v0 = vmul.f32 0.0625, %v648_v48 }
 0x3ec   : > { %v644_v54 = vpop.xlane.xlu0 %643  ;;  %v2376_v2 = vsub.f32 %v2269_v61, %v651_v0 }
 0x3ed   : > { %v713_v49 = vpop.permute.xlu1 %712  ;;  %v650_v55 = vmul.f32 0.0625, %v644_v54 }
 0x3ee   : > { %v719_v50 = vsel %vm645_vm3, %v713_v49, 0.0  ;;  %v655_v3 = vmul.f32 %v2376_v2, %v2376_v2 }
 0x3ef   : > { %720 = vadd.xlane.f32.xlu0 %v719_v50  ;;  %v2362_v56 = vsub.f32 %v2267_v58, %v650_v55 }
 0x3f0   : > { %v659_v4 = vsel %vm645_vm3, %v655_v3, 0.0 }
 0x3f1   : > { %v954_v51 = vpop.permute.xlu1 %953  ;;  %v654_v57 = vmul.f32 %v2362_v56, %v2362_v56 }
 0x3f2   : > { %v960_v52 = vsel %vm645_vm3, %v954_v51, 0.0 }
 0x3f3   : > { %961 = vadd.xlane.f32.xlu1 %v960_v52  ;;  %v656_v62 = vsel %vm641_vm2, %v654_v57, 0.0 }
 0x3f5   : > { %v904_v59 = vpop.permute.xlu1 %903 }
 0x3f6   : > { %v910_v60 = vsel %vm645_vm3, %v904_v59, 0.0 }
 0x3f9   : > { %v746_v8 = vpop.permute.xlu1 %745 }
 0x3fd   : > { %v972_v13 = vpop.permute.xlu1 %971 }
 0x404   : > { %976 = vrot.lane.b32.xlu1 %v2334_v40, %s2128_s15 }
 0x405   : > { %735 = vrot.lane.b32.xlu0 %v2341_v41, %s2125_s24 }
 0x409   : > { %921 = vrot.lane.b32.xlu0 %v2357_v53, %s2129_s18 }
 0x428   : > { %911 = vadd.xlane.f32.xlu1 %v910_v60  ;;  %657 = vadd.xlane.f32.xlu0 %v656_v62 }
 0x433   : > { %v718_v5 = vpop.xlane.xlu0 %717 }
 0x434   : > { %v722_v7 = vmul.f32 0.0625, %v718_v5 }
 0x436   : > { %v724_v11 = vadd.f32 1e-05, %v722_v7 }
 0x438   : > { %2050 = vrsqrt.f32 %v724_v11 }
 0x439   : > { %926 = vrot.lane.b32.xlu1 %v2371_v63, %s2129_s18  ;;  %v959_v6 = vpop.xlane.xlu0 %958 }
 0x43a   : > { %v963_v9 = vmul.f32 0.0625, %v959_v6 }
 0x43c   : > { %v965_v12 = vadd.f32 1e-05, %v963_v9 }
 0x43e   : > { %2052 = vrsqrt.f32 %v965_v12 }
 0x441   : > { %v909_v10 = vpop.xlane.xlu0 %908 }
 0x442   : > { %v2051_v22 = vpop.eup %2050  ;;  %v913_v47 = vmul.f32 0.0625, %v909_v10 }
 0x443   : > { %v728_v27 = vmul.f32 %v2051_v22, %v2292_v16 }
 0x444   : > { %v915_v48 = vadd.f32 1e-05, %v913_v47 }
 0x448   : > { %v2053_v26 = vpop.eup %2052 }
 0x449   : > { %v969_v32 = vmul.f32 %v2053_v26, %v2298_v20 }
 0x44b   : > { %v974_v42 = vmul.f32 %v972_v13, %v969_v32 }
 0x45d   : > { %660 = vadd.xlane.f32.xlu1 %v659_v4 }
 0x47c   : > { %v721_v14 = vpop.xlane.xlu0 %720 }
 0x47d   : > { %v723_v15 = vmul.f32 0.0625, %v721_v14 }
 0x47f   : > { %v725_v17 = vadd.f32 1e-05, %v723_v15 }
 0x480   : > { %v962_v18 = vpop.xlane.xlu1 %961  ;;  %v736_v24 = vpop.permute.xlu0 %735 }
 0x481   : > { %2054 = vrsqrt.f32 %v725_v17  ;;  %v964_v19 = vmul.f32 0.0625, %v962_v18  ;;  %v738_v30 = vmul.f32 %v736_v24, %v728_v27 }
 0x483   : > { %v966_v21 = vadd.f32 1e-05, %v964_v19  ;;  %v748_v36 = vadd.f32 %v746_v8, %v738_v30 }
 0x484   : > { %v977_v16 = vpop.permute.xlu1 %976  ;;  %v922_v52 = vpop.permute.xlu0 %921 }
 0x485   : > { %2056 = vrsqrt.f32 %v966_v21  ;;  %v979_v44 = vadd.f32 %v977_v16, %v974_v42 }
 0x486   : > { %2058 = vrsqrt.f32 %v915_v48 }
 0x48b   : > { %v2055_v28 = vpop.eup %2054 }
 0x48c   : > { %v729_v29 = vmul.f32 %v2055_v28, %v2314_v31 }
 0x48e   : > { %v739_v33 = vmul.f32 %v736_v24, %v729_v29 }
 0x48f   : > { %v2057_v35 = vpop.eup %2056 }
 0x490   : > { %v749_v38 = vadd.f32 %v746_v8, %v739_v33  ;;  %v970_v39 = vmul.f32 %v2057_v35, %v2317_v34  ;;  %v2059_v51 = vpop.eup %2058 }
 0x491   : > { %v919_v54 = vmul.f32 %v2059_v51, %v2304_v25 }
 0x492   : > { %v975_v43 = vmul.f32 %v972_v13, %v970_v39  ;;  %v751_v31 = vpack.c.bf16 %v749_v38, %v748_v36 }
 0x493   : > { %v924_v59 = vmul.f32 %v922_v52, %v919_v54 }
 0x494   : > { %v980_v45 = vadd.f32 %v977_v16, %v975_v43  ;;  %753 = vrot.lane.b32.xlu0 %v751_v31, %s2125_s24  ;;  %s2132_s24 = smov 32  }
 0x496   : > { %v982_v46 = vpack.c.bf16 %v980_v45, %v979_v44 }
 0x498   : > { %987 = vrot.lane.b32.xlu1 %v982_v46, %s2127_s27 }
 0x4b5   : > { %v912_v20 = vpop.xlane.xlu1 %911  ;;  %v658_v5 = vpop.xlane.xlu0 %657 }
 0x4b6   : > { %v914_v49 = vmul.f32 0.0625, %v912_v20  ;;  %v662_v7 = vmul.f32 0.0625, %v658_v5 }
 0x4b8   : > { %v916_v50 = vadd.f32 1e-05, %v914_v49  ;;  %v664_v9 = vadd.f32 1e-05, %v662_v7 }
 0x4b9   : > { %v927_v57 = vpop.permute.xlu1 %926 }
 0x4ba   : > { %2060 = vrsqrt.f32 %v916_v50  ;;  %v929_v62 = vadd.f32 %v927_v57, %v924_v59 }
 0x4c4   : > { %v2061_v34 = vpop.eup %2060 }
 0x4c5   : > { %v920_v55 = vmul.f32 %v2061_v34, %v2323_v37 }
 0x4c7   : > { %v925_v60 = vmul.f32 %v922_v52, %v920_v55 }
 0x4c9   : > { %v930_v0 = vadd.f32 %v927_v57, %v925_v60 }
 0x4cb   : > { %v981_v3 = vpack.c.bf16 %v930_v0, %v929_v62 }
 0x4cd   : > { %984 = vrot.lane.b32.xlu0 %v981_v3, %s2126_s25 }
 0x4ea   : > { %v661_v4 = vpop.xlane.xlu1 %660 }
 0x4eb   : > { %v663_v6 = vmul.f32 0.0625, %v661_v4 }
 0x4ed   : > { %v665_v8 = vadd.f32 1e-05, %v663_v6 }
 0x4ef   : > { %2062 = vrsqrt.f32 %v665_v8 }
 0x4f0   : > { %2064 = vrsqrt.f32 %v664_v9 }
 0x4f9   : > { %v2063_v10 = vpop.eup %2062 }
 0x4fa   : > { %v2065_v25 = vpop.eup %2064  ;;  %v669_v37 = vmul.f32 %v2063_v10, %v2376_v2  ;;  %v835_v2 = vsel %vm833_vm5, %v2275_v1, 0 }
 0x4fb   : > { %v668_v11 = vmul.f32 %v2065_v25, %v2362_v56 }
 0x4fc   : > { %v677_v12 = vmul.f32 %v2357_v53, %v669_v37 }
 0x4fd   : > { %v676_v15 = vmul.f32 %v2357_v53, %v668_v11 }
 0x4fe   : > { %v685_v17 = vadd.f32 %v2371_v63, %v677_v12 }
 0x4ff   : > { %v684_v21 = vadd.f32 %v2371_v63, %v676_v15 }
 0x501   : > { %v750_v56 = vpack.c.bf16 %v685_v17, %v684_v21 }
 0x506   : > { %v754_v13 = vpop.permute.xlu0 %753 }
 0x507   : > { %v759_v14 = vsel %vm641_vm2, %v754_v13, 0 }
 0x508   : > { %1941 = vmatpush3.bf16.xpose.msra.mxu1 %v759_v14 }
 0x509   : > { %1946 = vmatprep.subr.bf16.mxu1 %v2130_v23 }
 0x50a   : > { %v988_v18 = vpop.permute.xlu1 %987 }
 0x50b   : > { %v993_v19 = vsel %vm641_vm2, %v988_v18, 0 }
 0x50c   : > { %1953 = vmatpush3.bf16.xpose.msra.mxu0 %v993_v19 }
 0x50d   : > { %1964 = vmatprep.subr.bf16.mxu0 %v2130_v23 }
 0x50f   : > { %1943 = vmatmul.mubr.msk.bf16.vlgmr.msra.gmra.mrb[0].mxu1 %vm641_vm2, %v750_v56 }
 0x510   : > { %1947 = vmatpush3.bf16.msra.mxu1 %v835_v2  ;;  %1948 = vmatprep.mubr.msk.bf16.mxu1 %vm2131_vm4, %v2130_v23 }
 0x511   : > { %1958 = vmatprep.subr.bf16.mxu1 %v2130_v23 }
 0x53f   : > { %v985_v22 = vpop.permute.xlu0 %984 }
 0x540   : > { %1955 = vmatmul.mubr.msk.bf16.vlgmr.msra.gmra.mrb[4].mxu0 %vm641_vm2, %v985_v22 }
 0x541   : > { %1966 = vmatprep.mubr.msk.bf16.mxu0 %vm2131_vm4, %v2130_v23 }
 0x5e2   : > { %v795_v24 = vpop.f32.mrb[0].mxu1 }
 0x5e3   : > { %v802_v26 = vmul.f32 0.25, %v795_v24  ;;  %v1944_v27 = vpop.f32.mrb[1].mxu1 }
 0x5e4   : > { %v798_v28 = vpop.f32.mrb[2].mxu1 }
 0x5e5   : > { %v803_v29 = vmul.f32 0.25, %v798_v28  ;;  %v1945_v30 = vpop.f32.mrb[3].mxu1  ;;  %v805_v32 = vsel %vm804_vm6, %v802_v26, -inf }
 0x5e6   : > { %806 = vmax.xlane.f32.xlu1 %v805_v32 }
 0x5e7   : > { %v809_v33 = vsel %vm808_vm7, %v803_v29, -inf }
 0x5e8   : > { %810 = vmax.xlane.f32.xlu0 %v809_v33 }
 0x5f7   : > { %1264 = vrot.lane.b32.xlu1 %v2267_v58, %s2132_s24 }
 0x5fb   : > { %1214 = vrot.lane.b32.xlu1 %v2267_v58, %s2133_s28 }
 0x5ff   : > { %1216 = vrot.lane.b32.xlu1 %v2269_v61, %s2133_s28 }
 0x613   : > { %v1029_v35 = vpop.f32.mrb[4].mxu0 }
 0x614   : > { %v1036_v36 = vmul.f32 0.25, %v1029_v35  ;;  %v1956_v38 = vpop.f32.mrb[5].mxu0 }
 0x615   : > { %v1032_v39 = vpop.f32.mrb[6].mxu0 }
 0x616   : > { %v1037_v16 = vmul.f32 0.25, %v1032_v39  ;;  %v1957_v42 = vpop.f32.mrb[7].mxu0  ;;  %v1038_v43 = vsel %vm804_vm6, %v1036_v36, -inf }
 0x617   : > { %1039 = vmax.xlane.f32.xlu0 %v1038_v43 }
 0x618   : > { %v1041_v31 = vsel %vm808_vm7, %v1037_v16, -inf }
 0x61b   : > { %1042 = vmax.xlane.f32.xlu0 %v1041_v31 }
 0x631   : > { %1266 = vrot.lane.b32.xlu0 %v2269_v61, %s2132_s24 }
 0x673   : > { %v807_v44 = vpop.xlane.xlu1 %806 }
 0x674   : > { %v812_v45 = vsub.f32 %v802_v26, %v807_v44 }
 0x675   : > { %v811_v46 = vpop.xlane.xlu0 %810 }
 0x676   : > { %v814_v47 = vmul.f32 1.442695, %v812_v45  ;;  %v813_v48 = vsub.f32 %v803_v29, %v811_v46 }
 0x677   : > { %v1265_v50 = vpop.permute.xlu1 %1264 }
 0x678   : > { %2066 = vpow2.f32 %v814_v47  ;;  %v816_v20 = vmul.f32 1.442695, %v813_v48  ;;  %v1270_v54 = vsel %vm641_vm2, %v1265_v50, 0.0  ;;  %v2042_v48 = vld [vmem:[%s2628_s10] sm:$0xff]   ;;  %v2043_v50 = vld [vmem:[%s2628_s10 + $0x8] sm:$0xff]  }
 0x679   : > { %1965 = vmatpush3.bf16.msra.mxu0 %v2043_v50 }
 0x67a   : > { %2068 = vpow2.f32 %v816_v20  ;;  %1976 = vmatprep.subr.bf16.mxu0 %v2130_v23 }
 0x67b   : > { %v1215_v55 = vpop.permute.xlu1 %1214 }
 0x67c   : > { %v1220_v57 = vsel %vm641_vm2, %v1215_v55, 0.0 }
 0x67f   : > { %v1217_v25 = vpop.permute.xlu1 %1216 }
 0x680   : > { %v1223_v37 = vsel %vm645_vm3, %v1217_v25, 0.0 }
 0x682   : > { %v2067_v49 = vpop.eup %2066 }
 0x683   : > { %v818_v51 = vsel %vm804_vm6, %v2067_v49, 0.0 }
 0x684   : > { %v2069_v34 = vpop.eup %2068  ;;  %819 = vadd.xlane.f32.xlu1 %v818_v51 }
 0x685   : > { %v821_v52 = vsel %vm808_vm7, %v2069_v34, 0.0 }
 0x686   : > { %822 = vadd.xlane.f32.xlu0 %v821_v52 }
 0x688   : > { %1271 = vadd.xlane.f32.xlu1 %v1270_v54 }
 0x68c   : > { %1221 = vadd.xlane.f32.xlu1 %v1220_v57 }
 0x69d   : > { %1062 = vrot.lane.b32.xlu1 %v2275_v1, %s2126_s25 }
 0x6a4   : > { %v1040_v59 = vpop.xlane.xlu0 %1039 }
 0x6a5   : > { %v1044_v60 = vsub.f32 %v1036_v36, %v1040_v59 }
 0x6a7   : > { %v1046_v62 = vmul.f32 1.442695, %v1044_v60 }
 0x6a8   : > { %v1043_v0 = vpop.xlane.xlu0 %1042 }
 0x6a9   : > { %2070 = vpow2.f32 %v1046_v62  ;;  %v1045_v3 = vsub.f32 %v1037_v16, %v1043_v0 }
 0x6ab   : > { %v1048_v4 = vmul.f32 1.442695, %v1045_v3 }
 0x6ac   : > { %v1267_v9 = vpop.permute.xlu0 %1266 }
 0x6ad   : > { %2072 = vpow2.f32 %v1048_v4  ;;  %v1273_v10 = vsel %vm645_vm3, %v1267_v9, 0.0 }
 0x6b3   : > { %v2071_v5 = vpop.eup %2070 }
 0x6b4   : > { %v1050_v6 = vsel %vm804_vm6, %v2071_v5, 0.0 }
 0x6b5   : > { %1051 = vadd.xlane.f32.xlu0 %v1050_v6 }
 0x6b7   : > { %v2073_v7 = vpop.eup %2072 }
 0x6b8   : > { %v1053_v8 = vsel %vm808_vm7, %v2073_v7, 0.0 }
 0x6b9   : > { %1054 = vadd.xlane.f32.xlu0 %v1053_v8 }
 0x6bd   : > { %1274 = vadd.xlane.f32.xlu0 %v1273_v10 }
 0x6c1   : > { %1224 = vadd.xlane.f32.xlu0 %v1223_v37 }
 0x711   : > { %v820_v11 = vpop.xlane.xlu1 %819 }
 0x712   : > { %2074 = vrcp.f32 %v820_v11 }
 0x713   : > { %v823_v12 = vpop.xlane.xlu0 %822 }
 0x714   : > { %2076 = vrcp.f32 %v823_v12 }
 0x715   : > { %v1272_v13 = vpop.xlane.xlu1 %1271 }
 0x716   : > { %v1276_v14 = vmul.f32 0.0625, %v1272_v13 }
 0x718   : > { %v2438_v15 = vsub.f32 %v2267_v58, %v1276_v14 }
 0x719   : > { %v1222_v17 = vpop.xlane.xlu1 %1221 }
 0x71a   : > { %v1280_v18 = vmul.f32 %v2438_v15, %v2438_v15  ;;  %v1226_v30 = vmul.f32 0.0625, %v1222_v17 }
 0x71c   : > { %v2075_v19 = vpop.eup %2074  ;;  %1284 = vrot.lane.b32.xlu0 %v1280_v18, %s2132_s24  ;;  %v2452_v38 = vsub.f32 %v2267_v58, %v1226_v30 }
 0x71d   : > { %v826_v56 = vmul.f32 %v2075_v19, %v2067_v49  ;;  %v1063_v22 = vpop.permute.xlu1 %1062 }
 0x71e   : > { %v2077_v21 = vpop.eup %2076  ;;  %v1068_v26 = vsel %vm833_vm5, %v1063_v22, 0  ;;  %v1230_v45 = vmul.f32 %v2452_v38, %v2452_v38 }
 0x71f   : > { %v827_v2 = vmul.f32 %v2077_v21, %v2069_v34 }
 0x721   : > { %v828_v24 = vpack.c.bf16 %v827_v2, %v826_v56 }
 0x723   : > { %1949 = vmatmul.mubr.msk.bf16.vlgmr.msra.gmra.mrb[4].mxu1 %vm804_vm6, %v828_v24 }
 0x724   : > { %1959 = vmatpush3.bf16.msra.mxu1 %v1068_v26  ;;  %1960 = vmatprep.mubr.msk.bf16.mxu1 %vm2131_vm4, %v2130_v23 }
 0x725   : > { %1970 = vmatprep.subr.bf16.mxu1 %v2130_v23 }
 0x742   : > { %v1052_v27 = vpop.xlane.xlu0 %1051 }
 0x743   : > { %2078 = vrcp.f32 %v1052_v27 }
 0x746   : > { %v1055_v28 = vpop.xlane.xlu0 %1054 }
 0x747   : > { %2080 = vrcp.f32 %v1055_v28 }
 0x74a   : > { %v1275_v29 = vpop.xlane.xlu0 %1274 }
 0x74b   : > { %v1277_v32 = vmul.f32 0.0625, %v1275_v29 }
 0x74d   : > { %v2449_v33 = vsub.f32 %v2269_v61, %v1277_v32  ;;  %v2079_v36 = vpop.eup %2078 }
 0x74e   : > { %v1225_v35 = vpop.xlane.xlu0 %1224  ;;  %v1058_v43 = vmul.f32 %v2079_v36, %v2071_v5 }
 0x74f   : > { %v1227_v39 = vmul.f32 0.0625, %v1225_v35  ;;  %v1281_v16 = vmul.f32 %v2449_v33, %v2449_v33 }
 0x751   : > { %v2081_v42 = vpop.eup %2080  ;;  %1286 = vrot.lane.b32.xlu1 %v1281_v16, %s2132_s24  ;;  %v2458_v44 = vsub.f32 %v2269_v61, %v1227_v39 }
 0x752   : > { %v1059_v31 = vmul.f32 %v2081_v42, %v2073_v7 }
 0x753   : > { %v1231_v47 = vmul.f32 %v2458_v44, %v2458_v44 }
 0x754   : > { %v1060_v46 = vpack.c.bf16 %v1059_v31, %v1058_v43 }
 0x755   : > { %1234 = vrot.lane.b32.xlu1 %v1230_v45, %s2133_s28 }
 0x756   : > { %1961 = vmatmul.mubr.msk.bf16.vlgmr.msra.gmra.mrb[8].mxu1 %vm804_vm6, %v1060_v46 }
 0x757   : > { %1972 = vmatprep.mubr.msk.bf16.mxu1 %vm2131_vm4, %v2130_v23  ;;  %1971 = vmatpush3.bf16.msra.mxu1 %v2042_v48 }
 0x758   : > { %1982 = vmatprep.subr.bf16.mxu1 %v2130_v23 }
 0x759   : > { %1236 = vrot.lane.b32.xlu1 %v1231_v47, %s2133_s28 }
 0x78e   : > { %v1285_v20 = vpop.permute.xlu0 %1284 }
 0x78f   : > { %v1290_v49 = vsel %vm641_vm2, %v1285_v20, 0.0 }
 0x790   : > { %1291 = vadd.xlane.f32.xlu0 %v1290_v49 }
 0x7c3   : > { %v1287_v51 = vpop.permute.xlu1 %1286 }
 0x7c4   : > { %v1293_v34 = vsel %vm645_vm3, %v1287_v51, 0.0 }
 0x7c5   : > { %1294 = vadd.xlane.f32.xlu1 %v1293_v34 }
 0x7c7   : > { %v1235_v52 = vpop.permute.xlu1 %1234 }
 0x7c8   : > { %v1240_v54 = vsel %vm641_vm2, %v1235_v52, 0.0 }
 0x7c9   : > { %1241 = vadd.xlane.f32.xlu0 %v1240_v54 }
 0x7cb   : > { %v1237_v55 = vpop.permute.xlu1 %1236 }
 0x7cc   : > { %v1243_v57 = vsel %vm645_vm3, %v1237_v55, 0.0 }
 0x7cd   : > { %1244 = vadd.xlane.f32.xlu0 %v1243_v57 }
 0x7d6   : > { %1309 = vrot.lane.b32.xlu1 %v2334_v40, %s2133_s28 }
 0x7da   : > { %1254 = vrot.lane.b32.xlu1 %v2357_v53, %s2132_s24 }
 0x7de   : > { %1259 = vrot.lane.b32.xlu1 %v2371_v63, %s2132_s24 }
 0x7e3   : > { %1304 = vrot.lane.b32.xlu0 %v2341_v41, %s2133_s28 }
 0x7f6   : > { %v871_v59 = vpop.f32.mrb[4].mxu1 }
 0x7f7   : > { %v1950_v60 = vpop.f32.mrb[5].mxu1 }
 0x7f8   : > { %v874_v62 = vpop.f32.mrb[6].mxu1 }
 0x7f9   : > { %v878_v0 = vpack.c.bf16 %v874_v62, %v871_v59  ;;  %v1951_v3 = vpop.f32.mrb[7].mxu1 }
 0x7fb   : > { %1973 = vmatmul.mubr.msk.bf16.vlgmr.msra.gmra.mrb[12].mxu1 %vm641_vm2, %v878_v0 }
 0x7fc   : > { %1984 = vmatprep.mubr.msk.bf16.mxu1 %vm2131_vm4, %v2130_v23 }
 0x81d   : > { %v1292_v9 = vpop.xlane.xlu0 %1291 }
 0x81e   : > { %v1296_v10 = vmul.f32 0.0625, %v1292_v9 }
 0x820   : > { %v1298_v25 = vadd.f32 1e-05, %v1296_v10 }
 0x822   : > { %2082 = vrsqrt.f32 %v1298_v25 }
 0x829   : > { %v1104_v4 = vpop.f32.mrb[8].mxu1 }
 0x82a   : > { %v1962_v5 = vpop.f32.mrb[9].mxu1 }
 0x82b   : > { %v1107_v6 = vpop.f32.mrb[10].mxu1 }
 0x82c   : > { %v1111_v7 = vpack.c.bf16 %v1107_v6, %v1104_v4  ;;  %v1963_v8 = vpop.f32.mrb[11].mxu1  ;;  %v2083_v21 = vpop.eup %2082 }
 0x82d   : > { %v1302_v24 = vmul.f32 %v2083_v21, %v2438_v15 }
 0x82e   : > { %1967 = vmatmul.mubr.msk.bf16.vlgmr.msra.gmra.mrb[8].mxu0 %vm641_vm2, %v1111_v7 }
 0x82f   : > { %1978 = vmatprep.mubr.msk.bf16.mxu0 %vm2131_vm4, %v2130_v23 }
 0x852   : > { %v1295_v37 = vpop.xlane.xlu1 %1294 }
 0x853   : > { %v1297_v11 = vmul.f32 0.0625, %v1295_v37 }
 0x855   : > { %v1299_v12 = vadd.f32 1e-05, %v1297_v11 }
 0x856   : > { %v1242_v13 = vpop.xlane.xlu0 %1241  ;;  %v1310_v22 = vpop.permute.xlu1 %1309 }
 0x857   : > { %2084 = vrsqrt.f32 %v1299_v12  ;;  %v1246_v14 = vmul.f32 0.0625, %v1242_v13 }
 0x859   : > { %v1248_v17 = vadd.f32 1e-05, %v1246_v14 }
 0x85a   : > { %v1245_v18 = vpop.xlane.xlu0 %1244  ;;  %v1255_v32 = vpop.permute.xlu1 %1254 }
 0x85b   : > { %2086 = vrsqrt.f32 %v1248_v17  ;;  %v1247_v19 = vmul.f32 0.0625, %v1245_v18 }
 0x85d   : > { %v1249_v56 = vadd.f32 1e-05, %v1247_v19 }
 0x85e   : > { %v1305_v2 = vpop.permute.xlu0 %1304  ;;  %v1260_v45 = vpop.permute.xlu1 %1259 }
 0x85f   : > { %2088 = vrsqrt.f32 %v1249_v56  ;;  %v1307_v28 = vmul.f32 %v1305_v2, %v1302_v24 }
 0x861   : > { %v2085_v26 = vpop.eup %2084  ;;  %v1312_v35 = vadd.f32 %v1310_v22, %v1307_v28 }
 0x862   : > { %v1303_v27 = vmul.f32 %v2085_v26, %v2449_v33 }
 0x864   : > { %v1308_v29 = vmul.f32 %v1305_v2, %v1303_v27 }
 0x865   : > { %v2087_v30 = vpop.eup %2086 }
 0x866   : > { %v1313_v36 = vadd.f32 %v1310_v22, %v1308_v29  ;;  %v1252_v39 = vmul.f32 %v2087_v30, %v2452_v38 }
 0x868   : > { %v1315_v16 = vpack.c.bf16 %v1313_v36, %v1312_v35  ;;  %v1257_v31 = vmul.f32 %v1255_v32, %v1252_v39 }
 0x869   : > { %v2089_v42 = vpop.eup %2088 }
 0x86a   : > { %v1253_v43 = vmul.f32 %v2089_v42, %v2458_v44  ;;  %1320 = vrot.lane.b32.xlu0 %v1315_v16, %s2132_s24  ;;  %v1262_v46 = vadd.f32 %v1260_v45, %v1257_v31 }
 0x86c   : > { %v1258_v15 = vmul.f32 %v1255_v32, %v1253_v43 }
 0x86e   : > { %v1263_v47 = vadd.f32 %v1260_v45, %v1258_v15  ;;  %1548 = vrot.lane.b32.xlu0 %v2267_v58, %s2129_s18 }
 0x870   : > { %v1314_v33 = vpack.c.bf16 %v1263_v47, %v1262_v46 }
 0x872   : > { %1317 = vrot.lane.b32.xlu1 %v1314_v33, %s2133_s28  ;;  %1498 = vrot.lane.b32.xlu0 %v2267_v58, %s2128_s15 }
 0x876   : > { %1550 = vrot.lane.b32.xlu1 %v2269_v61, %s2129_s18 }
 0x87a   : > { %1500 = vrot.lane.b32.xlu1 %v2269_v61, %s2128_s15 }
 0x8ce   : > { %v1207_v38 = vpop.f32.mrb[12].mxu1 }
 0x8cf   : > { %v1974_v44 = vpop.f32.mrb[13].mxu1 }
 0x8d0   : > { %v1210_v48 = vpop.f32.mrb[14].mxu1 }
 0x8d1   : > { %v1975_v20 = vpop.f32.mrb[15].mxu1 }
 0x8dc   : > { %v1321_v49 = vpop.permute.xlu0 %1320 }
 0x8dd   : > { %v1326_v50 = vsel %vm641_vm2, %v1321_v49, 0 }
 0x8de   : > { %1977 = vmatpush3.bf16.xpose.msra.mxu0 %v1326_v50 }
 0x8df   : > { %1988 = vmatprep.subr.bf16.mxu0 %v2130_v23 }
 0x8e0   : > { %v1549_v51 = vpop.permute.xlu0 %1548 }
 0x8e1   : > { %v1554_v34 = vsel %vm641_vm2, %v1549_v51, 0.0 }
 0x8e2   : > { %1555 = vadd.xlane.f32.xlu0 %v1554_v34 }
 0x8e4   : > { %v1318_v52 = vpop.permute.xlu1 %1317  ;;  %v1499_v54 = vpop.permute.xlu0 %1498 }
 0x8e5   : > { %1979 = vmatmul.mubr.msk.bf16.vlgmr.msra.gmra.mrb[12].mxu0 %vm641_vm2, %v1318_v52  ;;  %v1504_v55 = vsel %vm641_vm2, %v1499_v54, 0.0 }
 0x8e6   : > { %1505 = vadd.xlane.f32.xlu0 %v1504_v55  ;;  %1990 = vmatprep.mubr.msk.bf16.mxu0 %vm2131_vm4, %v2130_v23 }
 0x8e8   : > { %v1551_v57 = vpop.permute.xlu1 %1550 }
 0x8e9   : > { %v1557_v59 = vsel %vm645_vm3, %v1551_v57, 0.0 }
 0x8ea   : > { %1558 = vadd.xlane.f32.xlu1 %v1557_v59 }
 0x8ec   : > { %v1501_v60 = vpop.permute.xlu1 %1500 }
 0x8ed   : > { %v1507_v62 = vsel %vm645_vm3, %v1501_v60, 0.0 }
 0x8ee   : > { %1508 = vadd.xlane.f32.xlu0 %v1507_v62 }
 0x901   : > { %v1157_v0 = vpop.f32.mrb[8].mxu0 }
 0x902   : > { %v2518_v3 = vadd.f32 %v1207_v38, %v1157_v0  ;;  %v1968_v4 = vpop.f32.mrb[9].mxu0 }
 0x903   : > { %v1160_v5 = vpop.f32.mrb[10].mxu0 }
 0x904   : > { %v2520_v6 = vadd.f32 %v1210_v48, %v1160_v5  ;;  %v1969_v7 = vpop.f32.mrb[11].mxu0 }
 0x96f   : > { %v1556_v8 = vpop.xlane.xlu0 %1555 }
 0x970   : > { %v1560_v9 = vmul.f32 0.0625, %v1556_v8 }
 0x972   : > { %v2523_v10 = vsub.f32 %v2267_v58, %v1560_v9 }
 0x973   : > { %v1506_v37 = vpop.xlane.xlu0 %1505 }
 0x974   : > { %v1564_v25 = vmul.f32 %v2523_v10, %v2523_v10  ;;  %v1510_v12 = vmul.f32 0.0625, %v1506_v37 }
 0x976   : > { %1568 = vrot.lane.b32.xlu0 %v1564_v25, %s2129_s18  ;;  %v2532_v18 = vsub.f32 %v2267_v58, %v1510_v12 }
 0x977   : > { %v1559_v11 = vpop.xlane.xlu1 %1558 }
 0x978   : > { %v1561_v13 = vmul.f32 0.0625, %v1559_v11  ;;  %v1514_v2 = vmul.f32 %v2532_v18, %v2532_v18 }
 0x97a   : > { %v2529_v14 = vsub.f32 %v2269_v61, %v1561_v13 }
 0x97b   : > { %v1509_v17 = vpop.xlane.xlu0 %1508 }
 0x97c   : > { %v1511_v19 = vmul.f32 0.0625, %v1509_v17  ;;  %v1565_v21 = vmul.f32 %v2529_v14, %v2529_v14 }
 0x97e   : > { %1570 = vrot.lane.b32.xlu1 %v1565_v21, %s2129_s18  ;;  %v2538_v56 = vsub.f32 %v2269_v61, %v1511_v19 }
 0x980   : > { %v1515_v22 = vmul.f32 %v2538_v56, %v2538_v56 }
 0x982   : > { %1518 = vrot.lane.b32.xlu1 %v1514_v2, %s2128_s15 }
 0x986   : > { %1520 = vrot.lane.b32.xlu1 %v1515_v22, %s2128_s15 }
 0x9b8   : > { %v1362_v58 = vpop.f32.mrb[12].mxu0 }
 0x9b9   : > { %v1369_v24 = vmul.f32 0.25, %v1362_v58  ;;  %v1980_v26 = vpop.f32.mrb[13].mxu0 }
 0x9ba   : > { %v1365_v27 = vpop.f32.mrb[14].mxu0 }
 0x9bb   : > { %v1370_v28 = vmul.f32 0.25, %v1365_v27  ;;  %v1981_v29 = vpop.f32.mrb[15].mxu0  ;;  %v1371_v30 = vsel %vm804_vm6, %v1369_v24, -inf }
 0x9bc   : > { %1372 = vmax.xlane.f32.xlu0 %v1371_v30 }
 0x9bd   : > { %v1374_v61 = vsel %vm808_vm7, %v1370_v28, -inf }
 0x9be   : > { %1375 = vmax.xlane.f32.xlu1 %v1374_v61 }
 0x9e8   : > { %v1569_v32 = vpop.permute.xlu0 %1568 }
 0x9e9   : > { %v1574_v35 = vsel %vm641_vm2, %v1569_v32, 0.0 }
 0x9ea   : > { %1575 = vadd.xlane.f32.xlu0 %v1574_v35 }
 0x9f0   : > { %v1571_v36 = vpop.permute.xlu1 %1570 }
 0x9f1   : > { %v1577_v39 = vsel %vm645_vm3, %v1571_v36, 0.0 }
 0x9f2   : > { %1578 = vadd.xlane.f32.xlu0 %v1577_v39 }
 0x9f4   : > { %v1519_v16 = vpop.permute.xlu1 %1518 }
 0x9f5   : > { %v1524_v42 = vsel %vm641_vm2, %v1519_v16, 0.0  ;;  %v2044_v16 = vld [vmem:[%s2628_s10 + $0x10] sm:$0xff]  }
 0x9f6   : > { %1525 = vadd.xlane.f32.xlu0 %v1524_v42  ;;  %1989 = vmatpush3.bf16.msra.mxu0 %v2044_v16 }
 0x9f7   : > { %2000 = vmatprep.subr.bf16.mxu0 %v2130_v23 }
 0x9f8   : > { %v1521_v43 = vpop.permute.xlu1 %1520 }
 0x9f9   : > { %v1527_v31 = vsel %vm645_vm3, %v1521_v43, 0.0 }
 0x9fa   : > { %1528 = vadd.xlane.f32.xlu1 %v1527_v31 }
 0xa0b   : > { %1593 = vrot.lane.b32.xlu1 %v2334_v40, %s2126_s25 }
 0xa0c   : > { %1588 = vrot.lane.b32.xlu0 %v2341_v41, %s2126_s25 }
 0xa0f   : > { %1538 = vrot.lane.b32.xlu1 %v2357_v53, %s2127_s27 }
 0xa13   : > { %1543 = vrot.lane.b32.xlu1 %v2371_v63, %s2127_s27 }
 0xa49   : > { %v1373_v45 = vpop.xlane.xlu0 %1372 }
 0xa4a   : > { %v1377_v15 = vsub.f32 %v1369_v24, %v1373_v45 }
 0xa4b   : > { %v1376_v46 = vpop.xlane.xlu1 %1375 }
 0xa4c   : > { %v1379_v47 = vmul.f32 1.442695, %v1377_v15  ;;  %v1378_v33 = vsub.f32 %v1370_v28, %v1376_v46 }
 0xa4e   : > { %2090 = vpow2.f32 %v1379_v47  ;;  %v1381_v38 = vmul.f32 1.442695, %v1378_v33 }
 0xa50   : > { %2092 = vpow2.f32 %v1381_v38 }
 0xa58   : > { %v2091_v44 = vpop.eup %2090 }
 0xa59   : > { %v1383_v40 = vsel %vm804_vm6, %v2091_v44, 0.0 }
 0xa5a   : > { %v2093_v48 = vpop.eup %2092  ;;  %1384 = vadd.xlane.f32.xlu0 %v1383_v40 }
 0xa5b   : > { %v1386_v41 = vsel %vm808_vm7, %v2093_v48, 0.0 }
 0xa5c   : > { %1387 = vadd.xlane.f32.xlu1 %v1386_v41 }
 0xa70   : > { %1394 = vrot.lane.b32.xlu0 %v2275_v1, %s2133_s28  ;;  %s430_s28 = scalar_lea.vmem %s2630_s12, %s1914_s23 }
 0xa77   : > { %v1576_v53 = vpop.xlane.xlu0 %1575 }
 0xa78   : > { %v1580_v63 = vmul.f32 0.0625, %v1576_v53 }
 0xa7a   : > { %v1582_v20 = vadd.f32 1e-05, %v1580_v63 }
 0xa7c   : > { %2094 = vrsqrt.f32 %v1582_v20 }
 0xa7f   : > { %v1579_v49 = vpop.xlane.xlu0 %1578 }
 0xa80   : > { %v1581_v50 = vmul.f32 0.0625, %v1579_v49 }
 0xa82   : > { %v1583_v51 = vadd.f32 1e-05, %v1581_v50 }
 0xa83   : > { %v1526_v34 = vpop.xlane.xlu0 %1525 }
 0xa84   : > { %2096 = vrsqrt.f32 %v1583_v51  ;;  %v1530_v52 = vmul.f32 0.0625, %v1526_v34 }
 0xa86   : > { %v1532_v54 = vadd.f32 1e-05, %v1530_v52  ;;  %v2095_v57 = vpop.eup %2094 }
 0xa87   : > { %v1529_v55 = vpop.xlane.xlu1 %1528  ;;  %v1586_v62 = vmul.f32 %v2095_v57, %v2523_v10  ;;  %v1589_v0 = vpop.permute.xlu0 %1588 }
 0xa88   : > { %2098 = vrsqrt.f32 %v1532_v54  ;;  %v1531_v59 = vmul.f32 0.0625, %v1529_v55 }
 0xa89   : > { %v1591_v8 = vmul.f32 %v1589_v0, %v1586_v62 }
 0xa8a   : > { %v1533_v60 = vadd.f32 1e-05, %v1531_v59 }
 0xa8b   : > { %v1594_v5 = vpop.permute.xlu1 %1593 }
 0xa8c   : > { %2100 = vrsqrt.f32 %v1533_v60  ;;  %v1596_v11 = vadd.f32 %v1594_v5, %v1591_v8 }
 0xa8e   : > { %v2097_v4 = vpop.eup %2096 }
 0xa8f   : > { %v1587_v7 = vmul.f32 %v2097_v4, %v2529_v14  ;;  %v1539_v37 = vpop.permute.xlu1 %1538 }
 0xa91   : > { %v1592_v9 = vmul.f32 %v1589_v0, %v1587_v7 }
 0xa92   : > { %v2099_v25 = vpop.eup %2098 }
 0xa93   : > { %v1597_v12 = vadd.f32 %v1594_v5, %v1592_v9  ;;  %v1536_v13 = vmul.f32 %v2099_v25, %v2532_v18  ;;  %v1544_v10 = vpop.permute.xlu1 %1543  ;;  %v2045_v5 = vld [vmem:[%s2628_s10 + $0x18] sm:$0xff]  }
 0xa95   : > { %v1599_v17 = vpack.c.bf16 %v1597_v12, %v1596_v11  ;;  %v1541_v2 = vmul.f32 %v1539_v37, %v1536_v13 }
 0xa96   : > { %v2101_v19 = vpop.eup %2100 }
 0xa97   : > { %v1537_v21 = vmul.f32 %v2101_v19, %v2538_v56  ;;  %1604 = vrot.lane.b32.xlu1 %v1599_v17, %s2129_s18  ;;  %v1546_v58 = vadd.f32 %v1544_v10, %v1541_v2  ;;  %v1911_v2 = vld [vmem:[%s2629_s11] ss:$0 sm:$0xff] }
 0xa99   : > { %v1542_v22 = vmul.f32 %v1539_v37, %v1537_v21 }
 0xa9b   : > { %v1547_v24 = vadd.f32 %v1544_v10, %v1542_v22 }
 0xa9d   : > { %v1598_v14 = vpack.c.bf16 %v1547_v24, %v1546_v58  ;;  %v1878_v58 = vld [vmem:[%s2251_s14 + $0x5] ss:$0 sm:$0xff] }
 0xa9f   : > { %1601 = vrot.lane.b32.xlu0 %v1598_v14, %s2128_s15 }
 0xae7   : > { %v1385_v26 = vpop.xlane.xlu0 %1384 }
 0xae8   : > { %2102 = vrcp.f32 %v1385_v26 }
 0xae9   : > { %v1388_v27 = vpop.xlane.xlu1 %1387 }
 0xaea   : > { %2104 = vrcp.f32 %v1388_v27 }
 0xaeb   : > { %v1395_v28 = vpop.permute.xlu0 %1394 }
 0xaec   : > { %v1400_v18 = vsel %vm833_vm5, %v1395_v28, 0  ;;  %v1879_v28 = vld [vmem:[%s2251_s14 + $0x2] ss:$0 sm:$0xff] }
 0xaed   : > { %1983 = vmatpush3.bf16.msra.mxu1 %v1400_v18 }
 0xaee   : > { %1994 = vmatprep.subr.bf16.mxu1 %v2130_v23 }
 0xaf2   : > { %v2103_v56 = vpop.eup %2102 }
 0xaf3   : > { %v1391_v30 = vmul.f32 %v2103_v56, %v2091_v44 }
 0xaf4   : > { %v2105_v29 = vpop.eup %2104 }
 0xaf5   : > { %v1392_v61 = vmul.f32 %v2105_v29, %v2093_v48  ;;  %v2114_v29 = vld [vmem:[%s2215_s26] sm:$0xff] }
 0xaf7   : > { %v1393_v32 = vpack.c.bf16 %v1392_v61, %v1391_v30 }
 0xaf9   : > { %1985 = vmatmul.mubr.msk.bf16.vlgmr.msra.gmra.mrb[16].mxu1 %vm804_vm6, %v1393_v32  ;;  %v2115_v32 = vld [vmem:[%s2215_s26 + $0x8] sm:$0xf] }
 0xafa   : > { %1996 = vmatprep.mubr.msk.bf16.mxu1 %vm2131_vm4, %v2130_v23 }
 0xb09   : > { %v1605_v35 = vpop.permute.xlu1 %1604 }
 0xb0a   : > { %v1610_v36 = vsel %vm641_vm2, %v1605_v35, 0 }
 0xb0b   : > { %1995 = vmatpush3.bf16.xpose.msra.mxu1 %v1610_v36 }
 0xb0c   : > { %2006 = vmatprep.subr.bf16.mxu1 %v2130_v23 }
 0xb11   : > { %v1602_v39 = vpop.permute.xlu0 %1601 }
 0xb12   : > { %1997 = vmatmul.mubr.msk.bf16.vlgmr.msra.gmra.mrb[20].mxu1 %vm641_vm2, %v1602_v39 }
 0xb13   : > { %2008 = vmatprep.mubr.msk.bf16.mxu1 %vm2131_vm4, %v2130_v23  ;;  %2007 = vmatpush3.bf16.msra.mxu1 %v2045_v5 }
 0xbcc   : > { %v1436_v42 = vpop.f32.mrb[16].mxu1 }
 0xbcd   : > { %v1986_v43 = vpop.f32.mrb[17].mxu1 }
 0xbce   : > { %v1439_v31 = vpop.f32.mrb[18].mxu1 }
 0xbcf   : > { %v1443_v45 = vpack.c.bf16 %v1439_v31, %v1436_v42  ;;  %v1987_v15 = vpop.f32.mrb[19].mxu1 }
 0xbd1   : > { %1991 = vmatmul.mubr.msk.bf16.vlgmr.msra.gmra.mrb[16].mxu0 %vm641_vm2, %v1443_v45 }
 0xbd2   : > { %2002 = vmatprep.mubr.msk.bf16.mxu0 %vm2131_vm4, %v2130_v23 }
 0xbe5   : > { %v1646_v46 = vpop.f32.mrb[20].mxu1 }
 0xbe6   : > { %v1653_v47 = vmul.f32 0.25, %v1646_v46  ;;  %v1998_v33 = vpop.f32.mrb[21].mxu1 }
 0xbe7   : > { %v1649_v38 = vpop.f32.mrb[22].mxu1 }
 0xbe8   : > { %v1654_v44 = vmul.f32 0.25, %v1649_v38  ;;  %v1999_v40 = vpop.f32.mrb[23].mxu1  ;;  %v1655_v48 = vsel %vm804_vm6, %v1653_v47, -inf }
 0xbe9   : > { %1656 = vmax.xlane.f32.xlu1 %v1655_v48 }
 0xbea   : > { %v1658_v41 = vsel %vm808_vm7, %v1654_v44, -inf }
 0xbeb   : > { %1659 = vmax.xlane.f32.xlu0 %v1658_v41 }
 0xbfa   : > { %1678 = vrot.lane.b32.xlu1 %v2275_v1, %s2128_s15 }
 0xc76   : > { %v1657_v53 = vpop.xlane.xlu1 %1656 }
 0xc77   : > { %v1661_v63 = vsub.f32 %v1653_v47, %v1657_v53 }
 0xc78   : > { %v1660_v20 = vpop.xlane.xlu0 %1659 }
 0xc79   : > { %v1663_v49 = vmul.f32 1.442695, %v1661_v63  ;;  %v1662_v23 = vsub.f32 %v1654_v44, %v1660_v20 }
 0xc7a   : > { %v1679_v50 = vpop.permute.xlu1 %1678 }
 0xc7b   : > { %2106 = vpow2.f32 %v1663_v49  ;;  %v1665_v51 = vmul.f32 1.442695, %v1662_v23  ;;  %v1684_v34 = vsel %vm833_vm5, %v1679_v50, 0 }
 0xc7c   : > { %2001 = vmatpush3.bf16.msra.mxu0 %v1684_v34 }
 0xc7d   : > { %2108 = vpow2.f32 %v1665_v51 }
 0xc85   : > { %v2107_v52 = vpop.eup %2106 }
 0xc86   : > { %v1667_v54 = vsel %vm804_vm6, %v2107_v52, 0.0 }
 0xc87   : > { %v2109_v55 = vpop.eup %2108  ;;  %1668 = vadd.xlane.f32.xlu0 %v1667_v54 }
 0xc88   : > { %v1670_v57 = vsel %vm808_vm7, %v2109_v55, 0.0 }
 0xc8b   : > { %1671 = vadd.xlane.f32.xlu0 %v1670_v57 }
 0xca4   : > { %v1489_v1 = vpop.f32.mrb[16].mxu0 }
 0xca5   : > { %v1496_v59 = vadd.f32 %v1489_v1, %v2518_v3  ;;  %v1992_v60 = vpop.f32.mrb[17].mxu0 }
 0xca6   : > { %v1492_v62 = vpop.f32.mrb[18].mxu0 }
 0xca7   : > { %v1497_v0 = vadd.f32 %v1492_v62, %v2520_v6  ;;  %v1993_v4 = vpop.f32.mrb[19].mxu0 }
 0xd14   : > { %v1669_v7 = vpop.xlane.xlu0 %1668 }
 0xd15   : > { %2110 = vrcp.f32 %v1669_v7 }
 0xd18   : > { %v1672_v8 = vpop.xlane.xlu0 %1671 }
 0xd19   : > { %2112 = vrcp.f32 %v1672_v8 }
 0xd1f   : > { %v2111_v9 = vpop.eup %2110 }
 0xd20   : > { %v1675_v37 = vmul.f32 %v2111_v9, %v2107_v52 }
 0xd23   : > { %v2113_v25 = vpop.eup %2112 }
 0xd24   : > { %v1676_v11 = vmul.f32 %v2113_v25, %v2109_v55 }
 0xd26   : > { %v1677_v3 = vpack.c.bf16 %v1676_v11, %v1675_v37 }
 0xd28   : > { %2003 = vmatmul.mubr.msk.bf16.vlgmr.msra.gmra.mrb[20].mxu0 %vm804_vm6, %v1677_v3 }
 0xdfb   : > { %v1720_v6 = vpop.f32.mrb[20].mxu0 }
 0xdfc   : > { %v2004_v12 = vpop.f32.mrb[21].mxu0 }
 0xdfd   : > { %v1723_v13 = vpop.f32.mrb[22].mxu0 }
 0xdfe   : > { %v1727_v17 = vpack.c.bf16 %v1723_v13, %v1720_v6  ;;  %v2005_v19 = vpop.f32.mrb[23].mxu0 }
 0xe00   : > { %2009 = vmatmul.mubr.msk.bf16.vlgmr.msra.gmra.mrb[24].mxu1 %vm641_vm2, %v1727_v17 }
 0xed3   : > { %v1773_v21 = vpop.f32.mrb[24].mxu1 }
 0xed4   : > { %v1780_v10 = vadd.f32 %v1773_v21, %v1496_v59  ;;  %v2010_v22 = vpop.f32.mrb[25].mxu1 }
 0xed5   : > { %v1776_v24 = vpop.f32.mrb[26].mxu1 }
 0xed6   : > { %v1789_v14 = vadd.f32 %v1911_v2, %v1780_v10  ;;  %v1781_v26 = vadd.f32 %v1776_v24, %v1497_v0  ;;  %v2011_v27 = vpop.f32.mrb[27].mxu1 }
 0xed8   : > { %v1791_v18 = vmul.f32 %v1878_v58, %v1789_v14  ;;  %v1790_v56 = vadd.f32 %v1911_v2, %v1781_v26 }
 0xeda   : > { %v1793_v30 = vadd.f32 %v2114_v29, %v1791_v18  ;;  %v1792_v61 = vmul.f32 %v1879_v28, %v1790_v56 }
 0xedc   : > { %1795 = vst.msk [vmem:[%s430_s28] sm:$0xff] %vm481_vm0, %v1793_v30  ;;  %v1794_v35 = vadd.f32 %v2115_v32, %v1792_v61 }
 0xede   : > { %1796 = vst.msk [vmem:[%s430_s28 + $0x8] sm:$0xf] %vm485_vm1, %v1794_v35 }
 0xedf PF: > { %s22_s21 = sadd.s32 1, %s2122_s21  }
 0xee0   : > { %p19_p4 = scmp.ge.s32.totalorder %s22_s21, 4  }
 0xee2   :  { %21 = sbr.rel (!%p19_p4) target bundleno = 1 (0x1), region = 101 }

</bundles_post_ra>
